<compile_context>
chip_gen: v6e
topology: v6e:2x2x1
jax: 0.10.0
libtpu: 0.0.40
codegen_flags: <defaults>
</compile_context>

<pallas_src>
import functools
import math

import jax
import jax.numpy as jnp
from jax.experimental import pallas as pl
from jax.experimental.pallas import tpu as pltpu


MAX_B_TILE = 256  # fills MXU M rows on v6e/v7x (drop to 128 if targeting v5e)


def _round_up(x, m):
    return (x + m - 1) // m * m


def _pick_b_tile(batch):
    """Biggest useful batch tile: 8-sublane aligned, capped at MAX_B_TILE."""
    return min(MAX_B_TILE, _round_up(batch, 8))


# ----------------------------------------------------------------------------
# Fused Pallas kernel: n_iters x (stacked LSTM cell -> attention readout)
# ----------------------------------------------------------------------------
def set2set_kernel(n_layers, n_iters, feat_ref, *refs):
    """refs = (wih_0, whh_0, b_0, ..., wih_{L-1}, whh_{L-1}, b_{L-1},
               out_ref, h_ref, c_ref)

    feat_ref : (Bt, N, Dp)    bf16 padded node features (VMEM resident)
    wih_l    : (In_l, 4*Dp)   bf16 W_ih^T, gate-column padded
    whh_l    : (Dp,   4*Dp)   bf16 W_hh^T, gate-column padded
    b_l      : (1, 4*Dp)      f32  b_ih + b_hh, gate-column padded
    out_ref  : (Bt, 2*Dp)     f32  q_star; ALSO the persistent q_star buffer
                                   (q in [:Dp], readout in [Dp:2Dp])
    h_ref/c_ref : (L, Bt, Dp) f32  recurrent state (VMEM scratch)
    """
    out_ref, h_ref, c_ref = refs[-3], refs[-2], refs[-1]
    w_refs = refs[:-3]
    dp = h_ref.shape[-1]

    # Loop-invariant loads, hoisted out of the recurrence.
    feat = feat_ref[...].astype(jnp.float32)                       # VPU math in f32
    wih = tuple(w_refs[3 * l][...] for l in range(n_layers))       # bf16
    whh = tuple(w_refs[3 * l + 1][...] for l in range(n_layers))   # bf16
    bias = tuple(w_refs[3 * l + 2][...].astype(jnp.float32)
                 for l in range(n_layers))

    # Zero-init recurrent state and q_star.  out_ref doubles as the q_star
    # buffer, so no per-iteration jnp.concatenate is needed anywhere.
    h_ref[...] = jnp.zeros_like(h_ref)
    c_ref[...] = jnp.zeros_like(c_ref)
    out_ref[...] = jnp.zeros_like(out_ref)

    def body(_, carry):
        x = out_ref[...]                                   # q_star (Bt, 2Dp) f32
        for l in range(n_layers):
            # Split-K gate matmul: two bf16 MXU pushes, one f32 accumulator.
            gates = (jnp.dot(x.astype(jnp.bfloat16), wih[l],
                             preferred_element_type=jnp.float32)
                     + jnp.dot(h_ref[l].astype(jnp.bfloat16), whh[l],
                               preferred_element_type=jnp.float32)
                     + bias[l])
            # Gate slices are Dp(=128)-aligned -> whole-vreg ops, no masking.
            i_g = jax.nn.sigmoid(gates[:, 0 * dp:1 * dp])
            f_g = jax.nn.sigmoid(gates[:, 1 * dp:2 * dp])
            g_g = jnp.tanh(gates[:, 2 * dp:3 * dp])
            o_g = jax.nn.sigmoid(gates[:, 3 * dp:4 * dp])
            c_new = f_g * c_ref[l] + i_g * g_g
            h_new = o_g * jnp.tanh(c_new)
            c_ref[l] = c_new
            h_ref[l] = h_new
            x = h_new

        q = x                                              # (Bt, Dp)
        # Attention readout on the VPU/XLU (single query row per graph; an
        # MXU path would degenerate into 1-row matmuls + in-loop transposes).
        scores = jnp.sum(feat * q[:, None, :], axis=-1)            # (Bt, N)
        s_max = jnp.max(scores, axis=-1, keepdims=True)
        p = jnp.exp(scores - s_max)
        denom = jnp.sum(p, axis=-1, keepdims=True)
        alpha = p * pl.reciprocal(denom, approx=True)               # EUP
        readout = jnp.sum(alpha[:, :, None] * feat, axis=1)         # (Bt, Dp)

        # 128-lane-aligned stores into the persistent q_star buffer.
        out_ref[:, :dp] = q
        out_ref[:, dp:] = readout
        return carry

    jax.lax.fori_loop(0, n_iters, body, 0, unroll=True)


# ----------------------------------------------------------------------------
# Parameter init (PyTorch nn.LSTM style) + padded/bf16 param preparation
# ----------------------------------------------------------------------------
def init_set2set_params(key, input_dim, n_layers):
    """Every tensor ~ U(-1/sqrt(hidden), 1/sqrt(hidden)) like torch LSTM."""
    H = input_dim
    bound = 1.0 / math.sqrt(H)
    params = []
    for layer in range(n_layers):
        in_size = 2 * input_dim if layer == 0 else input_dim
        key, k1, k2, k3, k4 = jax.random.split(key, 5)
        w_ih = jax.random.uniform(k1, (4 * H, in_size), jnp.float32, -bound, bound)
        w_hh = jax.random.uniform(k2, (4 * H, H), jnp.float32, -bound, bound)
        b_ih = jax.random.uniform(k3, (4 * H,), jnp.float32, -bound, bound)
        b_hh = jax.random.uniform(k4, (4 * H,), jnp.float32, -bound, bound)
        params.append({
            "wih_t": w_ih.T,                       # (In, 4H)
            "whh_t": w_hh.T,                       # (H, 4H)
            "b": (b_ih + b_hh)[None, :],           # (1, 4H)
        })
    return params


def prepare_padded_params(params, D, Dp, dtype=jnp.bfloat16):
    """Lane-padded, gate-aligned LSTM weights (bf16) + f32 bias.

    Gate g occupies columns [g*Dp : g*Dp + D]; padded rows/columns are zero so
    padded hidden/cell lanes stay exactly zero (i=f=o=0.5, g=0 -> c=h=0).
    NOTE: the zero-padded BIAS columns are part of that invariant.
    Layer 0's input is the padded q_star: q rows -> [0:D], readout -> [Dp:Dp+D].
    """
    def pad_gate_cols(w):
        out = jnp.zeros((w.shape[0], 4 * Dp), jnp.float32)
        for g in range(4):
            out = out.at[:, g * Dp:g * Dp + D].set(w[:, g * D:(g + 1) * D])
        return out

    padded = []
    for l, p in enumerate(params):
        wih_c = pad_gate_cols(p["wih_t"])                  # (In, 4Dp)
        whh_c = pad_gate_cols(p["whh_t"])                  # (D, 4Dp)
        b_c = pad_gate_cols(p["b"])                        # (1, 4Dp) f32

        if l == 0:  # input = padded q_star (2*Dp wide)
            wih_pad = jnp.zeros((2 * Dp, 4 * Dp), jnp.float32)
            wih_pad = wih_pad.at[0:D, :].set(wih_c[0:D, :])
            wih_pad = wih_pad.at[Dp:Dp + D, :].set(wih_c[D:2 * D, :])
        else:       # input = padded h_{l-1} (Dp wide)
            wih_pad = jnp.zeros((Dp, 4 * Dp), jnp.float32).at[0:D, :].set(wih_c)
        whh_pad = jnp.zeros((Dp, 4 * Dp), jnp.float32).at[0:D, :].set(whh_c)

        padded.append({
            "wih_t": wih_pad.astype(dtype),   # bf16 MXU operand
            "whh_t": whh_pad.astype(dtype),   # bf16 MXU operand
            "b": b_c,                         # keep f32 (tiny; f32 accumulate)
        })
    return padded


def pad_features(feat, Dp, b_tile):
    """Build the bf16, lane/sublane-padded feature tensor ONCE (outside the
    per-call hot path in production)."""
    B, N, D = feat.shape
    Bp = _round_up(B, b_tile)
    feat_p = jnp.zeros((Bp, N, Dp), jnp.bfloat16)
    return feat_p.at[:B, :, :D].set(feat.astype(jnp.bfloat16))


# ----------------------------------------------------------------------------
# Forward wrapper: one pallas_call for the whole Set2Set loop
# ----------------------------------------------------------------------------
@functools.partial(jax.jit, static_argnames=("n_iters", "n_layers", "b_tile"))
def set2set_forward(feat_p, padded_params, n_iters, n_layers, b_tile):
    """feat_p: (Bp, N, Dp) bf16 padded.  Returns padded q_star: (Bp, 2*Dp) f32."""
    Bp, N, Dp = feat_p.shape
    kernel = functools.partial(set2set_kernel, n_layers, n_iters)

    in_specs = [pl.BlockSpec((b_tile, N, Dp), lambda i: (i, 0, 0))]
    args = [feat_p]
    for l in range(n_layers):
        wih = padded_params[l]["wih_t"]
        whh = padded_params[l]["whh_t"]
        b = padded_params[l]["b"]
        # Loop-invariant across grid steps (index_map always returns block 0).
        in_specs += [pl.BlockSpec(wih.shape, lambda i: (0, 0)),
                     pl.BlockSpec(whh.shape, lambda i: (0, 0)),
                     pl.BlockSpec(b.shape, lambda i: (0, 0))]
        args += [wih, whh, b]

    return pl.pallas_call(
        kernel,
        grid=(Bp // b_tile,),
        in_specs=in_specs,
        out_specs=pl.BlockSpec((b_tile, 2 * Dp), lambda i: (i, 0)),
        out_shape=jax.ShapeDtypeStruct((Bp, 2 * Dp), jnp.float32),
        scratch_shapes=[pltpu.VMEM((n_layers, b_tile, Dp), jnp.float32),  # h
                        pltpu.VMEM((n_layers, b_tile, Dp), jnp.float32)], # c
        compiler_params=pltpu.CompilerParams(
            dimension_semantics=("parallel",),
            vmem_limit_bytes=32 * 1024 * 1024),
    )(*args)


def set2set_apply(feat, padded_params, n_iters, n_layers, D, Dp, b_tile=None):
    """feat: (B, N, D) unpadded.  Returns q_star: (B, 2D)."""
    B = feat.shape[0]
    if b_tile is None:
        b_tile = _pick_b_tile(B)
    feat_p = pad_features(feat, Dp, b_tile)
    q_star_p = set2set_forward(feat_p, padded_params, n_iters, n_layers, b_tile)
    # Un-pad: q lives in [:D], readout in [Dp:Dp+D].
    return jnp.concatenate([q_star_p[:B, :D], q_star_p[:B, Dp:Dp + D]], axis=-1)


# ----------------------------------------------------------------------------
# Pure-JAX reference (unpadded, f32) for a sanity check
# ----------------------------------------------------------------------------
def set2set_reference(feat, params, n_iters, n_layers):
    B, N, D = feat.shape
    h = [jnp.zeros((B, D), jnp.float32) for _ in range(n_layers)]
    c = [jnp.zeros((B, D), jnp.float32) for _ in range(n_layers)]
    q_star = jnp.zeros((B, 2 * D), jnp.float32)
    for _ in range(n_iters):
        x = q_star
        for l in range(n_layers):
            p = params[l]
            gates = x @ p["wih_t"] + h[l] @ p["whh_t"] + p["b"]
            i_g = jax.nn.sigmoid(gates[:, 0 * D:1 * D])
            f_g = jax.nn.sigmoid(gates[:, 1 * D:2 * D])
            g_g = jnp.tanh(gates[:, 2 * D:3 * D])
            o_g = jax.nn.sigmoid(gates[:, 3 * D:4 * D])
            c[l] = f_g * c[l] + i_g * g_g
            h[l] = o_g * jnp.tanh(c[l])
            x = h[l]
        q = x
        e = jnp.sum(feat * q[:, None, :], axis=-1)
        alpha = jax.nn.softmax(e, axis=-1)
        readout = jnp.sum(alpha[:, :, None] * feat, axis=1)
        q_star = jnp.concatenate([q, readout], axis=-1)
    return q_star


# ----------------------------------------------------------------------------
if __name__ == "__main__":
    B = 2            # batch_size (number of graphs)
    N = 8            # nodes per graph (fixed)
    D = 16           # input_dim
    N_ITERS = 3
    N_LAYERS = 2

    key = jax.random.PRNGKey(0)
    key, kf, kp = jax.random.split(key, 3)
    feat = jax.random.normal(kf, (B, N, D), jnp.float32)
    params = init_set2set_params(kp, D, N_LAYERS)

    Dp = _round_up(D, 128)
    padded_params = prepare_padded_params(params, D, Dp)

    out = set2set_apply(feat, padded_params, N_ITERS, N_LAYERS, D, Dp)
    out = jax.block_until_ready(out)
    assert out.shape == (B, 2 * D), out.shape

    ref = set2set_reference(feat, params, N_ITERS, N_LAYERS)
    # bf16 feat/weight operands (f32 state + accumulation) + approx reciprocal
    # give ~1e-3..1e-2 abs error vs the pure-f32 reference.
    assert jnp.allclose(out, ref, rtol=2e-2, atol=2e-2), (
        "mismatch vs reference", float(jnp.max(jnp.abs(out - ref))))

    print("KERNEL_OK")
</pallas_src>

<mosaic_0001>
module attributes {stable_mosaic.version = 11 : i64} {
  func.func @set2set_kernel(%arg0: i32, %arg1: memref<8x8x128xbf16, #tpu.memory_space<vmem>>, %arg2: memref<256x512xbf16, #tpu.memory_space<vmem>>, %arg3: memref<128x512xbf16, #tpu.memory_space<vmem>>, %arg4: memref<1x512xf32, #tpu.memory_space<vmem>>, %arg5: memref<128x512xbf16, #tpu.memory_space<vmem>>, %arg6: memref<128x512xbf16, #tpu.memory_space<vmem>>, %arg7: memref<1x512xf32, #tpu.memory_space<vmem>>, %arg8: memref<8x256xf32, #tpu.memory_space<vmem>>, %arg9: memref<2x8x128xf32, #tpu.memory_space<vmem>>, %arg10: memref<2x8x128xf32, #tpu.memory_space<vmem>>) attributes {dimension_semantics = [#tpu.dimension_semantics<parallel>], iteration_bounds = array<i64: 1>, scalar_prefetch = 0 : i64, scratch_operands = 2 : i64, tpu.core_type = #tpu.core_type<tc>, window_params = [{transform_indices = @transform_0, window_bounds = array<i64: 8, 8, 128>}, {pipeline_mode = #tpu.pipeline_mode<synchronous>, transform_indices = @transform_1, window_bounds = array<i64: 256, 512>}, {pipeline_mode = #tpu.pipeline_mode<synchronous>, transform_indices = @transform_2, window_bounds = array<i64: 128, 512>}, {pipeline_mode = #tpu.pipeline_mode<synchronous>, transform_indices = @transform_3, window_bounds = array<i64: 1, 512>}, {pipeline_mode = #tpu.pipeline_mode<synchronous>, transform_indices = @transform_4, window_bounds = array<i64: 128, 512>}, {pipeline_mode = #tpu.pipeline_mode<synchronous>, transform_indices = @transform_5, window_bounds = array<i64: 128, 512>}, {pipeline_mode = #tpu.pipeline_mode<synchronous>, transform_indices = @transform_6, window_bounds = array<i64: 1, 512>}, {transform_indices = @transform_7, window_bounds = array<i64: 8, 256>}]} {
    %c0 = arith.constant 0 : index
    %c0_0 = arith.constant 0 : index
    %c0_1 = arith.constant 0 : index
    %0 = vector.load %arg1[%c0, %c0_0, %c0_1] : memref<8x8x128xbf16, #tpu.memory_space<vmem>>, vector<8x8x128xbf16>
    %1 = arith.extf %0 : vector<8x8x128xbf16> to vector<8x8x128xf32>
    %c0_2 = arith.constant 0 : index
    %c0_3 = arith.constant 0 : index
    %2 = vector.load %arg2[%c0_2, %c0_3] : memref<256x512xbf16, #tpu.memory_space<vmem>>, vector<256x512xbf16>
    %c0_4 = arith.constant 0 : index
    %c0_5 = arith.constant 0 : index
    %3 = vector.load %arg5[%c0_4, %c0_5] : memref<128x512xbf16, #tpu.memory_space<vmem>>, vector<128x512xbf16>
    %c0_6 = arith.constant 0 : index
    %c0_7 = arith.constant 0 : index
    %4 = vector.load %arg3[%c0_6, %c0_7] : memref<128x512xbf16, #tpu.memory_space<vmem>>, vector<128x512xbf16>
    %c0_8 = arith.constant 0 : index
    %c0_9 = arith.constant 0 : index
    %5 = vector.load %arg6[%c0_8, %c0_9] : memref<128x512xbf16, #tpu.memory_space<vmem>>, vector<128x512xbf16>
    %c0_10 = arith.constant 0 : index
    %c0_11 = arith.constant 0 : index
    %6 = vector.load %arg4[%c0_10, %c0_11] : memref<1x512xf32, #tpu.memory_space<vmem>>, vector<1x512xf32>
    %c0_12 = arith.constant 0 : index
    %c0_13 = arith.constant 0 : index
    %7 = vector.load %arg7[%c0_12, %c0_13] : memref<1x512xf32, #tpu.memory_space<vmem>>, vector<1x512xf32>
    %cst = arith.constant 0.000000e+00 : f32
    %8 = vector.broadcast %cst : f32 to vector<2x8x128xf32>
    %c0_14 = arith.constant 0 : index
    %c0_15 = arith.constant 0 : index
    %c0_16 = arith.constant 0 : index
    %9 = vector.load %arg9[%c0_14, %c0_15, %c0_16] : memref<2x8x128xf32, #tpu.memory_space<vmem>>, vector<2x8x128xf32>
    tpu.vector_store %arg9[%c0_14, %c0_15, %c0_16], %8 {strides = array<i32>} : memref<2x8x128xf32, #tpu.memory_space<vmem>>, vector<2x8x128xf32>,
    %cst_17 = arith.constant 0.000000e+00 : f32
    %10 = vector.broadcast %cst_17 : f32 to vector<2x8x128xf32>
    %c0_18 = arith.constant 0 : index
    %c0_19 = arith.constant 0 : index
    %c0_20 = arith.constant 0 : index
    %11 = vector.load %arg10[%c0_18, %c0_19, %c0_20] : memref<2x8x128xf32, #tpu.memory_space<vmem>>, vector<2x8x128xf32>
    tpu.vector_store %arg10[%c0_18, %c0_19, %c0_20], %10 {strides = array<i32>} : memref<2x8x128xf32, #tpu.memory_space<vmem>>, vector<2x8x128xf32>,
    %cst_21 = arith.constant 0.000000e+00 : f32
    %12 = vector.broadcast %cst_21 : f32 to vector<8x256xf32>
    %c0_22 = arith.constant 0 : index
    %c0_23 = arith.constant 0 : index
    %13 = vector.load %arg8[%c0_22, %c0_23] : memref<8x256xf32, #tpu.memory_space<vmem>>, vector<8x256xf32>
    tpu.vector_store %arg8[%c0_22, %c0_23], %12 {strides = array<i32>} : memref<8x256xf32, #tpu.memory_space<vmem>>, vector<8x256xf32>,
    %c0_i32 = arith.constant 0 : i32
    %c0_24 = arith.constant 0 : index
    %c0_25 = arith.constant 0 : index
    %14 = vector.load %arg8[%c0_24, %c0_25] : memref<8x256xf32, #tpu.memory_space<vmem>>, vector<8x256xf32>
    %15 = arith.truncf %14 : vector<8x256xf32> to vector<8x256xbf16>
    %cst_26 = arith.constant dense<0.000000e+00> : vector<8x512xf32>
    %16 = tpu.matmul %15, %2, %cst_26 {dimension_numbers = #tpu.dot_dimension_numbers<[1], [0], [0], [1], [0, 0, 1, 1], [], []>} : vector<8x256xbf16>, vector<256x512xbf16>, vector<8x512xf32> -> vector<8x512xf32>
    %c0_27 = arith.constant 0 : index
    %c0_28 = arith.constant 0 : index
    %c0_29 = arith.constant 0 : index
    %17 = vector.load %arg9[%c0_27, %c0_28, %c0_29] : memref<2x8x128xf32, #tpu.memory_space<vmem>>, vector<1x8x128xf32>
    %18 = vector.shape_cast %17 : vector<1x8x128xf32> to vector<8x128xf32>
    %19 = arith.truncf %18 : vector<8x128xf32> to vector<8x128xbf16>
    %cst_30 = arith.constant dense<0.000000e+00> : vector<8x512xf32>
    %20 = tpu.matmul %19, %4, %cst_30 {dimension_numbers = #tpu.dot_dimension_numbers<[1], [0], [0], [1], [0, 0, 1, 1], [], []>} : vector<8x128xbf16>, vector<128x512xbf16>, vector<8x512xf32> -> vector<8x512xf32>
    %21 = arith.addf %16, %20 : vector<8x512xf32>
    %22 = vector.broadcast %6 : vector<1x512xf32> to vector<8x512xf32>
    %23 = arith.addf %21, %22 : vector<8x512xf32>
    %24 = vector.extract_strided_slice %23 {offsets = [0, 0], sizes = [8, 128], strides = [1, 1]} : vector<8x512xf32> to vector<8x128xf32>
    %25 = arith.negf %24 : vector<8x128xf32>
    %26 = math.exp %25 : vector<8x128xf32>
    %cst_31 = arith.constant 1.000000e+00 : f32
    %27 = vector.broadcast %cst_31 : f32 to vector<8x128xf32>
    %28 = arith.addf %27, %26 : vector<8x128xf32>
    %29 = arith.divf %27, %28 : vector<8x128xf32>
    %30 = vector.extract_strided_slice %23 {offsets = [0, 128], sizes = [8, 128], strides = [1, 1]} : vector<8x512xf32> to vector<8x128xf32>
    %31 = arith.negf %30 : vector<8x128xf32>
    %32 = math.exp %31 : vector<8x128xf32>
    %cst_32 = arith.constant 1.000000e+00 : f32
    %33 = vector.broadcast %cst_32 : f32 to vector<8x128xf32>
    %34 = arith.addf %33, %32 : vector<8x128xf32>
    %35 = arith.divf %33, %34 : vector<8x128xf32>
    %36 = vector.extract_strided_slice %23 {offsets = [0, 256], sizes = [8, 128], strides = [1, 1]} : vector<8x512xf32> to vector<8x128xf32>
    %37 = math.tanh %36 : vector<8x128xf32>
    %38 = vector.extract_strided_slice %23 {offsets = [0, 384], sizes = [8, 128], strides = [1, 1]} : vector<8x512xf32> to vector<8x128xf32>
    %39 = arith.negf %38 : vector<8x128xf32>
    %40 = math.exp %39 : vector<8x128xf32>
    %cst_33 = arith.constant 1.000000e+00 : f32
    %41 = vector.broadcast %cst_33 : f32 to vector<8x128xf32>
    %42 = arith.addf %41, %40 : vector<8x128xf32>
    %43 = arith.divf %41, %42 : vector<8x128xf32>
    %c0_34 = arith.constant 0 : index
    %c0_35 = arith.constant 0 : index
    %c0_36 = arith.constant 0 : index
    %44 = vector.load %arg10[%c0_34, %c0_35, %c0_36] : memref<2x8x128xf32, #tpu.memory_space<vmem>>, vector<1x8x128xf32>
    %45 = vector.shape_cast %44 : vector<1x8x128xf32> to vector<8x128xf32>
    %46 = arith.mulf %35, %45 : vector<8x128xf32>
    %47 = arith.mulf %29, %37 : vector<8x128xf32>
    %48 = arith.addf %46, %47 : vector<8x128xf32>
    %49 = math.tanh %48 : vector<8x128xf32>
    %50 = arith.mulf %43, %49 : vector<8x128xf32>
    %c0_37 = arith.constant 0 : index
    %c0_38 = arith.constant 0 : index
    %c0_39 = arith.constant 0 : index
    %51 = vector.load %arg10[%c0_37, %c0_38, %c0_39] : memref<2x8x128xf32, #tpu.memory_space<vmem>>, vector<1x8x128xf32>
    %52 = vector.shape_cast %51 : vector<1x8x128xf32> to vector<8x128xf32>
    %53 = vector.shape_cast %48 : vector<8x128xf32> to vector<1x8x128xf32>
    tpu.vector_store %arg10[%c0_37, %c0_38, %c0_39], %53 {strides = array<i32>} : memref<2x8x128xf32, #tpu.memory_space<vmem>>, vector<1x8x128xf32>,
    %c0_40 = arith.constant 0 : index
    %c0_41 = arith.constant 0 : index
    %c0_42 = arith.constant 0 : index
    %54 = vector.load %arg9[%c0_40, %c0_41, %c0_42] : memref<2x8x128xf32, #tpu.memory_space<vmem>>, vector<1x8x128xf32>
    %55 = vector.shape_cast %54 : vector<1x8x128xf32> to vector<8x128xf32>
    %56 = vector.shape_cast %50 : vector<8x128xf32> to vector<1x8x128xf32>
    tpu.vector_store %arg9[%c0_40, %c0_41, %c0_42], %56 {strides = array<i32>} : memref<2x8x128xf32, #tpu.memory_space<vmem>>, vector<1x8x128xf32>,
    %57 = arith.truncf %50 : vector<8x128xf32> to vector<8x128xbf16>
    %cst_43 = arith.constant dense<0.000000e+00> : vector<8x512xf32>
    %58 = tpu.matmul %57, %3, %cst_43 {dimension_numbers = #tpu.dot_dimension_numbers<[1], [0], [0], [1], [0, 0, 1, 1], [], []>} : vector<8x128xbf16>, vector<128x512xbf16>, vector<8x512xf32> -> vector<8x512xf32>
    %c1 = arith.constant 1 : index
    %c0_44 = arith.constant 0 : index
    %c0_45 = arith.constant 0 : index
    %59 = vector.load %arg9[%c1, %c0_44, %c0_45] : memref<2x8x128xf32, #tpu.memory_space<vmem>>, vector<1x8x128xf32>
    %60 = vector.shape_cast %59 : vector<1x8x128xf32> to vector<8x128xf32>
    %61 = arith.truncf %60 : vector<8x128xf32> to vector<8x128xbf16>
    %cst_46 = arith.constant dense<0.000000e+00> : vector<8x512xf32>
    %62 = tpu.matmul %61, %5, %cst_46 {dimension_numbers = #tpu.dot_dimension_numbers<[1], [0], [0], [1], [0, 0, 1, 1], [], []>} : vector<8x128xbf16>, vector<128x512xbf16>, vector<8x512xf32> -> vector<8x512xf32>
    %63 = arith.addf %58, %62 : vector<8x512xf32>
    %64 = vector.broadcast %7 : vector<1x512xf32> to vector<8x512xf32>
    %65 = arith.addf %63, %64 : vector<8x512xf32>
    %66 = vector.extract_strided_slice %65 {offsets = [0, 0], sizes = [8, 128], strides = [1, 1]} : vector<8x512xf32> to vector<8x128xf32>
    %67 = arith.negf %66 : vector<8x128xf32>
    %68 = math.exp %67 : vector<8x128xf32>
    %cst_47 = arith.constant 1.000000e+00 : f32
    %69 = vector.broadcast %cst_47 : f32 to vector<8x128xf32>
    %70 = arith.addf %69, %68 : vector<8x128xf32>
    %71 = arith.divf %69, %70 : vector<8x128xf32>
    %72 = vector.extract_strided_slice %65 {offsets = [0, 128], sizes = [8, 128], strides = [1, 1]} : vector<8x512xf32> to vector<8x128xf32>
    %73 = arith.negf %72 : vector<8x128xf32>
    %74 = math.exp %73 : vector<8x128xf32>
    %cst_48 = arith.constant 1.000000e+00 : f32
    %75 = vector.broadcast %cst_48 : f32 to vector<8x128xf32>
    %76 = arith.addf %75, %74 : vector<8x128xf32>
    %77 = arith.divf %75, %76 : vector<8x128xf32>
    %78 = vector.extract_strided_slice %65 {offsets = [0, 256], sizes = [8, 128], strides = [1, 1]} : vector<8x512xf32> to vector<8x128xf32>
    %79 = math.tanh %78 : vector<8x128xf32>
    %80 = vector.extract_strided_slice %65 {offsets = [0, 384], sizes = [8, 128], strides = [1, 1]} : vector<8x512xf32> to vector<8x128xf32>
    %81 = arith.negf %80 : vector<8x128xf32>
    %82 = math.exp %81 : vector<8x128xf32>
    %cst_49 = arith.constant 1.000000e+00 : f32
    %83 = vector.broadcast %cst_49 : f32 to vector<8x128xf32>
    %84 = arith.addf %83, %82 : vector<8x128xf32>
    %85 = arith.divf %83, %84 : vector<8x128xf32>
    %c1_50 = arith.constant 1 : index
    %c0_51 = arith.constant 0 : index
    %c0_52 = arith.constant 0 : index
    %86 = vector.load %arg10[%c1_50, %c0_51, %c0_52] : memref<2x8x128xf32, #tpu.memory_space<vmem>>, vector<1x8x128xf32>
    %87 = vector.shape_cast %86 : vector<1x8x128xf32> to vector<8x128xf32>
    %88 = arith.mulf %77, %87 : vector<8x128xf32>
    %89 = arith.mulf %71, %79 : vector<8x128xf32>
    %90 = arith.addf %88, %89 : vector<8x128xf32>
    %91 = math.tanh %90 : vector<8x128xf32>
    %92 = arith.mulf %85, %91 : vector<8x128xf32>
    %c1_53 = arith.constant 1 : index
    %c0_54 = arith.constant 0 : index
    %c0_55 = arith.constant 0 : index
    %93 = vector.load %arg10[%c1_53, %c0_54, %c0_55] : memref<2x8x128xf32, #tpu.memory_space<vmem>>, vector<1x8x128xf32>
    %94 = vector.shape_cast %93 : vector<1x8x128xf32> to vector<8x128xf32>
    %95 = vector.shape_cast %90 : vector<8x128xf32> to vector<1x8x128xf32>
    tpu.vector_store %arg10[%c1_53, %c0_54, %c0_55], %95 {strides = array<i32>} : memref<2x8x128xf32, #tpu.memory_space<vmem>>, vector<1x8x128xf32>,
    %c1_56 = arith.constant 1 : index
    %c0_57 = arith.constant 0 : index
    %c0_58 = arith.constant 0 : index
    %96 = vector.load %arg9[%c1_56, %c0_57, %c0_58] : memref<2x8x128xf32, #tpu.memory_space<vmem>>, vector<1x8x128xf32>
    %97 = vector.shape_cast %96 : vector<1x8x128xf32> to vector<8x128xf32>
    %98 = vector.shape_cast %92 : vector<8x128xf32> to vector<1x8x128xf32>
    tpu.vector_store %arg9[%c1_56, %c0_57, %c0_58], %98 {strides = array<i32>} : memref<2x8x128xf32, #tpu.memory_space<vmem>>, vector<1x8x128xf32>,
    %99 = vector.shape_cast %92 : vector<8x128xf32> to vector<8x1x128xf32>
    %100 = vector.broadcast %99 : vector<8x1x128xf32> to vector<8x8x128xf32>
    %101 = arith.mulf %1, %100 : vector<8x8x128xf32>
    %cst_59 = arith.constant dense<0.000000e+00> : vector<8x8xf32>
    %102 = vector.multi_reduction <add>, %101, %cst_59 [2] : vector<8x8x128xf32> to vector<8x8xf32>
    %cst_60 = arith.constant dense<0xFF800000> : vector<8xf32>
    %103 = vector.multi_reduction <maximumf>, %102, %cst_60 [1] : vector<8x8xf32> to vector<8xf32>
    %104 = vector.shape_cast %103 : vector<8xf32> to vector<8x1xf32>
    %105 = vector.broadcast %104 : vector<8x1xf32> to vector<8x8xf32>
    %106 = arith.subf %102, %105 : vector<8x8xf32>
    %107 = math.exp %106 : vector<8x8xf32>
    %cst_61 = arith.constant dense<0.000000e+00> : vector<8xf32>
    %108 = vector.multi_reduction <add>, %107, %cst_61 [1] : vector<8x8xf32> to vector<8xf32>
    %109 = vector.shape_cast %108 : vector<8xf32> to vector<8x1xf32>
    %110 = tpu.reciprocal %109 {approx = true} : vector<8x1xf32> -> vector<8x1xf32>
    %111 = vector.broadcast %110 : vector<8x1xf32> to vector<8x8xf32>
    %112 = arith.mulf %107, %111 : vector<8x8xf32>
    %113 = vector.shape_cast %112 : vector<8x8xf32> to vector<8x8x1xf32>
    %114 = vector.broadcast %113 : vector<8x8x1xf32> to vector<8x8x128xf32>
    %115 = arith.mulf %114, %1 : vector<8x8x128xf32>
    %cst_62 = arith.constant dense<0.000000e+00> : vector<8x128xf32>
    %116 = vector.multi_reduction <add>, %115, %cst_62 [1] : vector<8x8x128xf32> to vector<8x128xf32>
    %c0_63 = arith.constant 0 : index
    %c0_64 = arith.constant 0 : index
    %117 = vector.load %arg8[%c0_63, %c0_64] : memref<8x256xf32, #tpu.memory_space<vmem>>, vector<8x128xf32>
    tpu.vector_store %arg8[%c0_63, %c0_64], %92 {strides = array<i32>} : memref<8x256xf32, #tpu.memory_space<vmem>>, vector<8x128xf32>,
    %c0_65 = arith.constant 0 : index
    %c128 = arith.constant 128 : index
    %118 = vector.load %arg8[%c0_65, %c128] : memref<8x256xf32, #tpu.memory_space<vmem>>, vector<8x128xf32>
    tpu.vector_store %arg8[%c0_65, %c128], %116 {strides = array<i32>} : memref<8x256xf32, #tpu.memory_space<vmem>>, vector<8x128xf32>,
    %c1_i32 = arith.constant 1 : i32
    %c0_66 = arith.constant 0 : index
    %c0_67 = arith.constant 0 : index
    %119 = vector.load %arg8[%c0_66, %c0_67] : memref<8x256xf32, #tpu.memory_space<vmem>>, vector<8x256xf32>
    %120 = arith.truncf %119 : vector<8x256xf32> to vector<8x256xbf16>
    %cst_68 = arith.constant dense<0.000000e+00> : vector<8x512xf32>
    %121 = tpu.matmul %120, %2, %cst_68 {dimension_numbers = #tpu.dot_dimension_numbers<[1], [0], [0], [1], [0, 0, 1, 1], [], []>} : vector<8x256xbf16>, vector<256x512xbf16>, vector<8x512xf32> -> vector<8x512xf32>
    %c0_69 = arith.constant 0 : index
    %c0_70 = arith.constant 0 : index
    %c0_71 = arith.constant 0 : index
    %122 = vector.load %arg9[%c0_69, %c0_70, %c0_71] : memref<2x8x128xf32, #tpu.memory_space<vmem>>, vector<1x8x128xf32>
    %123 = vector.shape_cast %122 : vector<1x8x128xf32> to vector<8x128xf32>
    %124 = arith.truncf %123 : vector<8x128xf32> to vector<8x128xbf16>
    %cst_72 = arith.constant dense<0.000000e+00> : vector<8x512xf32>
    %125 = tpu.matmul %124, %4, %cst_72 {dimension_numbers = #tpu.dot_dimension_numbers<[1], [0], [0], [1], [0, 0, 1, 1], [], []>} : vector<8x128xbf16>, vector<128x512xbf16>, vector<8x512xf32> -> vector<8x512xf32>
    %126 = arith.addf %121, %125 : vector<8x512xf32>
    %127 = vector.broadcast %6 : vector<1x512xf32> to vector<8x512xf32>
    %128 = arith.addf %126, %127 : vector<8x512xf32>
    %129 = vector.extract_strided_slice %128 {offsets = [0, 0], sizes = [8, 128], strides = [1, 1]} : vector<8x512xf32> to vector<8x128xf32>
    %130 = arith.negf %129 : vector<8x128xf32>
    %131 = math.exp %130 : vector<8x128xf32>
    %cst_73 = arith.constant 1.000000e+00 : f32
    %132 = vector.broadcast %cst_73 : f32 to vector<8x128xf32>
    %133 = arith.addf %132, %131 : vector<8x128xf32>
    %134 = arith.divf %132, %133 : vector<8x128xf32>
    %135 = vector.extract_strided_slice %128 {offsets = [0, 128], sizes = [8, 128], strides = [1, 1]} : vector<8x512xf32> to vector<8x128xf32>
    %136 = arith.negf %135 : vector<8x128xf32>
    %137 = math.exp %136 : vector<8x128xf32>
    %cst_74 = arith.constant 1.000000e+00 : f32
    %138 = vector.broadcast %cst_74 : f32 to vector<8x128xf32>
    %139 = arith.addf %138, %137 : vector<8x128xf32>
    %140 = arith.divf %138, %139 : vector<8x128xf32>
    %141 = vector.extract_strided_slice %128 {offsets = [0, 256], sizes = [8, 128], strides = [1, 1]} : vector<8x512xf32> to vector<8x128xf32>
    %142 = math.tanh %141 : vector<8x128xf32>
    %143 = vector.extract_strided_slice %128 {offsets = [0, 384], sizes = [8, 128], strides = [1, 1]} : vector<8x512xf32> to vector<8x128xf32>
    %144 = arith.negf %143 : vector<8x128xf32>
    %145 = math.exp %144 : vector<8x128xf32>
    %cst_75 = arith.constant 1.000000e+00 : f32
    %146 = vector.broadcast %cst_75 : f32 to vector<8x128xf32>
    %147 = arith.addf %146, %145 : vector<8x128xf32>
    %148 = arith.divf %146, %147 : vector<8x128xf32>
    %c0_76 = arith.constant 0 : index
    %c0_77 = arith.constant 0 : index
    %c0_78 = arith.constant 0 : index
    %149 = vector.load %arg10[%c0_76, %c0_77, %c0_78] : memref<2x8x128xf32, #tpu.memory_space<vmem>>, vector<1x8x128xf32>
    %150 = vector.shape_cast %149 : vector<1x8x128xf32> to vector<8x128xf32>
    %151 = arith.mulf %140, %150 : vector<8x128xf32>
    %152 = arith.mulf %134, %142 : vector<8x128xf32>
    %153 = arith.addf %151, %152 : vector<8x128xf32>
    %154 = math.tanh %153 : vector<8x128xf32>
    %155 = arith.mulf %148, %154 : vector<8x128xf32>
    %c0_79 = arith.constant 0 : index
    %c0_80 = arith.constant 0 : index
    %c0_81 = arith.constant 0 : index
    %156 = vector.load %arg10[%c0_79, %c0_80, %c0_81] : memref<2x8x128xf32, #tpu.memory_space<vmem>>, vector<1x8x128xf32>
    %157 = vector.shape_cast %156 : vector<1x8x128xf32> to vector<8x128xf32>
    %158 = vector.shape_cast %153 : vector<8x128xf32> to vector<1x8x128xf32>
    tpu.vector_store %arg10[%c0_79, %c0_80, %c0_81], %158 {strides = array<i32>} : memref<2x8x128xf32, #tpu.memory_space<vmem>>, vector<1x8x128xf32>,
    %c0_82 = arith.constant 0 : index
    %c0_83 = arith.constant 0 : index
    %c0_84 = arith.constant 0 : index
    %159 = vector.load %arg9[%c0_82, %c0_83, %c0_84] : memref<2x8x128xf32, #tpu.memory_space<vmem>>, vector<1x8x128xf32>
    %160 = vector.shape_cast %159 : vector<1x8x128xf32> to vector<8x128xf32>
    %161 = vector.shape_cast %155 : vector<8x128xf32> to vector<1x8x128xf32>
    tpu.vector_store %arg9[%c0_82, %c0_83, %c0_84], %161 {strides = array<i32>} : memref<2x8x128xf32, #tpu.memory_space<vmem>>, vector<1x8x128xf32>,
    %162 = arith.truncf %155 : vector<8x128xf32> to vector<8x128xbf16>
    %cst_85 = arith.constant dense<0.000000e+00> : vector<8x512xf32>
    %163 = tpu.matmul %162, %3, %cst_85 {dimension_numbers = #tpu.dot_dimension_numbers<[1], [0], [0], [1], [0, 0, 1, 1], [], []>} : vector<8x128xbf16>, vector<128x512xbf16>, vector<8x512xf32> -> vector<8x512xf32>
    %c1_86 = arith.constant 1 : index
    %c0_87 = arith.constant 0 : index
    %c0_88 = arith.constant 0 : index
    %164 = vector.load %arg9[%c1_86, %c0_87, %c0_88] : memref<2x8x128xf32, #tpu.memory_space<vmem>>, vector<1x8x128xf32>
    %165 = vector.shape_cast %164 : vector<1x8x128xf32> to vector<8x128xf32>
    %166 = arith.truncf %165 : vector<8x128xf32> to vector<8x128xbf16>
    %cst_89 = arith.constant dense<0.000000e+00> : vector<8x512xf32>
    %167 = tpu.matmul %166, %5, %cst_89 {dimension_numbers = #tpu.dot_dimension_numbers<[1], [0], [0], [1], [0, 0, 1, 1], [], []>} : vector<8x128xbf16>, vector<128x512xbf16>, vector<8x512xf32> -> vector<8x512xf32>
    %168 = arith.addf %163, %167 : vector<8x512xf32>
    %169 = vector.broadcast %7 : vector<1x512xf32> to vector<8x512xf32>
    %170 = arith.addf %168, %169 : vector<8x512xf32>
    %171 = vector.extract_strided_slice %170 {offsets = [0, 0], sizes = [8, 128], strides = [1, 1]} : vector<8x512xf32> to vector<8x128xf32>
    %172 = arith.negf %171 : vector<8x128xf32>
    %173 = math.exp %172 : vector<8x128xf32>
    %cst_90 = arith.constant 1.000000e+00 : f32
    %174 = vector.broadcast %cst_90 : f32 to vector<8x128xf32>
    %175 = arith.addf %174, %173 : vector<8x128xf32>
    %176 = arith.divf %174, %175 : vector<8x128xf32>
    %177 = vector.extract_strided_slice %170 {offsets = [0, 128], sizes = [8, 128], strides = [1, 1]} : vector<8x512xf32> to vector<8x128xf32>
    %178 = arith.negf %177 : vector<8x128xf32>
    %179 = math.exp %178 : vector<8x128xf32>
    %cst_91 = arith.constant 1.000000e+00 : f32
    %180 = vector.broadcast %cst_91 : f32 to vector<8x128xf32>
    %181 = arith.addf %180, %179 : vector<8x128xf32>
    %182 = arith.divf %180, %181 : vector<8x128xf32>
    %183 = vector.extract_strided_slice %170 {offsets = [0, 256], sizes = [8, 128], strides = [1, 1]} : vector<8x512xf32> to vector<8x128xf32>
    %184 = math.tanh %183 : vector<8x128xf32>
    %185 = vector.extract_strided_slice %170 {offsets = [0, 384], sizes = [8, 128], strides = [1, 1]} : vector<8x512xf32> to vector<8x128xf32>
    %186 = arith.negf %185 : vector<8x128xf32>
    %187 = math.exp %186 : vector<8x128xf32>
    %cst_92 = arith.constant 1.000000e+00 : f32
    %188 = vector.broadcast %cst_92 : f32 to vector<8x128xf32>
    %189 = arith.addf %188, %187 : vector<8x128xf32>
    %190 = arith.divf %188, %189 : vector<8x128xf32>
    %c1_93 = arith.constant 1 : index
    %c0_94 = arith.constant 0 : index
    %c0_95 = arith.constant 0 : index
    %191 = vector.load %arg10[%c1_93, %c0_94, %c0_95] : memref<2x8x128xf32, #tpu.memory_space<vmem>>, vector<1x8x128xf32>
    %192 = vector.shape_cast %191 : vector<1x8x128xf32> to vector<8x128xf32>
    %193 = arith.mulf %182, %192 : vector<8x128xf32>
    %194 = arith.mulf %176, %184 : vector<8x128xf32>
    %195 = arith.addf %193, %194 : vector<8x128xf32>
    %196 = math.tanh %195 : vector<8x128xf32>
    %197 = arith.mulf %190, %196 : vector<8x128xf32>
    %c1_96 = arith.constant 1 : index
    %c0_97 = arith.constant 0 : index
    %c0_98 = arith.constant 0 : index
    %198 = vector.load %arg10[%c1_96, %c0_97, %c0_98] : memref<2x8x128xf32, #tpu.memory_space<vmem>>, vector<1x8x128xf32>
    %199 = vector.shape_cast %198 : vector<1x8x128xf32> to vector<8x128xf32>
    %200 = vector.shape_cast %195 : vector<8x128xf32> to vector<1x8x128xf32>
    tpu.vector_store %arg10[%c1_96, %c0_97, %c0_98], %200 {strides = array<i32>} : memref<2x8x128xf32, #tpu.memory_space<vmem>>, vector<1x8x128xf32>,
    %c1_99 = arith.constant 1 : index
    %c0_100 = arith.constant 0 : index
    %c0_101 = arith.constant 0 : index
    %201 = vector.load %arg9[%c1_99, %c0_100, %c0_101] : memref<2x8x128xf32, #tpu.memory_space<vmem>>, vector<1x8x128xf32>
    %202 = vector.shape_cast %201 : vector<1x8x128xf32> to vector<8x128xf32>
    %203 = vector.shape_cast %197 : vector<8x128xf32> to vector<1x8x128xf32>
    tpu.vector_store %arg9[%c1_99, %c0_100, %c0_101], %203 {strides = array<i32>} : memref<2x8x128xf32, #tpu.memory_space<vmem>>, vector<1x8x128xf32>,
    %204 = vector.shape_cast %197 : vector<8x128xf32> to vector<8x1x128xf32>
    %205 = vector.broadcast %204 : vector<8x1x128xf32> to vector<8x8x128xf32>
    %206 = arith.mulf %1, %205 : vector<8x8x128xf32>
    %cst_102 = arith.constant dense<0.000000e+00> : vector<8x8xf32>
    %207 = vector.multi_reduction <add>, %206, %cst_102 [2] : vector<8x8x128xf32> to vector<8x8xf32>
    %cst_103 = arith.constant dense<0xFF800000> : vector<8xf32>
    %208 = vector.multi_reduction <maximumf>, %207, %cst_103 [1] : vector<8x8xf32> to vector<8xf32>
    %209 = vector.shape_cast %208 : vector<8xf32> to vector<8x1xf32>
    %210 = vector.broadcast %209 : vector<8x1xf32> to vector<8x8xf32>
    %211 = arith.subf %207, %210 : vector<8x8xf32>
    %212 = math.exp %211 : vector<8x8xf32>
    %cst_104 = arith.constant dense<0.000000e+00> : vector<8xf32>
    %213 = vector.multi_reduction <add>, %212, %cst_104 [1] : vector<8x8xf32> to vector<8xf32>
    %214 = vector.shape_cast %213 : vector<8xf32> to vector<8x1xf32>
    %215 = tpu.reciprocal %214 {approx = true} : vector<8x1xf32> -> vector<8x1xf32>
    %216 = vector.broadcast %215 : vector<8x1xf32> to vector<8x8xf32>
    %217 = arith.mulf %212, %216 : vector<8x8xf32>
    %218 = vector.shape_cast %217 : vector<8x8xf32> to vector<8x8x1xf32>
    %219 = vector.broadcast %218 : vector<8x8x1xf32> to vector<8x8x128xf32>
    %220 = arith.mulf %219, %1 : vector<8x8x128xf32>
    %cst_105 = arith.constant dense<0.000000e+00> : vector<8x128xf32>
    %221 = vector.multi_reduction <add>, %220, %cst_105 [1] : vector<8x8x128xf32> to vector<8x128xf32>
    %c0_106 = arith.constant 0 : index
    %c0_107 = arith.constant 0 : index
    %222 = vector.load %arg8[%c0_106, %c0_107] : memref<8x256xf32, #tpu.memory_space<vmem>>, vector<8x128xf32>
    tpu.vector_store %arg8[%c0_106, %c0_107], %197 {strides = array<i32>} : memref<8x256xf32, #tpu.memory_space<vmem>>, vector<8x128xf32>,
    %c0_108 = arith.constant 0 : index
    %c128_109 = arith.constant 128 : index
    %223 = vector.load %arg8[%c0_108, %c128_109] : memref<8x256xf32, #tpu.memory_space<vmem>>, vector<8x128xf32>
    tpu.vector_store %arg8[%c0_108, %c128_109], %221 {strides = array<i32>} : memref<8x256xf32, #tpu.memory_space<vmem>>, vector<8x128xf32>,
    %c2_i32 = arith.constant 2 : i32
    %c0_110 = arith.constant 0 : index
    %c0_111 = arith.constant 0 : index
    %224 = vector.load %arg8[%c0_110, %c0_111] : memref<8x256xf32, #tpu.memory_space<vmem>>, vector<8x256xf32>
    %225 = arith.truncf %224 : vector<8x256xf32> to vector<8x256xbf16>
    %cst_112 = arith.constant dense<0.000000e+00> : vector<8x512xf32>
    %226 = tpu.matmul %225, %2, %cst_112 {dimension_numbers = #tpu.dot_dimension_numbers<[1], [0], [0], [1], [0, 0, 1, 1], [], []>} : vector<8x256xbf16>, vector<256x512xbf16>, vector<8x512xf32> -> vector<8x512xf32>
    %c0_113 = arith.constant 0 : index
    %c0_114 = arith.constant 0 : index
    %c0_115 = arith.constant 0 : index
    %227 = vector.load %arg9[%c0_113, %c0_114, %c0_115] : memref<2x8x128xf32, #tpu.memory_space<vmem>>, vector<1x8x128xf32>
    %228 = vector.shape_cast %227 : vector<1x8x128xf32> to vector<8x128xf32>
    %229 = arith.truncf %228 : vector<8x128xf32> to vector<8x128xbf16>
    %cst_116 = arith.constant dense<0.000000e+00> : vector<8x512xf32>
    %230 = tpu.matmul %229, %4, %cst_116 {dimension_numbers = #tpu.dot_dimension_numbers<[1], [0], [0], [1], [0, 0, 1, 1], [], []>} : vector<8x128xbf16>, vector<128x512xbf16>, vector<8x512xf32> -> vector<8x512xf32>
    %231 = arith.addf %226, %230 : vector<8x512xf32>
    %232 = vector.broadcast %6 : vector<1x512xf32> to vector<8x512xf32>
    %233 = arith.addf %231, %232 : vector<8x512xf32>
    %234 = vector.extract_strided_slice %233 {offsets = [0, 0], sizes = [8, 128], strides = [1, 1]} : vector<8x512xf32> to vector<8x128xf32>
    %235 = arith.negf %234 : vector<8x128xf32>
    %236 = math.exp %235 : vector<8x128xf32>
    %cst_117 = arith.constant 1.000000e+00 : f32
    %237 = vector.broadcast %cst_117 : f32 to vector<8x128xf32>
    %238 = arith.addf %237, %236 : vector<8x128xf32>
    %239 = arith.divf %237, %238 : vector<8x128xf32>
    %240 = vector.extract_strided_slice %233 {offsets = [0, 128], sizes = [8, 128], strides = [1, 1]} : vector<8x512xf32> to vector<8x128xf32>
    %241 = arith.negf %240 : vector<8x128xf32>
    %242 = math.exp %241 : vector<8x128xf32>
    %cst_118 = arith.constant 1.000000e+00 : f32
    %243 = vector.broadcast %cst_118 : f32 to vector<8x128xf32>
    %244 = arith.addf %243, %242 : vector<8x128xf32>
    %245 = arith.divf %243, %244 : vector<8x128xf32>
    %246 = vector.extract_strided_slice %233 {offsets = [0, 256], sizes = [8, 128], strides = [1, 1]} : vector<8x512xf32> to vector<8x128xf32>
    %247 = math.tanh %246 : vector<8x128xf32>
    %248 = vector.extract_strided_slice %233 {offsets = [0, 384], sizes = [8, 128], strides = [1, 1]} : vector<8x512xf32> to vector<8x128xf32>
    %249 = arith.negf %248 : vector<8x128xf32>
    %250 = math.exp %249 : vector<8x128xf32>
    %cst_119 = arith.constant 1.000000e+00 : f32
    %251 = vector.broadcast %cst_119 : f32 to vector<8x128xf32>
    %252 = arith.addf %251, %250 : vector<8x128xf32>
    %253 = arith.divf %251, %252 : vector<8x128xf32>
    %c0_120 = arith.constant 0 : index
    %c0_121 = arith.constant 0 : index
    %c0_122 = arith.constant 0 : index
    %254 = vector.load %arg10[%c0_120, %c0_121, %c0_122] : memref<2x8x128xf32, #tpu.memory_space<vmem>>, vector<1x8x128xf32>
    %255 = vector.shape_cast %254 : vector<1x8x128xf32> to vector<8x128xf32>
    %256 = arith.mulf %245, %255 : vector<8x128xf32>
    %257 = arith.mulf %239, %247 : vector<8x128xf32>
    %258 = arith.addf %256, %257 : vector<8x128xf32>
    %259 = math.tanh %258 : vector<8x128xf32>
    %260 = arith.mulf %253, %259 : vector<8x128xf32>
    %c0_123 = arith.constant 0 : index
    %c0_124 = arith.constant 0 : index
    %c0_125 = arith.constant 0 : index
    %261 = vector.load %arg10[%c0_123, %c0_124, %c0_125] : memref<2x8x128xf32, #tpu.memory_space<vmem>>, vector<1x8x128xf32>
    %262 = vector.shape_cast %261 : vector<1x8x128xf32> to vector<8x128xf32>
    %263 = vector.shape_cast %258 : vector<8x128xf32> to vector<1x8x128xf32>
    tpu.vector_store %arg10[%c0_123, %c0_124, %c0_125], %263 {strides = array<i32>} : memref<2x8x128xf32, #tpu.memory_space<vmem>>, vector<1x8x128xf32>,
    %c0_126 = arith.constant 0 : index
    %c0_127 = arith.constant 0 : index
    %c0_128 = arith.constant 0 : index
    %264 = vector.load %arg9[%c0_126, %c0_127, %c0_128] : memref<2x8x128xf32, #tpu.memory_space<vmem>>, vector<1x8x128xf32>
    %265 = vector.shape_cast %264 : vector<1x8x128xf32> to vector<8x128xf32>
    %266 = vector.shape_cast %260 : vector<8x128xf32> to vector<1x8x128xf32>
    tpu.vector_store %arg9[%c0_126, %c0_127, %c0_128], %266 {strides = array<i32>} : memref<2x8x128xf32, #tpu.memory_space<vmem>>, vector<1x8x128xf32>,
    %267 = arith.truncf %260 : vector<8x128xf32> to vector<8x128xbf16>
    %cst_129 = arith.constant dense<0.000000e+00> : vector<8x512xf32>
    %268 = tpu.matmul %267, %3, %cst_129 {dimension_numbers = #tpu.dot_dimension_numbers<[1], [0], [0], [1], [0, 0, 1, 1], [], []>} : vector<8x128xbf16>, vector<128x512xbf16>, vector<8x512xf32> -> vector<8x512xf32>
    %c1_130 = arith.constant 1 : index
    %c0_131 = arith.constant 0 : index
    %c0_132 = arith.constant 0 : index
    %269 = vector.load %arg9[%c1_130, %c0_131, %c0_132] : memref<2x8x128xf32, #tpu.memory_space<vmem>>, vector<1x8x128xf32>
    %270 = vector.shape_cast %269 : vector<1x8x128xf32> to vector<8x128xf32>
    %271 = arith.truncf %270 : vector<8x128xf32> to vector<8x128xbf16>
    %cst_133 = arith.constant dense<0.000000e+00> : vector<8x512xf32>
    %272 = tpu.matmul %271, %5, %cst_133 {dimension_numbers = #tpu.dot_dimension_numbers<[1], [0], [0], [1], [0, 0, 1, 1], [], []>} : vector<8x128xbf16>, vector<128x512xbf16>, vector<8x512xf32> -> vector<8x512xf32>
    %273 = arith.addf %268, %272 : vector<8x512xf32>
    %274 = vector.broadcast %7 : vector<1x512xf32> to vector<8x512xf32>
    %275 = arith.addf %273, %274 : vector<8x512xf32>
    %276 = vector.extract_strided_slice %275 {offsets = [0, 0], sizes = [8, 128], strides = [1, 1]} : vector<8x512xf32> to vector<8x128xf32>
    %277 = arith.negf %276 : vector<8x128xf32>
    %278 = math.exp %277 : vector<8x128xf32>
    %cst_134 = arith.constant 1.000000e+00 : f32
    %279 = vector.broadcast %cst_134 : f32 to vector<8x128xf32>
    %280 = arith.addf %279, %278 : vector<8x128xf32>
    %281 = arith.divf %279, %280 : vector<8x128xf32>
    %282 = vector.extract_strided_slice %275 {offsets = [0, 128], sizes = [8, 128], strides = [1, 1]} : vector<8x512xf32> to vector<8x128xf32>
    %283 = arith.negf %282 : vector<8x128xf32>
    %284 = math.exp %283 : vector<8x128xf32>
    %cst_135 = arith.constant 1.000000e+00 : f32
    %285 = vector.broadcast %cst_135 : f32 to vector<8x128xf32>
    %286 = arith.addf %285, %284 : vector<8x128xf32>
    %287 = arith.divf %285, %286 : vector<8x128xf32>
    %288 = vector.extract_strided_slice %275 {offsets = [0, 256], sizes = [8, 128], strides = [1, 1]} : vector<8x512xf32> to vector<8x128xf32>
    %289 = math.tanh %288 : vector<8x128xf32>
    %290 = vector.extract_strided_slice %275 {offsets = [0, 384], sizes = [8, 128], strides = [1, 1]} : vector<8x512xf32> to vector<8x128xf32>
    %291 = arith.negf %290 : vector<8x128xf32>
    %292 = math.exp %291 : vector<8x128xf32>
    %cst_136 = arith.constant 1.000000e+00 : f32
    %293 = vector.broadcast %cst_136 : f32 to vector<8x128xf32>
    %294 = arith.addf %293, %292 : vector<8x128xf32>
    %295 = arith.divf %293, %294 : vector<8x128xf32>
    %c1_137 = arith.constant 1 : index
    %c0_138 = arith.constant 0 : index
    %c0_139 = arith.constant 0 : index
    %296 = vector.load %arg10[%c1_137, %c0_138, %c0_139] : memref<2x8x128xf32, #tpu.memory_space<vmem>>, vector<1x8x128xf32>
    %297 = vector.shape_cast %296 : vector<1x8x128xf32> to vector<8x128xf32>
    %298 = arith.mulf %287, %297 : vector<8x128xf32>
    %299 = arith.mulf %281, %289 : vector<8x128xf32>
    %300 = arith.addf %298, %299 : vector<8x128xf32>
    %301 = math.tanh %300 : vector<8x128xf32>
    %302 = arith.mulf %295, %301 : vector<8x128xf32>
    %c1_140 = arith.constant 1 : index
    %c0_141 = arith.constant 0 : index
    %c0_142 = arith.constant 0 : index
    %303 = vector.load %arg10[%c1_140, %c0_141, %c0_142] : memref<2x8x128xf32, #tpu.memory_space<vmem>>, vector<1x8x128xf32>
    %304 = vector.shape_cast %303 : vector<1x8x128xf32> to vector<8x128xf32>
    %305 = vector.shape_cast %300 : vector<8x128xf32> to vector<1x8x128xf32>
    tpu.vector_store %arg10[%c1_140, %c0_141, %c0_142], %305 {strides = array<i32>} : memref<2x8x128xf32, #tpu.memory_space<vmem>>, vector<1x8x128xf32>,
    %c1_143 = arith.constant 1 : index
    %c0_144 = arith.constant 0 : index
    %c0_145 = arith.constant 0 : index
    %306 = vector.load %arg9[%c1_143, %c0_144, %c0_145] : memref<2x8x128xf32, #tpu.memory_space<vmem>>, vector<1x8x128xf32>
    %307 = vector.shape_cast %306 : vector<1x8x128xf32> to vector<8x128xf32>
    %308 = vector.shape_cast %302 : vector<8x128xf32> to vector<1x8x128xf32>
    tpu.vector_store %arg9[%c1_143, %c0_144, %c0_145], %308 {strides = array<i32>} : memref<2x8x128xf32, #tpu.memory_space<vmem>>, vector<1x8x128xf32>,
    %309 = vector.shape_cast %302 : vector<8x128xf32> to vector<8x1x128xf32>
    %310 = vector.broadcast %309 : vector<8x1x128xf32> to vector<8x8x128xf32>
    %311 = arith.mulf %1, %310 : vector<8x8x128xf32>
    %cst_146 = arith.constant dense<0.000000e+00> : vector<8x8xf32>
    %312 = vector.multi_reduction <add>, %311, %cst_146 [2] : vector<8x8x128xf32> to vector<8x8xf32>
    %cst_147 = arith.constant dense<0xFF800000> : vector<8xf32>
    %313 = vector.multi_reduction <maximumf>, %312, %cst_147 [1] : vector<8x8xf32> to vector<8xf32>
    %314 = vector.shape_cast %313 : vector<8xf32> to vector<8x1xf32>
    %315 = vector.broadcast %314 : vector<8x1xf32> to vector<8x8xf32>
    %316 = arith.subf %312, %315 : vector<8x8xf32>
    %317 = math.exp %316 : vector<8x8xf32>
    %cst_148 = arith.constant dense<0.000000e+00> : vector<8xf32>
    %318 = vector.multi_reduction <add>, %317, %cst_148 [1] : vector<8x8xf32> to vector<8xf32>
    %319 = vector.shape_cast %318 : vector<8xf32> to vector<8x1xf32>
    %320 = tpu.reciprocal %319 {approx = true} : vector<8x1xf32> -> vector<8x1xf32>
    %321 = vector.broadcast %320 : vector<8x1xf32> to vector<8x8xf32>
    %322 = arith.mulf %317, %321 : vector<8x8xf32>
    %323 = vector.shape_cast %322 : vector<8x8xf32> to vector<8x8x1xf32>
    %324 = vector.broadcast %323 : vector<8x8x1xf32> to vector<8x8x128xf32>
    %325 = arith.mulf %324, %1 : vector<8x8x128xf32>
    %cst_149 = arith.constant dense<0.000000e+00> : vector<8x128xf32>
    %326 = vector.multi_reduction <add>, %325, %cst_149 [1] : vector<8x8x128xf32> to vector<8x128xf32>
    %c0_150 = arith.constant 0 : index
    %c0_151 = arith.constant 0 : index
    %327 = vector.load %arg8[%c0_150, %c0_151] : memref<8x256xf32, #tpu.memory_space<vmem>>, vector<8x128xf32>
    tpu.vector_store %arg8[%c0_150, %c0_151], %302 {strides = array<i32>} : memref<8x256xf32, #tpu.memory_space<vmem>>, vector<8x128xf32>,
    %c0_152 = arith.constant 0 : index
    %c128_153 = arith.constant 128 : index
    %328 = vector.load %arg8[%c0_152, %c128_153] : memref<8x256xf32, #tpu.memory_space<vmem>>, vector<8x128xf32>
    tpu.vector_store %arg8[%c0_152, %c128_153], %326 {strides = array<i32>} : memref<8x256xf32, #tpu.memory_space<vmem>>, vector<8x128xf32>,
    return
  }
  func.func @transform_0(%arg0: i32) -> (i32, i32, i32) {
    %c0_i32 = arith.constant 0 : i32
    %c0_i32_0 = arith.constant 0 : i32
    %c0_i32_1 = arith.constant 0 : i32
    return %arg0, %c0_i32, %c0_i32_0 : i32, i32, i32
  }
  func.func @transform_1(%arg0: i32) -> (i32, i32) {
    %c0_i32 = arith.constant 0 : i32
    %c0_i32_0 = arith.constant 0 : i32
    %c0_i32_1 = arith.constant 0 : i32
    return %c0_i32, %c0_i32_0 : i32, i32
  }
  func.func @transform_2(%arg0: i32) -> (i32, i32) {
    %c0_i32 = arith.constant 0 : i32
    %c0_i32_0 = arith.constant 0 : i32
    %c0_i32_1 = arith.constant 0 : i32
    return %c0_i32, %c0_i32_0 : i32, i32
  }
  func.func @transform_3(%arg0: i32) -> (i32, i32) {
    %c0_i32 = arith.constant 0 : i32
    %c0_i32_0 = arith.constant 0 : i32
    %c0_i32_1 = arith.constant 0 : i32
    return %c0_i32, %c0_i32_0 : i32, i32
  }
  func.func @transform_4(%arg0: i32) -> (i32, i32) {
    %c0_i32 = arith.constant 0 : i32
    %c0_i32_0 = arith.constant 0 : i32
    %c0_i32_1 = arith.constant 0 : i32
    return %c0_i32, %c0_i32_0 : i32, i32
  }
  func.func @transform_5(%arg0: i32) -> (i32, i32) {
    %c0_i32 = arith.constant 0 : i32
    %c0_i32_0 = arith.constant 0 : i32
    %c0_i32_1 = arith.constant 0 : i32
    return %c0_i32, %c0_i32_0 : i32, i32
  }
  func.func @transform_6(%arg0: i32) -> (i32, i32) {
    %c0_i32 = arith.constant 0 : i32
    %c0_i32_0 = arith.constant 0 : i32
    %c0_i32_1 = arith.constant 0 : i32
    return %c0_i32, %c0_i32_0 : i32, i32
  }
  func.func @transform_7(%arg0: i32) -> (i32, i32) {
    %c0_i32 = arith.constant 0 : i32
    %c0_i32_0 = arith.constant 0 : i32
    return %arg0, %c0_i32 : i32, i32
  }
}

</mosaic_0001>

<bundles_post_ra>
// kernel: set2set_forward.1
= control target key start
LH: loop header
LB: loop body
LE: loop exit
PB: predicated region body
PF: predicated region fallthrough
CT: control target
= control target key end

     0   :  { %12 = vsyncpa [#allocation5], 0  ;;  %s5640_s0 = inlined_call_operand.hbm [shape: bf16[8,8,128], index: 0, kind: input, shape index: {}]   ;;  %s5641_s1 = inlined_call_operand.hbm [shape: bf16[256,512], index: 1, kind: input, shape index: {}]   ;;  %s5642_s2 = inlined_call_operand.hbm [shape: bf16[128,512], index: 2, kind: input, shape index: {}]   ;;  %s5643_s3 = inlined_call_operand.hbm [shape: f32[1,512], index: 3, kind: input, shape index: {}]   ;;  %s5644_s4 = inlined_call_operand.hbm [shape: bf16[128,512], index: 4, kind: input, shape index: {}]   ;;  %s5645_s5 = inlined_call_operand.hbm [shape: bf16[128,512], index: 5, kind: input, shape index: {}]   ;;  %s5646_s6 = inlined_call_operand.vmem [shape: f32[1,512], index: 6, kind: input, shape index: {}]   ;;  %s5647_s7 = inlined_call_operand.hbm [shape: f32[8,256], index: 7, kind: output, shape index: {}]  }
   0x1   :  { %13 = vsyncpa [#allocation8], 0 }
   0x2   :  { %14 = vsyncpa [#allocation11], 0 }
   0x3   :  { %15 = vsyncpa [#allocation14], 0 }
   0x4   :  { %16 = vsyncpa [#allocation6], 0  ;;  %s4765_s24 = smov [#allocation7]  }
   0x5   :  { %s34_s25 = sshll.u32 %s4765_s24, 4  ;;  %s35_s25 = int_to_ptr.vmem [resolvable:$true] %s34_s25 }
   0x6   :  { %s4623_s26 = scalar_lea.vmem %s35_s25, 8192  ;;  %p4628_p1 = scmp.lt.s32.totalorder %s35_s25, %s35_s25 }
   0x7   :  { %p4624_p0 = scmp.ne.s32.totalorder %s35_s25, %s4623_s26  ;;  %p4629_p2 = scmp.lt.s32.totalorder %s4623_s26, %s4623_s26 }
   0x9   :  { %p4630_p3 = por %p4629_p2, %p4628_p1 }
   0xb   :  { %p4631_p4 = pnand %p4630_p3, %p4624_p0 }
   0xd   :  { %4634 = shalt.err (!%p4631_p4)
}
   0xe   :  { %s4766_s27 = smov 256   ;;  %s4767_s28 = smov 16  }
   0xf   :  { %40 = dma.hbm_to_vmem [thread:$0]  %s5641_s1, 8192, %s35_s25, [#allocation8], %s4766_s27, %s4766_s27, %s4767_s28  }
  0x10   :  { %s4768_s8 = smov [#allocation10]   ;;  %s4769_s10 = smov [#allocation4]  }
  0x11   :  { %s59_s9 = sshll.u32 %s4768_s8, 4  ;;  %s22_s11 = sshll.u32 %s4769_s10, 4  ;;  %s60_s9 = int_to_ptr.vmem [resolvable:$true] %s59_s9  ;;  %s23_s11 = int_to_ptr.vmem [resolvable:$true] %s22_s11 }
  0x12   :  { %s4643_s12 = scalar_lea.vmem %s60_s9, 64  ;;  %p4648_p6 = scmp.lt.s32.totalorder %s60_s9, %s60_s9 }
  0x13   :  { %p4644_p5 = scmp.ne.s32.totalorder %s60_s9, %s4643_s12  ;;  %p4649_p7 = scmp.lt.s32.totalorder %s4643_s12, %s4643_s12 }
  0x15   :  { %p4650_p8 = por %p4649_p7, %p4648_p6 }
  0x17   :  { %p4651_p9 = pnand %p4650_p8, %p4644_p5 }
  0x19   :  { %4654 = shalt.err (!%p4651_p9)
}
  0x1a   :  { %62 = dma.hbm_to_vmem [thread:$0]  %s5643_s3, 64, %s60_s9, [#allocation11]  }
  0x1b   :  { %s4663_s15 = scalar_lea.vmem %s23_s11, 512  ;;  %p4668_p11 = scmp.lt.s32.totalorder %s23_s11, %s23_s11 }
  0x1c   :  { %p4664_p10 = scmp.ne.s32.totalorder %s23_s11, %s4663_s15  ;;  %p4669_p12 = scmp.lt.s32.totalorder %s4663_s15, %s4663_s15 }
  0x1e   :  { %p4670_p13 = por %p4669_p12, %p4668_p11 }
  0x20   :  { %p4671_p0 = pnand %p4670_p13, %p4664_p10 }
  0x22   :  { %4674 = shalt.err (!%p4671_p0)
}
  0x23   :  { %s4770_s1 = smov 64   ;;  %s4771_s16 = smov 4  }
  0x24   :  { %28 = dma.hbm_to_vmem [thread:$0]  %s5640_s0, 512, %s23_s11, [#allocation5], %s4770_s1, %s4770_s1, %s4771_s16  }
  0x25   :  { %s4772_s19 = smov [#allocation9]   ;;  %s4773_s21 = smov [#allocation12]  }
  0x26   :  { %s46_s20 = sshll.u32 %s4772_s19, 4  ;;  %s68_s22 = sshll.u32 %s4773_s21, 4  ;;  %s47_s20 = int_to_ptr.vmem [resolvable:$true] %s46_s20  ;;  %s69_s22 = int_to_ptr.vmem [resolvable:$true] %s68_s22 }
  0x27   :  { %s4683_s3 = scalar_lea.vmem %s47_s20, 4096  ;;  %p4688_p2 = scmp.lt.s32.totalorder %s47_s20, %s47_s20 }
  0x28   :  { %p4684_p1 = scmp.ne.s32.totalorder %s47_s20, %s4683_s3  ;;  %p4689_p3 = scmp.lt.s32.totalorder %s4683_s3, %s4683_s3 }
  0x2a   :  { %p4690_p4 = por %p4689_p3, %p4688_p2 }
  0x2c   :  { %p4691_p5 = pnand %p4690_p4, %p4684_p1 }
  0x2e   :  { %4694 = shalt.err (!%p4691_p5)
}
  0x2f   :  { %52 = dma.hbm_to_vmem [thread:$0]  %s5642_s2, 4096, %s47_s20, [#allocation8], %s4766_s27, %s4766_s27, %s4767_s28  }
  0x30   :  { %s4703_s0 = scalar_lea.vmem %s69_s22, 4096  ;;  %p4708_p7 = scmp.lt.s32.totalorder %s69_s22, %s69_s22 }
  0x31   :  { %p4704_p6 = scmp.ne.s32.totalorder %s69_s22, %s4703_s0  ;;  %p4709_p8 = scmp.lt.s32.totalorder %s4703_s0, %s4703_s0 }
  0x33   :  { %p4710_p9 = por %p4709_p8, %p4708_p7 }
  0x35   :  { %p4711_p10 = pnand %p4710_p9, %p4704_p6 }
  0x37   :  { %4714 = shalt.err (!%p4711_p10)
}
  0x38   :  { %74 = dma.hbm_to_vmem [thread:$0]  %s5644_s4, 4096, %s69_s22, [#allocation11], %s4766_s27, %s4766_s27, %s4767_s28  }
  0x39   :  { %s4774_s29 = smov [#allocation13]  }
  0x3a   :  { %s80_s30 = sshll.u32 %s4774_s29, 4  ;;  %s81_s30 = int_to_ptr.vmem [resolvable:$true] %s80_s30 }
  0x3b   :  { %s4723_s8 = scalar_lea.vmem %s81_s30, 4096  ;;  %p4728_p12 = scmp.lt.s32.totalorder %s81_s30, %s81_s30 }
  0x3c   :  { %p4724_p11 = scmp.ne.s32.totalorder %s81_s30, %s4723_s8  ;;  %p4729_p13 = scmp.lt.s32.totalorder %s4723_s8, %s4723_s8 }
  0x3e   :  { %p4730_p0 = por %p4729_p13, %p4728_p12 }
  0x40   :  { %p4731_p1 = pnand %p4730_p0, %p4724_p11 }
  0x42   :  { %4734 = shalt.err (!%p4731_p1)
}
  0x43   :  { %86 = dma.hbm_to_vmem [thread:$0]  %s5645_s5, 4096, %s81_s30, [#allocation14], %s4766_s27, %s4766_s27, %s4767_s28  }
  0x44   :  { %4755 = dma.done.wait [#allocation5], 512  }
  0x45   :  { %4756 = vsyncadd [#allocation5], 4294966784 }
  0x46   :  { %4757 = dma.done.wait [#allocation8], 12288  }
  0x47   :  { %4758 = vsyncadd [#allocation8], 4294955008 }
  0x48   :  { %4759 = dma.done.wait [#allocation11], 4160  }
  0x49   :  { %4760 = vsyncadd [#allocation11], 4294963136 }
  0x4a   :  { %4761 = dma.done.wait [#allocation14], 4096  }
  0x4b   :  { %4762 = vsyncadd [#allocation14], 4294963200  ;;  %v5648_v0 = vmov 0   ;;  %v4853_v1 = vld [vmem:[#allocation9 + $0xe4] ss:$16 sps:$4 sm:$0xff]   ;;  %v5650_v39 = vmov 0.0|0.0  }
  0x4c   :  { %490 = vmatprep.mubr.bf16.mxu0 %v5648_v0  ;;  %531 = vmatprep.mubr.bf16.mxu1 %v5648_v0  ;;  %v4855_v2 = vld [vmem:[#allocation9 + $0xec] ss:$16 sps:$4 sm:$0xff]   ;;  %v3986_v3 = vld [vmem:[#allocation9 + $0xe0] ss:$16 sps:$4 sm:$0xff]   ;;  %v3987_v4 = vld [vmem:[#allocation9 + $0xe8] ss:$16 sps:$4 sm:$0xff]  }
  0x4d   :  { %3981 = vset.pattern.permute.xlu0 %v5648_v0  ;;  %3980 = vset.pattern.permute.xlu1 %v5648_v0  ;;  %v3988_v5 = vld [vmem:[#allocation9 + $0xc4] ss:$16 sps:$4 sm:$0xff]   ;;  %v3990_v6 = vld [vmem:[#allocation9 + $0xcc] ss:$16 sps:$4 sm:$0xff]   ;;  %v3992_v7 = vld [vmem:[#allocation9 + $0xc0] ss:$16 sps:$4 sm:$0xff]  }
  0x4e   :  { %458 = vmatprep.subr.bf16.mxu0 %v4853_v1  ;;  %499 = vmatprep.subr.bf16.mxu1 %v4855_v2  ;;  %v3993_v8 = vld [vmem:[#allocation9 + $0xc8] ss:$16 sps:$4 sm:$0xff]   ;;  %v3994_v9 = vld [vmem:[#allocation9 + $0xa4] ss:$16 sps:$4 sm:$0xff]   ;;  %v3996_v10 = vld [vmem:[#allocation9 + $0xac] ss:$16 sps:$4 sm:$0xff]  }
  0x4f   :  { %459 = vmatpush1.bf16.msra.mxu0 %v3986_v3  ;;  %500 = vmatpush1.bf16.msra.mxu1 %v3987_v4  ;;  %v3998_v11 = vld [vmem:[#allocation9 + $0xa0] ss:$16 sps:$4 sm:$0xff]   ;;  %v3999_v12 = vld [vmem:[#allocation9 + $0xa8] ss:$16 sps:$4 sm:$0xff]   ;;  %v4000_v13 = vld [vmem:[#allocation9 + $0x84] ss:$16 sps:$4 sm:$0xff]  }
  0x50   :  { %460 = vmatprep.subr.bf16.mxu0 %v3988_v5  ;;  %501 = vmatprep.subr.bf16.mxu1 %v3990_v6  ;;  %v4002_v14 = vld [vmem:[#allocation9 + $0x8c] ss:$16 sps:$4 sm:$0xff]   ;;  %v4004_v15 = vld [vmem:[#allocation9 + $0x80] ss:$16 sps:$4 sm:$0xff]   ;;  %v4005_v16 = vld [vmem:[#allocation9 + $0x88] ss:$16 sps:$4 sm:$0xff]  }
  0x51   :  { %v4006_v17 = vld [vmem:[#allocation9 + $0x64] ss:$16 sps:$4 sm:$0xff]   ;;  %v4008_v18 = vld [vmem:[#allocation9 + $0x6c] ss:$16 sps:$4 sm:$0xff]   ;;  %v4010_v19 = vld [vmem:[#allocation9 + $0x60] ss:$16 sps:$4 sm:$0xff]  }
  0x52   :  { %v4011_v20 = vld [vmem:[#allocation9 + $0x68] ss:$16 sps:$4 sm:$0xff]   ;;  %v4012_v21 = vld [vmem:[#allocation9 + $0x44] ss:$16 sps:$4 sm:$0xff]   ;;  %v4014_v22 = vld [vmem:[#allocation9 + $0x4c] ss:$16 sps:$4 sm:$0xff]  }
  0x53   :  { %461 = vmatpush1.bf16.msra.mxu0 %v3992_v7  ;;  %502 = vmatpush1.bf16.msra.mxu1 %v3993_v8  ;;  %v4016_v23 = vld [vmem:[#allocation9 + $0x40] ss:$16 sps:$4 sm:$0xff]   ;;  %v4859_v24 = vld [vmem:[#allocation9 + $0x48] ss:$16 sps:$4 sm:$0xff]   ;;  %v4861_v25 = vld [vmem:[#allocation9 + $0x24] ss:$16 sps:$4 sm:$0xff]  }
  0x54   :  { %462 = vmatprep.subr.bf16.mxu0 %v3994_v9  ;;  %503 = vmatprep.subr.bf16.mxu1 %v3996_v10  ;;  %v4863_v26 = vld [vmem:[#allocation9 + $0x2c] ss:$16 sps:$4 sm:$0xff]   ;;  %v4865_v27 = vld [vmem:[#allocation9 + $0x20] ss:$16 sps:$4 sm:$0xff]   ;;  %v4867_v28 = vld [vmem:[#allocation9 + $0x28] ss:$16 sps:$4 sm:$0xff]  }
  0x55   :  { %v4870_v29 = vld [vmem:[#allocation9 + $0x4] ss:$16 sps:$4 sm:$0xff]   ;;  %v4874_v30 = vld [vmem:[#allocation9 + $0xc] ss:$16 sps:$4 sm:$0xff]   ;;  %v4876_v31 = vld [vmem:[#allocation9] ss:$16 sps:$4 sm:$0xff]  }
  0x56   :  { %v4878_v32 = vld [vmem:[#allocation9 + $0x8] ss:$16 sps:$4 sm:$0xff]   ;;  %v4882_v33 = vld [vmem:[#allocation7 + $0xe4] ss:$16 sps:$4 sm:$0xff]   ;;  %v4886_v34 = vld [vmem:[#allocation7 + $0xec] ss:$16 sps:$4 sm:$0xff]  }
  0x57   :  { %463 = vmatpush1.bf16.msra.mxu0 %v3998_v11  ;;  %504 = vmatpush1.bf16.msra.mxu1 %v3999_v12  ;;  %v4888_v35 = vld [vmem:[#allocation7 + $0xe0] ss:$16 sps:$4 sm:$0xff]   ;;  %v4890_v36 = vld [vmem:[#allocation7 + $0xe8] ss:$16 sps:$4 sm:$0xff]   ;;  %v4894_v37 = vld [vmem:[#allocation7 + $0xc4] ss:$16 sps:$4 sm:$0xff]  }
  0x58   :  { %464 = vmatprep.subr.bf16.mxu0 %v4000_v13  ;;  %505 = vmatprep.subr.bf16.mxu1 %v4002_v14  ;;  %v4898_v38 = vld [vmem:[#allocation7 + $0xcc] ss:$16 sps:$4 sm:$0xff]   ;;  %v4902_v40 = vld [vmem:[#allocation7 + $0xc0] ss:$16 sps:$4 sm:$0xff]   ;;  %v4904_v41 = vld [vmem:[#allocation7 + $0xc8] ss:$16 sps:$4 sm:$0xff]  }
  0x59   :  { %v4908_v42 = vld [vmem:[#allocation7 + $0xa4] ss:$16 sps:$4 sm:$0xff]   ;;  %v4912_v43 = vld [vmem:[#allocation7 + $0xac] ss:$16 sps:$4 sm:$0xff]   ;;  %v4916_v44 = vld [vmem:[#allocation7 + $0xa0] ss:$16 sps:$4 sm:$0xff]  }
  0x5a   :  { %v4918_v45 = vld [vmem:[#allocation7 + $0xa8] ss:$16 sps:$4 sm:$0xff]   ;;  %v4922_v46 = vld [vmem:[#allocation7 + $0x84] ss:$16 sps:$4 sm:$0xff]   ;;  %v4926_v47 = vld [vmem:[#allocation7 + $0x8c] ss:$16 sps:$4 sm:$0xff]  }
  0x5b   :  { %465 = vmatpush1.bf16.msra.mxu0 %v4004_v15  ;;  %506 = vmatpush1.bf16.msra.mxu1 %v4005_v16  ;;  %v4928_v48 = vld [vmem:[#allocation7 + $0x80] ss:$16 sps:$4 sm:$0xff]   ;;  %v4930_v49 = vld [vmem:[#allocation7 + $0x88] ss:$16 sps:$4 sm:$0xff]   ;;  %v4934_v50 = vld [vmem:[#allocation7 + $0x64] ss:$16 sps:$4 sm:$0xff]  }
  0x5c   :  { %466 = vmatprep.subr.bf16.mxu0 %v4006_v17  ;;  %507 = vmatprep.subr.bf16.mxu1 %v4008_v18  ;;  %v4938_v51 = vld [vmem:[#allocation7 + $0x6c] ss:$16 sps:$4 sm:$0xff]   ;;  %v4940_v52 = vld [vmem:[#allocation7 + $0x60] ss:$16 sps:$4 sm:$0xff]   ;;  %v4942_v53 = vld [vmem:[#allocation7 + $0x68] ss:$16 sps:$4 sm:$0xff]  }
  0x5d   :  { %v4946_v54 = vld [vmem:[#allocation7 + $0x44] ss:$16 sps:$4 sm:$0xff]   ;;  %v4950_v55 = vld [vmem:[#allocation7 + $0x4c] ss:$16 sps:$4 sm:$0xff]   ;;  %v4952_v56 = vld [vmem:[#allocation7 + $0x40] ss:$16 sps:$4 sm:$0xff]  }
  0x5e   :  { %v4954_v57 = vld [vmem:[#allocation7 + $0x48] ss:$16 sps:$4 sm:$0xff]   ;;  %v4958_v58 = vld [vmem:[#allocation7 + $0x24] ss:$16 sps:$4 sm:$0xff]   ;;  %v4962_v59 = vld [vmem:[#allocation7 + $0x2c] ss:$16 sps:$4 sm:$0xff]  }
  0x5f   :  { %467 = vmatpush1.bf16.msra.mxu0 %v4010_v19  ;;  %508 = vmatpush1.bf16.msra.mxu1 %v4011_v20  ;;  %v4964_v60 = vld [vmem:[#allocation7 + $0x20] ss:$16 sps:$4 sm:$0xff]   ;;  %v4966_v61 = vld [vmem:[#allocation7 + $0x28] ss:$16 sps:$4 sm:$0xff]   ;;  %v4970_v62 = vld [vmem:[#allocation7 + $0x4] ss:$16 sps:$4 sm:$0xff]  }
  0x60   :  { %468 = vmatprep.subr.bf16.mxu0 %v4012_v21  ;;  %509 = vmatprep.subr.bf16.mxu1 %v4014_v22  ;;  %v4974_v63 = vld [vmem:[#allocation7 + $0xc] ss:$16 sps:$4 sm:$0xff]   ;;  %v4976_v3 = vld [vmem:[#allocation7] ss:$16 sps:$4 sm:$0xff]   ;;  %v4978_v4 = vld [vmem:[#allocation7 + $0x8] ss:$16 sps:$4 sm:$0xff]  }
  0x61   :  { %5699 = vst [vmem:[#allocation21_spill] sm:$0xff] %v4978_v4  ;;  %v4982_v5 = vld [vmem:[#allocation7 + $0x1e4] ss:$16 sps:$4 sm:$0xff]   ;;  %v4986_v6 = vld [vmem:[#allocation7 + $0x1ec] ss:$16 sps:$4 sm:$0xff]   ;;  %vm1691_vm0 = vcmask 1041409  }
  0x62   :  { %5700 = vst [vmem:[#allocation22_spill] sm:$0xff] %v4982_v5  ;;  %5701 = vst [vmem:[#allocation23_spill] sm:$0xff] %v4986_v6  ;;  %v4988_v7 = vld [vmem:[#allocation7 + $0x1e0] ss:$16 sps:$4 sm:$0xff]   ;;  %v4990_v8 = vld [vmem:[#allocation7 + $0x1e8] ss:$16 sps:$4 sm:$0xff]  }
  0x63   :  { %469 = vmatpush1.bf16.msra.mxu0 %v4016_v23  ;;  %510 = vmatpush1.bf16.msra.mxu1 %v4859_v24  ;;  %5702 = vst [vmem:[#allocation24_spill] sm:$0xff] %v4988_v7  ;;  %5703 = vst [vmem:[#allocation25_spill] sm:$0xff] %v4990_v8  ;;  %v4992_v9 = vld [vmem:[#allocation7 + $0x1c4] ss:$16 sps:$4 sm:$0xff]   ;;  %v4994_v10 = vld [vmem:[#allocation7 + $0x1cc] ss:$16 sps:$4 sm:$0xff]  }
  0x64   :  { %470 = vmatprep.subr.bf16.mxu0 %v4861_v25  ;;  %511 = vmatprep.subr.bf16.mxu1 %v4863_v26  ;;  %5704 = vst [vmem:[#allocation26_spill] sm:$0xff] %v4992_v9  ;;  %5705 = vst [vmem:[#allocation27_spill] sm:$0xff] %v4994_v10  ;;  %v5000_v11 = vld [vmem:[#allocation7 + $0x1c0] ss:$16 sps:$4 sm:$0xff]   ;;  %v5002_v12 = vld [vmem:[#allocation7 + $0x1c8] ss:$16 sps:$4 sm:$0xff]  }
  0x65   :  { %5706 = vst [vmem:[#allocation28_spill] sm:$0xff] %v5000_v11  ;;  %5707 = vst [vmem:[#allocation29_spill] sm:$0xff] %v5002_v12  ;;  %v5004_v13 = vld [vmem:[#allocation7 + $0x1a4] ss:$16 sps:$4 sm:$0xff]   ;;  %v5006_v14 = vld [vmem:[#allocation7 + $0x1ac] ss:$16 sps:$4 sm:$0xff]  }
  0x66   :  { %5708 = vst [vmem:[#allocation30_spill] sm:$0xff] %v5004_v13  ;;  %5709 = vst [vmem:[#allocation31_spill] sm:$0xff] %v5006_v14  ;;  %v5012_v15 = vld [vmem:[#allocation7 + $0x1a0] ss:$16 sps:$4 sm:$0xff]   ;;  %v5014_v16 = vld [vmem:[#allocation7 + $0x1a8] ss:$16 sps:$4 sm:$0xff]  }
  0x67   :  { %471 = vmatpush1.bf16.msra.mxu0 %v4865_v27  ;;  %512 = vmatpush1.bf16.msra.mxu1 %v4867_v28  ;;  %5710 = vst [vmem:[#allocation32_spill] sm:$0xff] %v5012_v15  ;;  %5711 = vst [vmem:[#allocation33_spill] sm:$0xff] %v5014_v16  ;;  %v5016_v17 = vld [vmem:[#allocation7 + $0x184] ss:$16 sps:$4 sm:$0xff]   ;;  %v5018_v18 = vld [vmem:[#allocation7 + $0x18c] ss:$16 sps:$4 sm:$0xff]  }
  0x68   :  { %472 = vmatprep.subr.bf16.mxu0 %v4870_v29  ;;  %513 = vmatprep.subr.bf16.mxu1 %v4874_v30  ;;  %5712 = vst [vmem:[#allocation34_spill] sm:$0xff] %v5016_v17  ;;  %5713 = vst [vmem:[#allocation35_spill] sm:$0xff] %v5018_v18  ;;  %v5024_v19 = vld [vmem:[#allocation7 + $0x180] ss:$16 sps:$4 sm:$0xff]   ;;  %v5026_v20 = vld [vmem:[#allocation7 + $0x188] ss:$16 sps:$4 sm:$0xff]  }
  0x69   :  { %5714 = vst [vmem:[#allocation36_spill] sm:$0xff] %v5024_v19  ;;  %5715 = vst [vmem:[#allocation37_spill] sm:$0xff] %v5026_v20  ;;  %v5028_v21 = vld [vmem:[#allocation7 + $0x164] ss:$16 sps:$4 sm:$0xff]   ;;  %v5030_v22 = vld [vmem:[#allocation7 + $0x16c] ss:$16 sps:$4 sm:$0xff]  }
  0x6a   :  { %5716 = vst [vmem:[#allocation38_spill] sm:$0xff] %v5028_v21  ;;  %5717 = vst [vmem:[#allocation39_spill] sm:$0xff] %v5030_v22  ;;  %v5036_v23 = vld [vmem:[#allocation7 + $0x160] ss:$16 sps:$4 sm:$0xff]   ;;  %v5038_v0 = vld [vmem:[#allocation7 + $0x168] ss:$16 sps:$4 sm:$0xff]  }
  0x6b   :  { %473 = vmatpush1.bf16.msra.mxu0 %v4876_v31  ;;  %514 = vmatpush1.bf16.msra.mxu1 %v4878_v32  ;;  %5718 = vst [vmem:[#allocation40_spill] sm:$0xff] %v5036_v23  ;;  %5719 = vst [vmem:[#allocation41_spill] sm:$0xff] %v5038_v0  ;;  %vm1693_vm1 = vcmask 1042434   ;;  %vm1695_vm2 = vcmask 1043459   ;;  %vm1697_vm3 = vcmask 1044484   ;;  %vm1699_vm4 = vcmask 1045509  }
  0x6c   :  { %860 = vmatprep.subr.bf16.mxu0 %v4882_v33  ;;  %901 = vmatprep.subr.bf16.mxu1 %v4886_v34  ;;  %vm1701_vm5 = vcmask 1046534   ;;  %vm1703_vm6 = vcmask 1047559   ;;  %vm1706_vm7 = vcmask 64512  }
  0x6e   :  { %491 = vmatmul.mubr.bf16.vlgmr.msra.gmra.mxu0 %v5650_v39  ;;  %532 = vmatmul.mubr.bf16.vlgmr.msra.gmra.mxu1 %v5650_v39 }
  0x6f   :  { %861 = vmatpush1.bf16.msra.mxu0 %v4888_v35  ;;  %902 = vmatpush1.bf16.msra.mxu1 %v4890_v36 }
  0x70   :  { %862 = vmatprep.subr.bf16.mxu0 %v4894_v37  ;;  %903 = vmatprep.subr.bf16.mxu1 %v4898_v38 }
  0x71   :  { %892 = vmatprep.mubr.bf16.mxu0 %v5650_v39  ;;  %933 = vmatprep.mubr.bf16.mxu1 %v5650_v39  ;;  %v5040_v39 = vld [vmem:[#allocation7 + $0x144] ss:$16 sps:$4 sm:$0xff]  }
  0x72   :  { %5720 = vst [vmem:[#allocation42_spill] sm:$0xff] %v5040_v39 }
  0x73   :  { %863 = vmatpush1.bf16.msra.mxu0 %v4902_v40  ;;  %904 = vmatpush1.bf16.msra.mxu1 %v4904_v41 }
  0x74   :  { %864 = vmatprep.subr.bf16.mxu0 %v4908_v42  ;;  %905 = vmatprep.subr.bf16.mxu1 %v4912_v43 }
  0x77   :  { %865 = vmatpush1.bf16.msra.mxu0 %v4916_v44  ;;  %906 = vmatpush1.bf16.msra.mxu1 %v4918_v45 }
  0x78   :  { %866 = vmatprep.subr.bf16.mxu0 %v4922_v46  ;;  %907 = vmatprep.subr.bf16.mxu1 %v4926_v47 }
  0x7b   :  { %867 = vmatpush1.bf16.msra.mxu0 %v4928_v48  ;;  %908 = vmatpush1.bf16.msra.mxu1 %v4930_v49 }
  0x7c   :  { %868 = vmatprep.subr.bf16.mxu0 %v4934_v50  ;;  %909 = vmatprep.subr.bf16.mxu1 %v4938_v51 }
  0x7f   :  { %869 = vmatpush1.bf16.msra.mxu0 %v4940_v52  ;;  %910 = vmatpush1.bf16.msra.mxu1 %v4942_v53 }
  0x80   :  { %870 = vmatprep.subr.bf16.mxu0 %v4946_v54  ;;  %911 = vmatprep.subr.bf16.mxu1 %v4950_v55 }
  0x83   :  { %871 = vmatpush1.bf16.msra.mxu0 %v4952_v56  ;;  %912 = vmatpush1.bf16.msra.mxu1 %v4954_v57 }
  0x84   :  { %872 = vmatprep.subr.bf16.mxu0 %v4958_v58  ;;  %913 = vmatprep.subr.bf16.mxu1 %v4962_v59 }
  0x87   :  { %873 = vmatpush1.bf16.msra.mxu0 %v4964_v60  ;;  %914 = vmatpush1.bf16.msra.mxu1 %v4966_v61 }
  0x88   :  { %874 = vmatprep.subr.bf16.mxu0 %v4970_v62  ;;  %915 = vmatprep.subr.bf16.mxu1 %v4974_v63 }
  0x8b   :  { %875 = vmatpush1.bf16.msra.mxu0 %v4976_v3  ;;  %916 = vmatpush1.bf16.msra.mxu1 %v4978_v4 }
  0x8c   :  { %876 = vmatprep.subr.bf16.mxu0 %v4982_v5  ;;  %917 = vmatprep.subr.bf16.mxu1 %v4986_v6 }
  0x8f   :  { %877 = vmatpush2.bf16.msra.mxu0 %v4988_v7  ;;  %918 = vmatpush2.bf16.msra.mxu1 %v4990_v8 }
  0x90   :  { %878 = vmatprep.subr.bf16.mxu0 %v4992_v9  ;;  %919 = vmatprep.subr.bf16.mxu1 %v4994_v10  ;;  %v4144_v10 = vld [vmem:[#allocation13 + $0xa8] ss:$16 sps:$4 sm:$0xff]  }
  0x93   :  { %879 = vmatpush2.bf16.msra.mxu0 %v5000_v11  ;;  %920 = vmatpush2.bf16.msra.mxu1 %v5002_v12  ;;  %v4146_v12 = vld [vmem:[#allocation13 + $0xac] ss:$16 sps:$4 sm:$0xff]   ;;  %v4141_v11 = vld [vmem:[#allocation13 + $0x80] ss:$16 sps:$4 sm:$0xff]  }
  0x94   :  { %880 = vmatprep.subr.bf16.mxu0 %v5004_v13  ;;  %921 = vmatprep.subr.bf16.mxu1 %v5006_v14  ;;  %v5042_v14 = vld [vmem:[#allocation7 + $0x14c] ss:$16 sps:$4 sm:$0xff]   ;;  %v4143_v13 = vld [vmem:[#allocation13 + $0x84] ss:$16 sps:$4 sm:$0xff]  }
  0x95   :  { %5721 = vst [vmem:[#allocation43_spill] sm:$0xff] %v5042_v14 }
  0x97   :  { %881 = vmatpush2.bf16.msra.mxu0 %v5012_v15  ;;  %922 = vmatpush2.bf16.msra.mxu1 %v5014_v16  ;;  %v5048_v16 = vld [vmem:[#allocation7 + $0x140] ss:$16 sps:$4 sm:$0xff]   ;;  %v4138_v15 = vld [vmem:[#allocation13 + $0xc8] ss:$16 sps:$4 sm:$0xff]  }
  0x98   :  { %882 = vmatprep.subr.bf16.mxu0 %v5016_v17  ;;  %923 = vmatprep.subr.bf16.mxu1 %v5018_v18  ;;  %5722 = vst [vmem:[#allocation44_spill] sm:$0xff] %v5048_v16  ;;  %v5050_v17 = vld [vmem:[#allocation7 + $0x148] ss:$16 sps:$4 sm:$0xff]   ;;  %v5056_v18 = vld [vmem:[#allocation7 + $0x124] ss:$16 sps:$4 sm:$0xff]  }
  0x99   :  { %5723 = vst [vmem:[#allocation45_spill] sm:$0xff] %v5050_v17  ;;  %5724 = vst [vmem:[#allocation46_spill] sm:$0xff] %v5056_v18 }
  0x9b   :  { %883 = vmatpush2.bf16.msra.mxu0 %v5024_v19  ;;  %924 = vmatpush2.bf16.msra.mxu1 %v5026_v20  ;;  %v5058_v19 = vld [vmem:[#allocation7 + $0x12c] ss:$16 sps:$4 sm:$0xff]   ;;  %v4135_v20 = vld [vmem:[#allocation13 + $0xa0] ss:$16 sps:$4 sm:$0xff]  }
  0x9c   :  { %884 = vmatprep.subr.bf16.mxu0 %v5028_v21  ;;  %925 = vmatprep.subr.bf16.mxu1 %v5030_v22  ;;  %5725 = vst [vmem:[#allocation47_spill] sm:$0xff] %v5058_v19  ;;  %v5062_v22 = vld [vmem:[#allocation7 + $0x120] ss:$16 sps:$4 sm:$0xff]   ;;  %v5064_v21 = vld [vmem:[#allocation7 + $0x128] ss:$16 sps:$4 sm:$0xff]  }
  0x9d   :  { %5726 = vst [vmem:[#allocation48_spill] sm:$0xff] %v5062_v22  ;;  %5727 = vst [vmem:[#allocation49_spill] sm:$0xff] %v5064_v21 }
  0x9f   :  { %885 = vmatpush2.bf16.msra.mxu0 %v5036_v23  ;;  %926 = vmatpush2.bf16.msra.mxu1 %v5038_v0  ;;  %v5068_v0 = vld [vmem:[#allocation7 + $0x104] ss:$16 sps:$4 sm:$0xff]   ;;  %v4132_v23 = vld [vmem:[#allocation13 + $0xe8] ss:$16 sps:$4 sm:$0xff]  }
  0xa0   :  { %886 = vmatprep.subr.bf16.mxu0 %v5040_v39  ;;  %927 = vmatprep.subr.bf16.mxu1 %v5042_v14  ;;  %5728 = vst [vmem:[#allocation50_spill] sm:$0xff] %v5068_v0  ;;  %v5070_v39 = vld [vmem:[#allocation7 + $0x10c] ss:$16 sps:$4 sm:$0xff]   ;;  %v5074_v14 = vld [vmem:[#allocation7 + $0x100] ss:$16 sps:$4 sm:$0xff]  }
  0xa1   :  { %5729 = vst [vmem:[#allocation51_spill] sm:$0xff] %v5070_v39  ;;  %5730 = vst [vmem:[#allocation52_spill] sm:$0xff] %v5074_v14 }
  0xa3   :  { %887 = vmatpush2.bf16.msra.mxu0 %v5048_v16  ;;  %928 = vmatpush2.bf16.msra.mxu1 %v5050_v17  ;;  %v5076_v16 = vld [vmem:[#allocation7 + $0x108] ss:$16 sps:$4 sm:$0xff]  }
  0xa4   :  { %888 = vmatprep.subr.bf16.mxu0 %v5056_v18  ;;  %929 = vmatprep.subr.bf16.mxu1 %v5058_v19  ;;  %5731 = vst [vmem:[#allocation53_spill] sm:$0xff] %v5076_v16  ;;  %v5732_v19 = vmov 0.0|0.0   ;;  %v5733_v18 = vmov 0   ;;  %v4131_v17 = vld [vmem:[#allocation13 + $0xc4] ss:$16 sps:$4 sm:$0xff]  }
  0xa7   :  { %889 = vmatpush2.bf16.msra.mxu0 %v5062_v22  ;;  %930 = vmatpush2.bf16.msra.mxu1 %v5064_v21  ;;  %v4126_v21 = vld [vmem:[#allocation13 + $0xe0] ss:$16 sps:$4 sm:$0xff]   ;;  %v5086_v22 = vld [vmem:[#allocation13 + $0xe4] ss:$16 sps:$4 sm:$0xff]  }
  0xa8   :  { %890 = vmatprep.subr.bf16.mxu0 %v5068_v0  ;;  %931 = vmatprep.subr.bf16.mxu1 %v5070_v39  ;;  %5734 = vst [vmem:[#allocation54_spill] sm:$0xff] %v5086_v22  ;;  %v5088_v0 = vld [vmem:[#allocation13 + $0xec] ss:$16 sps:$4 sm:$0xff]  }
  0xa9   :  { %5735 = vst [vmem:[#allocation55_spill] sm:$0xff] %v5088_v0  ;;  %v4140_v39 = vld [vmem:[#allocation13 + $0xcc] ss:$16 sps:$4 sm:$0xff]  }
  0xab   :  { %891 = vmatpush2.bf16.msra.mxu0 %v5074_v14  ;;  %932 = vmatpush2.bf16.msra.mxu1 %v5076_v16  ;;  %v4129_v14 = vld [vmem:[#allocation13 + $0xc0] ss:$16 sps:$4 sm:$0xff]   ;;  %v4137_v16 = vld [vmem:[#allocation13 + $0xa4] ss:$16 sps:$4 sm:$0xff]  }
  0xac   :  { %1158 = vmatprep.subr.bf16.mxu0 %v5086_v22  ;;  %1199 = vmatprep.subr.bf16.mxu1 %v5088_v0  ;;  %v4209_v0 = vld [vmem:[#allocation12 + $0x4c] ss:$16 sps:$4 sm:$0xff]  }
  0xae   :  { %893 = vmatmul.mubr.bf16.vlgmr.msra.gmra.mxu0 %v5732_v19  ;;  %934 = vmatmul.mubr.bf16.vlgmr.msra.gmra.mxu1 %v5732_v19 }
  0xaf   :  { %1190 = vmatprep.mubr.bf16.mxu0 %v5733_v18  ;;  %1231 = vmatprep.mubr.bf16.mxu1 %v5733_v18 }
  0xb0   :  { %1159 = vmatpush1.bf16.msra.mxu0 %v4126_v21  ;;  %1200 = vmatpush1.bf16.msra.mxu1 %v4132_v23  ;;  %v4149_v21 = vld [vmem:[#allocation13 + $0x64] ss:$16 sps:$4 sm:$0xff]   ;;  %v4147_v23 = vld [vmem:[#allocation13 + $0x60] ss:$16 sps:$4 sm:$0xff]  }
  0xb1   :  { %1160 = vmatprep.subr.bf16.mxu0 %v4131_v17  ;;  %1201 = vmatprep.subr.bf16.mxu1 %v4140_v39  ;;  %v4152_v17 = vld [vmem:[#allocation13 + $0x8c] ss:$16 sps:$4 sm:$0xff]  }
  0xb2   :  { %v4158_v39 = vld [vmem:[#allocation13 + $0x6c] ss:$16 sps:$4 sm:$0xff]  }
  0xb4   :  { %1161 = vmatpush1.bf16.msra.mxu0 %v4129_v14  ;;  %1202 = vmatpush1.bf16.msra.mxu1 %v4138_v15  ;;  %v4150_v14 = vld [vmem:[#allocation13 + $0x88] ss:$16 sps:$4 sm:$0xff]  }
  0xb5   :  { %1162 = vmatprep.subr.bf16.mxu0 %v4137_v16  ;;  %1203 = vmatprep.subr.bf16.mxu1 %v4146_v12  ;;  %v4155_v16 = vld [vmem:[#allocation13 + $0x44] ss:$16 sps:$4 sm:$0xff]   ;;  %v4156_v15 = vld [vmem:[#allocation13 + $0x68] ss:$16 sps:$4 sm:$0xff]   ;;  %v4164_v12 = vld [vmem:[#allocation13 + $0x4c] ss:$16 sps:$4 sm:$0xff]  }
  0xb8   :  { %1163 = vmatpush1.bf16.msra.mxu0 %v4135_v20  ;;  %1204 = vmatpush1.bf16.msra.mxu1 %v4144_v10  ;;  %v4153_v20 = vld [vmem:[#allocation13 + $0x40] ss:$16 sps:$4 sm:$0xff]   ;;  %v4162_v10 = vld [vmem:[#allocation13 + $0x48] ss:$16 sps:$4 sm:$0xff]  }
  0xb9   :  { %1164 = vmatprep.subr.bf16.mxu0 %v4143_v13  ;;  %1205 = vmatprep.subr.bf16.mxu1 %v4152_v17  ;;  %v4161_v13 = vld [vmem:[#allocation13 + $0x24] ss:$16 sps:$4 sm:$0xff]   ;;  %v4170_v17 = vld [vmem:[#allocation13 + $0x2c] ss:$16 sps:$4 sm:$0xff]  }
  0xbc   :  { %1165 = vmatpush1.bf16.msra.mxu0 %v4141_v11  ;;  %1206 = vmatpush1.bf16.msra.mxu1 %v4150_v14  ;;  %v4159_v11 = vld [vmem:[#allocation13 + $0x20] ss:$16 sps:$4 sm:$0xff]   ;;  %v4168_v14 = vld [vmem:[#allocation13 + $0x28] ss:$16 sps:$4 sm:$0xff]  }
  0xbd   :  { %1166 = vmatprep.subr.bf16.mxu0 %v4149_v21  ;;  %1207 = vmatprep.subr.bf16.mxu1 %v4158_v39  ;;  %v4167_v21 = vld [vmem:[#allocation13 + $0x4] ss:$16 sps:$4 sm:$0xff]   ;;  %v4171_v39 = vld [vmem:[#allocation13 + $0x8] ss:$16 sps:$4 sm:$0xff]  }
  0xc0   :  { %1167 = vmatpush1.bf16.msra.mxu0 %v4147_v23  ;;  %1208 = vmatpush1.bf16.msra.mxu1 %v4156_v15  ;;  %v4165_v23 = vld [vmem:[#allocation13] ss:$16 sps:$4 sm:$0xff]   ;;  %v4179_v15 = vld [vmem:[#allocation12 + $0xec] ss:$16 sps:$4 sm:$0xff]  }
  0xc1   :  { %1168 = vmatprep.subr.bf16.mxu0 %v4155_v16  ;;  %1209 = vmatprep.subr.bf16.mxu1 %v4164_v12  ;;  %v4173_v16 = vld [vmem:[#allocation13 + $0xc] ss:$16 sps:$4 sm:$0xff]   ;;  %v4177_v12 = vld [vmem:[#allocation12 + $0xe8] ss:$16 sps:$4 sm:$0xff]  }
  0xc4   :  { %1169 = vmatpush1.bf16.msra.mxu0 %v4153_v20  ;;  %1210 = vmatpush1.bf16.msra.mxu1 %v4162_v10  ;;  %v4176_v20 = vld [vmem:[#allocation12 + $0xe4] ss:$16 sps:$4 sm:$0xff]   ;;  %v4185_v10 = vld [vmem:[#allocation12 + $0xcc] ss:$16 sps:$4 sm:$0xff]  }
  0xc5   :  { %1170 = vmatprep.subr.bf16.mxu0 %v4161_v13  ;;  %1211 = vmatprep.subr.bf16.mxu1 %v4170_v17  ;;  %v4174_v13 = vld [vmem:[#allocation12 + $0xe0] ss:$16 sps:$4 sm:$0xff]   ;;  %v4183_v17 = vld [vmem:[#allocation12 + $0xc8] ss:$16 sps:$4 sm:$0xff]  }
  0xc8   :  { %1171 = vmatpush1.bf16.msra.mxu0 %v4159_v11  ;;  %1212 = vmatpush1.bf16.msra.mxu1 %v4168_v14  ;;  %v4182_v11 = vld [vmem:[#allocation12 + $0xc4] ss:$16 sps:$4 sm:$0xff]   ;;  %v4191_v14 = vld [vmem:[#allocation12 + $0xac] ss:$16 sps:$4 sm:$0xff]  }
  0xc9   :  { %1172 = vmatprep.subr.bf16.mxu0 %v4167_v21  ;;  %1213 = vmatprep.subr.bf16.mxu1 %v4173_v16  ;;  %v4180_v21 = vld [vmem:[#allocation12 + $0xc0] ss:$16 sps:$4 sm:$0xff]  }
  0xca   :  { %v4186_v16 = vld [vmem:[#allocation12 + $0xa0] ss:$16 sps:$4 sm:$0xff]  }
  0xcc   :  { %1173 = vmatpush1.bf16.msra.mxu0 %v4165_v23  ;;  %1214 = vmatpush1.bf16.msra.mxu1 %v4171_v39  ;;  %v4188_v23 = vld [vmem:[#allocation12 + $0xa4] ss:$16 sps:$4 sm:$0xff]   ;;  %v4189_v39 = vld [vmem:[#allocation12 + $0xa8] ss:$16 sps:$4 sm:$0xff]  }
  0xcd   :  { %1400 = vmatprep.subr.bf16.mxu0 %v4176_v20  ;;  %1441 = vmatprep.subr.bf16.mxu1 %v4179_v15  ;;  %v4197_v20 = vld [vmem:[#allocation12 + $0x8c] ss:$16 sps:$4 sm:$0xff]   ;;  %v4192_v15 = vld [vmem:[#allocation12 + $0x80] ss:$16 sps:$4 sm:$0xff]  }
  0xcf   :  { %1191 = vmatmul.mubr.bf16.vlgmr.msra.gmra.mxu0 %v5732_v19  ;;  %1232 = vmatmul.mubr.bf16.vlgmr.msra.gmra.mxu1 %v5732_v19  ;;  %v4194_v19 = vld [vmem:[#allocation12 + $0x84] ss:$16 sps:$4 sm:$0xff]  }
  0xd0   :  { %1432 = vmatprep.mubr.bf16.mxu0 %v5733_v18  ;;  %1401 = vmatpush1.bf16.msra.mxu0 %v4174_v13  ;;  %v4195_v13 = vld [vmem:[#allocation12 + $0x88] ss:$16 sps:$4 sm:$0xff]  }
  0xd1   :  { %1442 = vmatpush1.bf16.msra.mxu1 %v4177_v12  ;;  %1473 = vmatprep.mubr.bf16.mxu1 %v5733_v18  ;;  %v4198_v12 = vld [vmem:[#allocation12 + $0x60] ss:$16 sps:$4 sm:$0xff]  }
  0xd2   :  { %1402 = vmatprep.subr.bf16.mxu0 %v4182_v11  ;;  %1443 = vmatprep.subr.bf16.mxu1 %v4185_v10  ;;  %v4200_v11 = vld [vmem:[#allocation12 + $0x64] ss:$16 sps:$4 sm:$0xff]   ;;  %v4201_v10 = vld [vmem:[#allocation12 + $0x68] ss:$16 sps:$4 sm:$0xff]  }
  0xd4   :  { %1403 = vmatpush1.bf16.msra.mxu0 %v4180_v21  ;;  %v4203_v21 = vld [vmem:[#allocation12 + $0x6c] ss:$16 sps:$4 sm:$0xff]  }
  0xd5   :  { %1444 = vmatpush1.bf16.msra.mxu1 %v4183_v17  ;;  %1404 = vmatprep.subr.bf16.mxu0 %v4188_v23  ;;  %v4206_v17 = vld [vmem:[#allocation12 + $0x44] ss:$16 sps:$4 sm:$0xff]   ;;  %v4204_v23 = vld [vmem:[#allocation12 + $0x40] ss:$16 sps:$4 sm:$0xff]  }
  0xd6   :  { %1445 = vmatprep.subr.bf16.mxu1 %v4191_v14  ;;  %v4207_v14 = vld [vmem:[#allocation12 + $0x48] ss:$16 sps:$4 sm:$0xff]  }
  0xd8   :  { %1405 = vmatpush1.bf16.msra.mxu0 %v4186_v16  ;;  %v4212_v16 = vld [vmem:[#allocation12 + $0x24] ss:$16 sps:$4 sm:$0xff]  }
  0xd9   :  { %1446 = vmatpush1.bf16.msra.mxu1 %v4189_v39  ;;  %1406 = vmatprep.subr.bf16.mxu0 %v4194_v19  ;;  %v4215_v39 = vld [vmem:[#allocation12 + $0x2c] ss:$16 sps:$4 sm:$0xff]   ;;  %v4210_v19 = vld [vmem:[#allocation12 + $0x20] ss:$16 sps:$4 sm:$0xff]  }
  0xda   :  { %1447 = vmatprep.subr.bf16.mxu1 %v4197_v20  ;;  %v4213_v20 = vld [vmem:[#allocation12 + $0x28] ss:$16 sps:$4 sm:$0xff]  }
  0xdc   :  { %1407 = vmatpush1.bf16.msra.mxu0 %v4192_v15  ;;  %v4218_v15 = vld [vmem:[#allocation12 + $0x4] ss:$16 sps:$4 sm:$0xff]  }
  0xdd   :  { %1448 = vmatpush1.bf16.msra.mxu1 %v4195_v13  ;;  %1408 = vmatprep.subr.bf16.mxu0 %v4200_v11  ;;  %v4221_v13 = vld [vmem:[#allocation12 + $0xc] ss:$16 sps:$4 sm:$0xff]   ;;  %v4216_v11 = vld [vmem:[#allocation12] ss:$16 sps:$4 sm:$0xff]  }
  0xde   :  { %1449 = vmatprep.subr.bf16.mxu1 %v4203_v21 }
  0xe0   :  { %1409 = vmatpush1.bf16.msra.mxu0 %v4198_v12  ;;  %v4219_v12 = vld [vmem:[#allocation12 + $0x8] ss:$16 sps:$4 sm:$0xff]  }
  0xe1   :  { %1450 = vmatpush1.bf16.msra.mxu1 %v4201_v10  ;;  %1410 = vmatprep.subr.bf16.mxu0 %v4206_v17 }
  0xe2   :  { %1451 = vmatprep.subr.bf16.mxu1 %v4209_v0 }
  0xe4   :  { %1411 = vmatpush1.bf16.msra.mxu0 %v4204_v23 }
  0xe5   :  { %1452 = vmatpush1.bf16.msra.mxu1 %v4207_v14  ;;  %1412 = vmatprep.subr.bf16.mxu0 %v4212_v16 }
  0xe6   :  { %1453 = vmatprep.subr.bf16.mxu1 %v4215_v39 }
  0xe8   :  { %1413 = vmatpush1.bf16.msra.mxu0 %v4210_v19  ;;  %v5680_v19 = vlaneseq }
  0xe9   :  { %1454 = vmatpush1.bf16.msra.mxu1 %v4213_v20  ;;  %1414 = vmatprep.subr.bf16.mxu0 %v4218_v15 }
  0xea   :  { %1455 = vmatprep.subr.bf16.mxu1 %v4221_v13  ;;  %v5099_v20 = vshrl.u32 %v5680_v19, 7  ;;  %v284_v13 = vld [vmem:[#allocation10] sm:$0xf] }
  0xec   :  { %1415 = vmatpush1.bf16.msra.mxu0 %v4216_v11  ;;  %v5102_v15 = vsub.s32 0, %v5099_v20  ;;  %v5116_v5 = vsub.s32 3, %v5099_v20 }
  0xed   :  { %1456 = vmatpush1.bf16.msra.mxu1 %v4219_v12  ;;  %2020 = vmatprep.subr.bf16.mxu0 %v4853_v1  ;;  %v5105_v1 = vsub.s32 1, %v5099_v20 }
  0xee   :  { %2061 = vmatprep.subr.bf16.mxu1 %v4855_v2  ;;  %5736 = vst [vmem:[#allocation56_spill] sm:$0xff] %v5102_v15  ;;  %v5108_v2 = vrot.slane %v284_v13, %v5102_v15 }
  0xef   :  { %5737 = vst [vmem:[#allocation57_spill] sm:$0xff] %v5105_v1 }
 0x12e   :  { %v492_v0 = vpop.f32.mrf.mxu0  ;;  %v533_v10 = vpop.f32.mrf.mxu1 }
 0x130   :  { %v494_v21 = vpop.f32.mrf.mxu0  ;;  %v535_v17 = vpop.f32.mrf.mxu1 }
 0x132   :  { %v496_v23 = vpop.f32.mrf.mxu0  ;;  %v537_v14 = vpop.f32.mrf.mxu1 }
 0x133   :  { %v5111_v14 = vrot.slane %v284_v13, %v5105_v1 }
 0x134   :  { %v497_v16 = vpop.f32.mrf.mxu0  ;;  %v538_v39 = vpop.f32.mrf.mxu1 }
 0x135   :  { %5738 = vst [vmem:[#allocation58_spill] sm:$0xff] %v5111_v14 }
 0x16e   :  { %v894_v11 = vpop.f32.mrf.mxu0  ;;  %v935_v12 = vpop.f32.mrf.mxu1 }
 0x16f   :  { %v895_v23 = vadd.f32 %v894_v11, %v492_v0  ;;  %v5119_v11 = vsub.s32 2, %v5099_v20 }
 0x170   :  { %v896_v16 = vpop.f32.mrf.mxu0  ;;  %v937_v39 = vpop.f32.mrf.mxu1 }
 0x171   :  { %v963_v19 = vadd.f32 %v5108_v2, %v895_v23  ;;  %v897_v22 = vadd.f32 %v896_v16, %v494_v21  ;;  %v938_v1 = vadd.f32 %v937_v39, %v535_v17  ;;  %v5122_v23 = vrot.slane %v284_v13, %v5116_v5 }
 0x172   :  { %v898_v9 = vpop.f32.mrf.mxu0  ;;  %v939_v8 = vpop.f32.mrf.mxu1 }
 0x173   :  { %v3864_v7 = vmul.f32 -1.442695, %v963_v19  ;;  %v964_v6 = vadd.f32 %v5111_v14, %v897_v22  ;;  %v936_v9 = vadd.f32 %v935_v12, %v533_v10  ;;  %v5125_v8 = vrot.slane %v284_v13, %v5119_v11 }
 0x174   :  { %v899_v15 = vpop.f32.mrf.mxu0  ;;  %v940_v4 = vpop.f32.mrf.mxu1  ;;  %v966_v22 = vadd.f32 %v5122_v23, %v938_v1 }
 0x175   :  { %4222 = vpow2.f32 %v3864_v7  ;;  %v3865_v0 = vmul.f32 -1.442695, %v964_v6  ;;  %v965_v21 = vadd.f32 %v5125_v8, %v936_v9 }
 0x176   :  { %v3866_v19 = vmul.f32 -1.442695, %v966_v22 }
 0x177   :  { %4224 = vpow2.f32 %v3865_v0 }
 0x178   :  { %4226 = vtanh.f32 %v965_v21 }
 0x179   :  { %4228 = vpow2.f32 %v3866_v19  ;;  %v4372_v19 = vld [vmem:[#allocation9 + $0xe0] ss:$16 sps:$4 sm:$0xff]  }
 0x182   :  { %v4223_v4 = vpop.eup %4222 }
 0x183   :  { %v970_v7 = vadd.f32 1.0, %v4223_v4  ;;  %v4373_v4 = vld [vmem:[#allocation9 + $0xe8] ss:$16 sps:$4 sm:$0xff]  }
 0x184   :  { %v4225_v6 = vpop.eup %4224 }
 0x185   :  { %4230 = vrcp.f32 %v970_v7  ;;  %v976_v15 = vadd.f32 1.0, %v4225_v6  ;;  %v4227_v17 = vpop.eup %4226  ;;  %v4374_v7 = vld [vmem:[#allocation9 + $0xc4] ss:$16 sps:$4 sm:$0xff]   ;;  %v4375_v6 = vld [vmem:[#allocation9 + $0xcc] ss:$16 sps:$4 sm:$0xff]  }
 0x186   :  { %v4229_v16 = vpop.eup %4228 }
 0x187   :  { %4232 = vrcp.f32 %v976_v15  ;;  %v983_v13 = vadd.f32 1.0, %v4229_v16  ;;  %v4376_v15 = vld [vmem:[#allocation9 + $0xc0] ss:$16 sps:$4 sm:$0xff]   ;;  %v4378_v16 = vld [vmem:[#allocation9 + $0xa4] ss:$16 sps:$4 sm:$0xff]  }
 0x189   :  { %4234 = vrcp.f32 %v983_v13  ;;  %v4382_v13 = vld [vmem:[#allocation9 + $0x84] ss:$16 sps:$4 sm:$0xff]  }
 0x192   :  { %v4231_v39 = vpop.eup %4230 }
 0x193   :  { %v988_v10 = vmul.f32 %v4231_v39, %v4227_v17  ;;  %v4377_v17 = vld [vmem:[#allocation9 + $0xc8] ss:$16 sps:$4 sm:$0xff]   ;;  %v4379_v39 = vld [vmem:[#allocation9 + $0xac] ss:$16 sps:$4 sm:$0xff]  }
 0x194   :  { %v4233_v12 = vpop.eup %4232 }
 0x195   :  { %v987_v0 = vmul.f32 0.0, %v4233_v12  ;;  %v4381_v12 = vld [vmem:[#allocation9 + $0xa8] ss:$16 sps:$4 sm:$0xff]  }
 0x196   :  { %v4235_v1 = vpop.eup %4234 }
 0x197   :  { %v5129_v14 = vadd.f32 %v988_v10, %v987_v0  ;;  %v4380_v10 = vld [vmem:[#allocation9 + $0xa0] ss:$16 sps:$4 sm:$0xff]   ;;  %v4383_v0 = vld [vmem:[#allocation9 + $0x8c] ss:$16 sps:$4 sm:$0xff]  }
 0x199   :  { %4236 = vtanh.f32 %v5129_v14 }
 0x1a6   :  { %v4237_v9 = vpop.eup %4236 }
 0x1a7   :  { %v991_v22 = vmul.f32 %v4237_v9, %v4235_v1  ;;  %v4384_v1 = vld [vmem:[#allocation9 + $0x80] ss:$16 sps:$4 sm:$0xff]   ;;  %v4385_v9 = vld [vmem:[#allocation9 + $0x88] ss:$16 sps:$4 sm:$0xff]  }
 0x1a9   :  { %v994_v21 = vpack.c.bf16 %v991_v22, %v991_v22  ;;  %v4386_v22 = vld [vmem:[#allocation9 + $0x64] ss:$16 sps:$4 sm:$0xff]  }
 0x1ab   :  { %1433 = vmatmul.mubr.bf16.vlgmr.msra.gmra.mxu0 %v994_v21  ;;  %1474 = vmatmul.mubr.bf16.vlgmr.msra.gmra.mxu1 %v994_v21 }
 0x1ac   :  { %2021 = vmatpush1.bf16.msra.mxu0 %v4372_v19  ;;  %2062 = vmatpush1.bf16.msra.mxu1 %v4373_v4  ;;  %v4387_v19 = vld [vmem:[#allocation9 + $0x6c] ss:$16 sps:$4 sm:$0xff]   ;;  %v4388_v4 = vld [vmem:[#allocation9 + $0x60] ss:$16 sps:$4 sm:$0xff]  }
 0x1ad   :  { %2022 = vmatprep.subr.bf16.mxu0 %v4374_v7  ;;  %2063 = vmatprep.subr.bf16.mxu1 %v4375_v6  ;;  %v4389_v7 = vld [vmem:[#allocation9 + $0x68] ss:$16 sps:$4 sm:$0xff]   ;;  %v4390_v6 = vld [vmem:[#allocation9 + $0x44] ss:$16 sps:$4 sm:$0xff]  }
 0x1ae   :  { %2052 = vmatprep.mubr.bf16.mxu0 %v5733_v18  ;;  %2093 = vmatprep.mubr.bf16.mxu1 %v5733_v18 }
 0x1b0   :  { %2023 = vmatpush1.bf16.msra.mxu0 %v4376_v15  ;;  %2064 = vmatpush1.bf16.msra.mxu1 %v4377_v17  ;;  %v4391_v15 = vld [vmem:[#allocation9 + $0x4c] ss:$16 sps:$4 sm:$0xff]   ;;  %v4392_v17 = vld [vmem:[#allocation9 + $0x40] ss:$16 sps:$4 sm:$0xff]  }
 0x1b1   :  { %2024 = vmatprep.subr.bf16.mxu0 %v4378_v16  ;;  %2065 = vmatprep.subr.bf16.mxu1 %v4379_v39  ;;  %v5141_v16 = vpop.f32.mrf.mxu0 }
 0x1b3   :  { %v5145_v39 = vpop.f32.mrf.mxu0 }
 0x1b4   :  { %2025 = vmatpush1.bf16.msra.mxu0 %v4380_v10  ;;  %2066 = vmatpush1.bf16.msra.mxu1 %v4381_v12  ;;  %v285_v10 = vld [vmem:[%s5646_s6] sm:$0xf]  ;;  %v5774_v12 = vld [vmem:[#allocation56_spill] sm:$0xff]  ;;  %s4778_s6 = smov [#allocation15]  }
 0x1b5   :  { %2026 = vmatprep.subr.bf16.mxu0 %v4382_v13  ;;  %2067 = vmatprep.subr.bf16.mxu1 %v4383_v0  ;;  %v5221_v13 = vrot.slane %v285_v10, %v5774_v12  ;;  %s3756_s27 = sshll.u32 %s4778_s6, 4  ;;  %s3757_s27 = int_to_ptr.vmem [resolvable:$true] %s3756_s27 }
 0x1b6   :  { %s4735_s28 = scalar_lea.vmem %s3757_s27, 256  ;;  %p4740_p3 = scmp.lt.s32.totalorder %s3757_s27, %s3757_s27 }
 0x1b7   :  { %p4736_p2 = scmp.ne.s32.totalorder %s3757_s27, %s4735_s28  ;;  %p4741_p4 = scmp.lt.s32.totalorder %s4735_s28, %s4735_s28 }
 0x1b8   :  { %2027 = vmatpush1.bf16.msra.mxu0 %v4384_v1  ;;  %2068 = vmatpush1.bf16.msra.mxu1 %v4385_v9 }
 0x1b9   :  { %2028 = vmatprep.subr.bf16.mxu0 %v4386_v22  ;;  %2069 = vmatprep.subr.bf16.mxu1 %v4387_v19  ;;  %v5775_v22 = vld [vmem:[#allocation57_spill] sm:$0xff]  ;;  %p4742_p5 = por %p4741_p4, %p4740_p3 }
 0x1ba   :  { %v5225_v19 = vrot.slane %v285_v10, %v5775_v22 }
 0x1bb   :  { %p4743_p6 = pnand %p4742_p5, %p4736_p2 }
 0x1bc   :  { %2029 = vmatpush1.bf16.msra.mxu0 %v4388_v4  ;;  %2070 = vmatpush1.bf16.msra.mxu1 %v4389_v7 }
 0x1bd   :  { %2030 = vmatprep.subr.bf16.mxu0 %v4390_v6  ;;  %2071 = vmatprep.subr.bf16.mxu1 %v4391_v15 }
 0x1c0   :  { %2031 = vmatpush1.bf16.msra.mxu0 %v4392_v17  ;;  %2072 = vmatpush1.bf16.msra.mxu1 %v4859_v24  ;;  %v1196_v24 = vpop.f32.mrf.mxu0 }
 0x1c1   :  { %2032 = vmatprep.subr.bf16.mxu0 %v4861_v25  ;;  %2073 = vmatprep.subr.bf16.mxu1 %v4863_v26  ;;  %v5149_v25 = vpop.f32.mrf.mxu1 }
 0x1c2   :  { %v1197_v26 = vpop.f32.mrf.mxu0 }
 0x1c4   :  { %2033 = vmatpush1.bf16.msra.mxu0 %v4865_v27  ;;  %2074 = vmatpush1.bf16.msra.mxu1 %v4867_v28  ;;  %v5155_v27 = vpop.f32.mrf.mxu1 }
 0x1c5   :  { %2034 = vmatprep.subr.bf16.mxu0 %v4870_v29  ;;  %2075 = vmatprep.subr.bf16.mxu1 %v4874_v30  ;;  %v5739_v30 = vld [vmem:[#allocation21_spill] sm:$0xff] }
 0x1c6   :  { %v1237_v28 = vpop.f32.mrf.mxu1 }
 0x1c8   :  { %2035 = vmatpush1.bf16.msra.mxu0 %v4876_v31  ;;  %2076 = vmatpush1.bf16.msra.mxu1 %v4878_v32  ;;  %v1238_v29 = vpop.f32.mrf.mxu1  ;;  %v5740_v31 = vld [vmem:[#allocation22_spill] sm:$0xff]  ;;  %v5741_v32 = vld [vmem:[#allocation23_spill] sm:$0xff] }
 0x1c9   :  { %2102 = vmatprep.subr.bf16.mxu0 %v4882_v33  ;;  %2143 = vmatprep.subr.bf16.mxu1 %v4886_v34  ;;  %v5742_v33 = vld [vmem:[#allocation24_spill] sm:$0xff]  ;;  %v5743_v34 = vld [vmem:[#allocation25_spill] sm:$0xff] }
 0x1cb   :  { %2053 = vmatmul.mubr.bf16.vlgmr.msra.gmra.mxu0 %v994_v21  ;;  %2094 = vmatmul.mubr.bf16.vlgmr.msra.gmra.mxu1 %v994_v21  ;;  %v5773_v21 = vld [vmem:[#allocation55_spill] sm:$0xff] }
 0x1cc   :  { %2103 = vmatpush1.bf16.msra.mxu0 %v4888_v35  ;;  %2144 = vmatpush1.bf16.msra.mxu1 %v4890_v36  ;;  %v5744_v35 = vld [vmem:[#allocation26_spill] sm:$0xff]  ;;  %v5745_v36 = vld [vmem:[#allocation27_spill] sm:$0xff] }
 0x1cd   :  { %2104 = vmatprep.subr.bf16.mxu0 %v4894_v37  ;;  %2145 = vmatprep.subr.bf16.mxu1 %v4898_v38  ;;  %v5746_v37 = vld [vmem:[#allocation28_spill] sm:$0xff]  ;;  %v5747_v38 = vld [vmem:[#allocation29_spill] sm:$0xff] }
 0x1d0   :  { %2105 = vmatpush1.bf16.msra.mxu0 %v4902_v40  ;;  %2146 = vmatpush1.bf16.msra.mxu1 %v4904_v41  ;;  %v5748_v40 = vld [vmem:[#allocation30_spill] sm:$0xff]  ;;  %v5749_v41 = vld [vmem:[#allocation31_spill] sm:$0xff] }
 0x1d1   :  { %2106 = vmatprep.subr.bf16.mxu0 %v4908_v42  ;;  %2147 = vmatprep.subr.bf16.mxu1 %v4912_v43  ;;  %v5750_v42 = vld [vmem:[#allocation32_spill] sm:$0xff]  ;;  %v5751_v43 = vld [vmem:[#allocation33_spill] sm:$0xff] }
 0x1d4   :  { %2107 = vmatpush1.bf16.msra.mxu0 %v4916_v44  ;;  %2148 = vmatpush1.bf16.msra.mxu1 %v4918_v45  ;;  %v5752_v44 = vld [vmem:[#allocation34_spill] sm:$0xff]  ;;  %v5753_v45 = vld [vmem:[#allocation35_spill] sm:$0xff] }
 0x1d5   :  { %2108 = vmatprep.subr.bf16.mxu0 %v4922_v46  ;;  %2149 = vmatprep.subr.bf16.mxu1 %v4926_v47  ;;  %v5754_v46 = vld [vmem:[#allocation36_spill] sm:$0xff]  ;;  %v5755_v47 = vld [vmem:[#allocation37_spill] sm:$0xff] }
 0x1d8   :  { %2109 = vmatpush1.bf16.msra.mxu0 %v4928_v48  ;;  %2150 = vmatpush1.bf16.msra.mxu1 %v4930_v49  ;;  %v5756_v48 = vld [vmem:[#allocation38_spill] sm:$0xff]  ;;  %v5757_v49 = vld [vmem:[#allocation39_spill] sm:$0xff] }
 0x1d9   :  { %2110 = vmatprep.subr.bf16.mxu0 %v4934_v50  ;;  %2151 = vmatprep.subr.bf16.mxu1 %v4938_v51  ;;  %v5758_v50 = vld [vmem:[#allocation40_spill] sm:$0xff]  ;;  %v5759_v51 = vld [vmem:[#allocation41_spill] sm:$0xff] }
 0x1dc   :  { %2111 = vmatpush1.bf16.msra.mxu0 %v4940_v52  ;;  %2152 = vmatpush1.bf16.msra.mxu1 %v4942_v53  ;;  %v5760_v52 = vld [vmem:[#allocation42_spill] sm:$0xff]  ;;  %v5761_v53 = vld [vmem:[#allocation43_spill] sm:$0xff] }
 0x1dd   :  { %2112 = vmatprep.subr.bf16.mxu0 %v4946_v54  ;;  %2153 = vmatprep.subr.bf16.mxu1 %v4950_v55  ;;  %v5762_v54 = vld [vmem:[#allocation44_spill] sm:$0xff]  ;;  %v5763_v55 = vld [vmem:[#allocation45_spill] sm:$0xff] }
 0x1e0   :  { %2113 = vmatpush1.bf16.msra.mxu0 %v4952_v56  ;;  %2154 = vmatpush1.bf16.msra.mxu1 %v4954_v57  ;;  %v5764_v56 = vld [vmem:[#allocation46_spill] sm:$0xff]  ;;  %v5765_v57 = vld [vmem:[#allocation47_spill] sm:$0xff] }
 0x1e1   :  { %2114 = vmatprep.subr.bf16.mxu0 %v4958_v58  ;;  %2155 = vmatprep.subr.bf16.mxu1 %v4962_v59  ;;  %v5766_v58 = vld [vmem:[#allocation48_spill] sm:$0xff]  ;;  %v5767_v59 = vld [vmem:[#allocation49_spill] sm:$0xff] }
 0x1e4   :  { %2115 = vmatpush1.bf16.msra.mxu0 %v4964_v60  ;;  %2156 = vmatpush1.bf16.msra.mxu1 %v4966_v61  ;;  %v5768_v60 = vld [vmem:[#allocation50_spill] sm:$0xff]  ;;  %v5769_v61 = vld [vmem:[#allocation51_spill] sm:$0xff] }
 0x1e5   :  { %2116 = vmatprep.subr.bf16.mxu0 %v4970_v62  ;;  %2157 = vmatprep.subr.bf16.mxu1 %v4974_v63  ;;  %v5770_v62 = vld [vmem:[#allocation52_spill] sm:$0xff]  ;;  %v5771_v63 = vld [vmem:[#allocation53_spill] sm:$0xff] }
 0x1e8   :  { %2117 = vmatpush1.bf16.msra.mxu0 %v4976_v3  ;;  %2158 = vmatpush1.bf16.msra.mxu1 %v5739_v30  ;;  %v5772_v3 = vld [vmem:[#allocation54_spill] sm:$0xff] }
 0x1e9   :  { %2118 = vmatprep.subr.bf16.mxu0 %v5740_v31  ;;  %2159 = vmatprep.subr.bf16.mxu1 %v5741_v32  ;;  %v5232_v32 = vrot.slane %v285_v10, %v5116_v5 }
 0x1ec   :  { %2119 = vmatpush2.bf16.msra.mxu0 %v5742_v33  ;;  %2160 = vmatpush2.bf16.msra.mxu1 %v5743_v34 }
 0x1ed   :  { %2120 = vmatprep.subr.bf16.mxu0 %v5744_v35  ;;  %2161 = vmatprep.subr.bf16.mxu1 %v5745_v36 }
 0x1f0   :  { %2121 = vmatpush2.bf16.msra.mxu0 %v5746_v37  ;;  %2162 = vmatpush2.bf16.msra.mxu1 %v5747_v38 }
 0x1f1   :  { %2122 = vmatprep.subr.bf16.mxu0 %v5748_v40  ;;  %2163 = vmatprep.subr.bf16.mxu1 %v5749_v41 }
 0x1f4   :  { %2123 = vmatpush2.bf16.msra.mxu0 %v5750_v42  ;;  %2164 = vmatpush2.bf16.msra.mxu1 %v5751_v43 }
 0x1f5   :  { %2124 = vmatprep.subr.bf16.mxu0 %v5752_v44  ;;  %2165 = vmatprep.subr.bf16.mxu1 %v5753_v45 }
 0x1f8   :  { %2125 = vmatpush2.bf16.msra.mxu0 %v5754_v46  ;;  %2166 = vmatpush2.bf16.msra.mxu1 %v5755_v47 }
 0x1f9   :  { %2126 = vmatprep.subr.bf16.mxu0 %v5756_v48  ;;  %2167 = vmatprep.subr.bf16.mxu1 %v5757_v49 }
 0x1fc   :  { %2127 = vmatpush2.bf16.msra.mxu0 %v5758_v50  ;;  %2168 = vmatpush2.bf16.msra.mxu1 %v5759_v51 }
 0x1fd   :  { %2128 = vmatprep.subr.bf16.mxu0 %v5760_v52  ;;  %2169 = vmatprep.subr.bf16.mxu1 %v5761_v53 }
 0x200   :  { %2129 = vmatpush2.bf16.msra.mxu0 %v5762_v54  ;;  %2170 = vmatpush2.bf16.msra.mxu1 %v5763_v55 }
 0x201   :  { %2130 = vmatprep.subr.bf16.mxu0 %v5764_v56  ;;  %2171 = vmatprep.subr.bf16.mxu1 %v5765_v57  ;;  %v4777_v56 = vmov 1966171168  }
 0x202   :  { %v1538_v57 = vunpack.c.l.s4 %v4777_v56 }
 0x204   :  { %2131 = vmatpush2.bf16.msra.mxu0 %v5766_v58  ;;  %2172 = vmatpush2.bf16.msra.mxu1 %v5767_v59  ;;  %v1539_v58 = vunpack.c.0.s8 %v1538_v57 }
 0x205   :  { %2132 = vmatprep.subr.bf16.mxu0 %v5768_v60  ;;  %2173 = vmatprep.subr.bf16.mxu1 %v5769_v61 }
 0x206   :  { %v5252_v60 = vsub.s32 %v1539_v58, %v5099_v20 }
 0x208   :  { %2133 = vmatpush2.bf16.msra.mxu0 %v5770_v62  ;;  %2174 = vmatpush2.bf16.msra.mxu1 %v5771_v63  ;;  %v3947_v63 = vld [vmem:[#allocation4] sm:$0xff]  }
 0x209   :  { %2218 = vmatprep.subr.bf16.mxu0 %v5772_v3  ;;  %2259 = vmatprep.subr.bf16.mxu1 %v5773_v21 }
 0x26b   :  { %v1434_v0 = vpop.f32.mrf.mxu0  ;;  %v1475_v1 = vpop.f32.mrf.mxu1 }
 0x26c   :  { %v1435_v9 = vadd.f32 %v1434_v0, %v5141_v16  ;;  %v1476_v34 = vadd.f32 %v1475_v1, %v5149_v25  ;;  %v5260_v0 = vunpack.c.l.bf16 %v3947_v63 }
 0x26d   :  { %v1436_v4 = vpop.f32.mrf.mxu0  ;;  %v1477_v7 = vpop.f32.mrf.mxu1 }
 0x26e   :  { %v1503_v6 = vadd.f32 %v5221_v13, %v1435_v9  ;;  %v1437_v15 = vadd.f32 %v1436_v4, %v5145_v39  ;;  %v1478_v16 = vadd.f32 %v1477_v7, %v5155_v27  ;;  %v5237_v39 = vrot.slane %v285_v10, %v5119_v11  ;;  %v3962_v10 = vld [vmem:[#allocation4 + $0x8] sm:$0xff]  }
 0x26f   :  { %v1438_v17 = vpop.f32.mrf.mxu0  ;;  %v1479_v24 = vpop.f32.mrf.mxu1 }
 0x270   :  { %v3931_v26 = vmul.f32 -1.442695, %v1503_v6  ;;  %v1504_v28 = vadd.f32 %v5225_v19, %v1437_v15  ;;  %v1506_v33 = vadd.f32 %v5232_v32, %v1478_v16  ;;  %v1505_v37 = vadd.f32 %v5237_v39, %v1476_v34 }
 0x271   :  { %v1439_v29 = vpop.f32.mrf.mxu0  ;;  %v1480_v30 = vpop.f32.mrf.mxu1  ;;  %v5265_v6 = vunpack.c.l.bf16 %v3962_v10  ;;  %v5268_v24 = vunpack.c.h.bf16 %v3947_v63 }
 0x272   :  { %4238 = vpow2.f32 %v3931_v26  ;;  %v3932_v31 = vmul.f32 -1.442695, %v1504_v28  ;;  %v3933_v35 = vmul.f32 -1.442695, %v1506_v33  ;;  %v3963_v33 = vld [vmem:[#allocation4 + $0x10] sm:$0xff]  }
 0x274   :  { %4240 = vpow2.f32 %v3932_v31 }
 0x275   :  { %4242 = vpow2.f32 %v3933_v35  ;;  %v5275_v35 = vunpack.c.h.bf16 %v3962_v10 }
 0x27f   :  { %v4239_v36 = vpop.eup %4238 }
 0x280   :  { %v1510_v38 = vadd.f32 1.0, %v4239_v36 }
 0x281   :  { %v4241_v40 = vpop.eup %4240 }
 0x282   :  { %4244 = vrcp.f32 %v1510_v38  ;;  %v1516_v41 = vadd.f32 1.0, %v4241_v40  ;;  %v4243_v44 = vpop.eup %4242  ;;  %v5280_v40 = vunpack.c.l.bf16 %v3963_v33 }
 0x283   :  { %4246 = vtanh.f32 %v1505_v37  ;;  %v1523_v50 = vadd.f32 1.0, %v4243_v44 }
 0x284   :  { %4248 = vrcp.f32 %v1516_v41 }
 0x285   :  { %4250 = vrcp.f32 %v1523_v50 }
 0x28b   :  { %v5240_v27 = vpop.f32.mrf.mxu0  ;;  %v5242_v42 = vpop.f32.mrf.mxu1 }
 0x28d   :  { %v5244_v43 = vpop.f32.mrf.mxu0  ;;  %v5246_v25 = vpop.f32.mrf.mxu1 }
 0x28f   :  { %v4245_v45 = vpop.eup %4244  ;;  %v2058_v46 = vpop.f32.mrf.mxu0 }
 0x290   :  { %v2099_v47 = vpop.f32.mrf.mxu1  ;;  %v4247_v48 = vpop.eup %4246 }
 0x291   :  { %v4249_v49 = vpop.eup %4248  ;;  %v2059_v51 = vpop.f32.mrf.mxu0  ;;  %v1529_v54 = vmul.f32 %v4247_v48, %v4245_v45  ;;  %v3964_v45 = vld [vmem:[#allocation4 + $0x18] sm:$0xff]   ;;  %v5284_v47 = vunpack.c.h.bf16 %v3963_v33 }
 0x292   :  { %v2100_v52 = vpop.f32.mrf.mxu1  ;;  %v1528_v53 = vmul.f32 0.0, %v4249_v49  ;;  %v4251_v59 = vpop.eup %4250  ;;  %v5288_v51 = vunpack.c.l.bf16 %v3964_v45 }
 0x294   :  { %v5248_v55 = vadd.f32 %v1529_v54, %v1528_v53  ;;  %v5292_v54 = vunpack.c.h.bf16 %v3964_v45 }
 0x296   :  { %4252 = vtanh.f32 %v5248_v55 }
 0x2a3   :  { %v4253_v61 = vpop.eup %4252 }
 0x2a4   :  { %v5254_v62 = vmul.f32 %v4253_v61, %v4251_v59  ;;  %v5776_v59 = vlaneseq }
 0x2a6   :  { %v1543_v3 = vrot.slane %v5254_v62, %v5252_v60  ;;  %v1536_v21 = vcombine.high %v5254_v62, %v5254_v62  ;;  %v1658_v61 = vand.u32 127, %v5776_v59 }
 0x2a8   :  { %v1559_v1 = vrot.slane %v1543_v3, %v5252_v60  ;;  %v1551_v9 = vcombine.high %v1543_v3, %v1543_v3  ;;  %v1550_v4 = vrot.slane %v1536_v21, %v5252_v60  ;;  %v5299_v3 = vsub.s32 %v1658_v61, %v5099_v20 }
 0x2aa   :  { %v1588_v7 = vrot.slane %v1559_v1, %v5774_v12  ;;  %v1581_v15 = vcombine.high %v1559_v1, %v1559_v1  ;;  %v1573_v17 = vrot.slane %v1551_v9, %v5252_v60  ;;  %v1566_v26 = vrot.slane %v1550_v4, %v5252_v60 }
 0x2ab   :  { %v1552_v28 = vcombine.high %v1550_v4, %v1550_v4 }
 0x2ac   :  { %v1625_v29 = vmul.f32 %v5260_v0, %v1588_v7  ;;  %v1596_v30 = vrot.slane %v1581_v15, %v5774_v12  ;;  %v1592_v31 = vrot.slane %v1573_v17, %v5774_v12  ;;  %v1583_v16 = vcombine.high %v1573_v17, %v1573_v17 }
 0x2ad   :  { %v1580_v37 = vrot.slane %v1552_v28, %v5252_v60  ;;  %v1604_v41 = vrot.slane %v1566_v26, %v5774_v12  ;;  %v1582_v44 = vcombine.high %v1566_v26, %v1566_v26 }
 0x2ae   :  { %1633 = vadd.xlane.f32.xlu0 %v1625_v29  ;;  %v1627_v34 = vmul.f32 %v5265_v6, %v1596_v30  ;;  %v1600_v36 = vrot.slane %v1583_v16, %v5774_v12  ;;  %v1626_v38 = vmul.f32 %v5268_v24, %v1592_v31 }
 0x2af   :  { %v1608_v48 = vrot.slane %v1580_v37, %v5774_v12  ;;  %v1584_v49 = vcombine.high %v1580_v37, %v1580_v37  ;;  %v1629_v50 = vmul.f32 %v5280_v40, %v1604_v41  ;;  %v1612_v52 = vrot.slane %v1582_v44, %v5774_v12 }
 0x2b0   :  { %1637 = vadd.xlane.f32.xlu1 %v1627_v34  ;;  %v1628_v46 = vmul.f32 %v5275_v35, %v1600_v36 }
 0x2b1   :  { %v1630_v53 = vmul.f32 %v5284_v47, %v1608_v48  ;;  %v1616_v56 = vrot.slane %v1584_v49, %v5774_v12  ;;  %v1631_v57 = vmul.f32 %v5288_v51, %v1612_v52 }
 0x2b2   :  { %1635 = vadd.xlane.f32.xlu0 %v1626_v38 }
 0x2b3   :  { %v1632_v58 = vmul.f32 %v5292_v54, %v1616_v56 }
 0x2b4   :  { %1639 = vadd.xlane.f32.xlu1 %v1628_v46 }
 0x2b6   :  { %1641 = vadd.xlane.f32.xlu0 %v1629_v50 }
 0x2b8   :  { %1643 = vadd.xlane.f32.xlu1 %v1630_v53  ;;  %v5321_v53 = vsub.s32 4, %v5099_v20 }
 0x2ba   :  { %1645 = vadd.xlane.f32.xlu0 %v1631_v57 }
 0x2bc   :  { %1647 = vadd.xlane.f32.xlu1 %v1632_v58 }
 0x337   :  { %v1634_v63 = vpop.xlane.xlu0 %1633 }
 0x338   :  { %v1662_v1 = vrot.slane %v1634_v63, %v5299_v3 }
 0x339   :  { %v1638_v21 = vpop.xlane.xlu1 %1637 }
 0x33a   :  { %v1670_v4 = vrot.slane %v1638_v21, %v5299_v3 }
 0x33b   :  { %v1636_v10 = vpop.xlane.xlu0 %1635 }
 0x33c   :  { %v1666_v9 = vrot.slane %v1636_v10, %v5299_v3 }
 0x33d   :  { %v1640_v7 = vpop.xlane.xlu1 %1639 }
 0x33e   :  { %v1692_v15 = vsel %vm1691_vm0, %v1666_v9, %v1662_v1  ;;  %v1674_v17 = vrot.slane %v1640_v7, %v5299_v3  ;;  %v5325_v9 = vsub.s32 5, %v5099_v20 }
 0x33f   :  { %v1694_v26 = vsel %vm1693_vm1, %v1670_v4, %v1692_v15  ;;  %v1642_v28 = vpop.xlane.xlu0 %1641 }
 0x340   :  { %v1696_v29 = vsel %vm1695_vm2, %v1674_v17, %v1694_v26  ;;  %v1678_v30 = vrot.slane %v1642_v28, %v5299_v3  ;;  %v5329_v26 = vsub.s32 6, %v5099_v20 }
 0x341   :  { %v1644_v31 = vpop.xlane.xlu1 %1643 }
 0x342   :  { %v1698_v16 = vsel %vm1697_vm3, %v1678_v30, %v1696_v29  ;;  %v1682_v33 = vrot.slane %v1644_v31, %v5299_v3  ;;  %5777 = vst [vmem:[#allocation21_spill] sm:$0xff] %v5329_v26 }
 0x343   :  { %v1646_v34 = vpop.xlane.xlu0 %1645 }
 0x344   :  { %v1686_v36 = vrot.slane %v1646_v34, %v5299_v3  ;;  %v1700_v37 = vsel %vm1699_vm4, %v1682_v33, %v1698_v16 }
 0x345   :  { %v1648_v38 = vpop.xlane.xlu1 %1647 }
 0x346   :  { %v1690_v41 = vrot.slane %v1648_v38, %v5299_v3  ;;  %v1702_v44 = vsel %vm1701_vm5, %v1686_v36, %v1700_v37 }
 0x348   :  { %v1704_v45 = vsel %vm1703_vm6, %v1690_v41, %v1702_v44 }
 0x349   :  { %v1707_v46 = vsel %vm1706_vm7, %v1704_v45, -inf }
 0x34a   :  { %1708 = vmax.xlane.f32.xlu0 %v1707_v46 }
 0x3d3   :  { %v1709_v48 = vpop.xlane.xlu0 %1708 }
 0x3d4   :  { %v1714_v49 = vrot.slane %v1709_v48, %v5774_v12  ;;  %v1718_v50 = vrot.slane %v1709_v48, %v5775_v22  ;;  %v1722_v52 = vrot.slane %v1709_v48, %v5119_v11  ;;  %v1726_v56 = vrot.slane %v1709_v48, %v5116_v5 }
 0x3d5   :  { %v1730_v4 = vrot.slane %v1709_v48, %v5321_v53  ;;  %v1734_v29 = vrot.slane %v1709_v48, %v5325_v9 }
 0x3d6   :  { %v1751_v57 = vsub.f32 %v1634_v63, %v1714_v49  ;;  %v1752_v58 = vsub.f32 %v1636_v10, %v1718_v50  ;;  %v1753_v59 = vsub.f32 %v1638_v21, %v1722_v52  ;;  %v1754_v15 = vsub.f32 %v1640_v7, %v1726_v56 }
 0x3d7   :  { %v1755_v30 = vsub.f32 %v1642_v28, %v1730_v4  ;;  %v5333_v21 = vsub.s32 7, %v5099_v20  ;;  %v1738_v10 = vrot.slane %v1709_v48, %v5329_v26  ;;  %v1756_v16 = vsub.f32 %v1644_v31, %v1734_v29 }
 0x3d8   :  { %v1759_v61 = vmul.f32 1.442695, %v1751_v57  ;;  %v1761_v1 = vmul.f32 1.442695, %v1752_v58  ;;  %v1763_v17 = vmul.f32 1.442695, %v1753_v59 }
 0x3d9   :  { %v1765_v63 = vmul.f32 1.442695, %v1754_v15  ;;  %5778 = vst [vmem:[#allocation22_spill] sm:$0xff] %v5333_v21  ;;  %v1767_v33 = vmul.f32 1.442695, %v1755_v30  ;;  %v1742_v7 = vrot.slane %v1709_v48, %v5333_v21  ;;  %v1757_v36 = vsub.f32 %v1646_v34, %v1738_v10 }
 0x3da   :  { %4254 = vpow2.f32 %v1759_v61  ;;  %v1769_v37 = vmul.f32 1.442695, %v1756_v16 }
 0x3db   :  { %4256 = vpow2.f32 %v1761_v1  ;;  %v1758_v28 = vsub.f32 %v1648_v38, %v1742_v7  ;;  %v1771_v45 = vmul.f32 1.442695, %v1757_v36 }
 0x3dc   :  { %4258 = vpow2.f32 %v1763_v17 }
 0x3dd   :  { %4260 = vpow2.f32 %v1765_v63  ;;  %v1773_v20 = vmul.f32 1.442695, %v1758_v28 }
 0x3de   :  { %4262 = vpow2.f32 %v1767_v33 }
 0x3df   :  { %4264 = vpow2.f32 %v1769_v37 }
 0x3e0   :  { %4266 = vpow2.f32 %v1771_v45 }
 0x3e1   :  { %4268 = vpow2.f32 %v1773_v20 }
 0x3e7   :  { %v4255_v41 = vpop.eup %4254 }
 0x3e8   :  { %v4257_v44 = vpop.eup %4256  ;;  %1784 = vperm.xlu1 %3980, %v4255_v41  }
 0x3e9   :  { %1787 = vperm.xlu0 %3981, %v4257_v44   ;;  %v4259_v46 = vpop.eup %4258 }
 0x3ea   :  { %v4261_v49 = vpop.eup %4260 }
 0x3eb   :  { %v4263_v31 = vpop.eup %4262 }
 0x3ec   :  { %1790 = vperm.xlu1 %3980, %v4259_v46   ;;  %v4265_v48 = vpop.eup %4264 }
 0x3ed   :  { %v4267_v34 = vpop.eup %4266 }
 0x3ee   :  { %v4269_v50 = vpop.eup %4268 }
 0x3f0   :  { %1793 = vperm.xlu1 %3980, %v4261_v49  }
 0x3f4   :  { %1796 = vperm.xlu1 %3980, %v4263_v31  }
 0x3f8   :  { %1799 = vperm.xlu1 %3980, %v4265_v48  }
 0x3fc   :  { %1802 = vperm.xlu1 %3980, %v4267_v34  }
 0x400   :  { %1805 = vperm.xlu1 %3980, %v4269_v50  }
 0x463   :  { %v1785_v52 = vpop.permute.xlu1 %1784 }
 0x464   :  { %v1788_v58 = vpop.permute.xlu0 %1787  ;;  %v1810_v1 = vrot.slane %v1785_v52, %v5299_v3 }
 0x465   :  { %v1814_v61 = vrot.slane %v1788_v58, %v5299_v3 }
 0x467   :  { %v1791_v56 = vpop.permute.xlu1 %1790  ;;  %v1839_v30 = vsel %vm1691_vm0, %v1814_v61, %v1810_v1 }
 0x468   :  { %v1818_v4 = vrot.slane %v1791_v56, %v5299_v3 }
 0x46a   :  { %v1840_v10 = vsel %vm1693_vm1, %v1818_v4, %v1839_v30 }
 0x46b   :  { %v1794_v38 = vpop.permute.xlu1 %1793 }
 0x46c   :  { %v1822_v15 = vrot.slane %v1794_v38, %v5299_v3 }
 0x46e   :  { %v1841_v33 = vsel %vm1695_vm2, %v1822_v15, %v1840_v10 }
 0x46f   :  { %v1797_v57 = vpop.permute.xlu1 %1796 }
 0x470   :  { %v1826_v17 = vrot.slane %v1797_v57, %v5299_v3 }
 0x472   :  { %v1842_v7 = vsel %vm1697_vm3, %v1826_v17, %v1841_v33 }
 0x473   :  { %v1800_v59 = vpop.permute.xlu1 %1799 }
 0x474   :  { %v1830_v63 = vrot.slane %v1800_v59, %v5299_v3 }
 0x476   :  { %v1843_v37 = vsel %vm1699_vm4, %v1830_v63, %v1842_v7 }
 0x477   :  { %v1803_v29 = vpop.permute.xlu1 %1802 }
 0x478   :  { %v1834_v16 = vrot.slane %v1803_v29, %v5299_v3 }
 0x47a   :  { %v1844_v45 = vsel %vm1701_vm5, %v1834_v16, %v1843_v37 }
 0x47b   :  { %v1806_v36 = vpop.permute.xlu1 %1805 }
 0x47c   :  { %v1838_v28 = vrot.slane %v1806_v36, %v5299_v3 }
 0x47e   :  { %v1845_v20 = vsel %vm1703_vm6, %v1838_v28, %v1844_v45 }
 0x47f   :  { %v1847_v52 = vsel %vm1706_vm7, %v1845_v20, 0.0 }
 0x480   :  { %1848 = vadd.xlane.f32.xlu1 %v1847_v52 }
 0x509   :  { %v1849_v56 = vpop.xlane.xlu1 %1848 }
 0x50a   :  { %4270 = vrcp.f32 %v1849_v56 }
 0x517   :  { %v4271_v38 = vpop.eup %4270 }
 0x518   :  { %v1855_v57 = vrot.slane %v4271_v38, %v5774_v12  ;;  %v1859_v59 = vrot.slane %v4271_v38, %v5775_v22  ;;  %v1863_v1 = vrot.slane %v4271_v38, %v5119_v11  ;;  %v1867_v15 = vrot.slane %v4271_v38, %v5116_v5 }
 0x519   :  { %v1871_v29 = vrot.slane %v4271_v38, %v5321_v53  ;;  %v1875_v63 = vrot.slane %v4271_v38, %v5325_v9  ;;  %v1879_v10 = vrot.slane %v4271_v38, %v5329_v26  ;;  %v1883_v16 = vrot.slane %v4271_v38, %v5333_v21 }
 0x51a   :  { %v1892_v58 = vmul.f32 %v4255_v41, %v1855_v57  ;;  %v1893_v61 = vmul.f32 %v4257_v44, %v1859_v59  ;;  %v1894_v4 = vmul.f32 %v4259_v46, %v1863_v1  ;;  %v1895_v17 = vmul.f32 %v4261_v49, %v1867_v15 }
 0x51b   :  { %v1896_v30 = vmul.f32 %v4263_v31, %v1871_v29  ;;  %v1897_v41 = vmul.f32 %v4265_v48, %v1875_v63  ;;  %v1898_v44 = vmul.f32 %v4267_v34, %v1879_v10  ;;  %v1899_v46 = vmul.f32 %v4269_v50, %v1883_v16 }
 0x51c   :  { %1902 = vperm.xlu0 %3981, %v1892_v58  }
 0x520   :  { %1907 = vperm.xlu0 %3981, %v1893_v61  }
 0x524   :  { %1912 = vperm.xlu0 %3981, %v1894_v4  }
 0x528   :  { %1917 = vperm.xlu0 %3981, %v1895_v17  }
 0x52c   :  { %1922 = vperm.xlu0 %3981, %v1896_v30  }
 0x530   :  { %1927 = vperm.xlu0 %3981, %v1897_v41  }
 0x534   :  { %1932 = vperm.xlu0 %3981, %v1898_v44  }
 0x538   :  { %1937 = vperm.xlu0 %3981, %v1899_v46  }
 0x597   :  { %v1903_v33 = vpop.permute.xlu0 %1902 }
 0x598   :  { %v1940_v37 = vmul.f32 %v5260_v0, %v1903_v33 }
 0x59a   :  { %v1948_v34 = vrot.slane %v1940_v37, 4 }
 0x59b   :  { %v1908_v7 = vpop.permute.xlu0 %1907 }
 0x59c   :  { %v1941_v36 = vmul.f32 %v5268_v24, %v1908_v7  ;;  %v1949_v58 = vadd.f32 %v1948_v34, %v1940_v37 }
 0x59e   :  { %v1954_v48 = vrot.slane %v1941_v36, 4  ;;  %v1950_v30 = vrot.slane %v1949_v58, 2 }
 0x59f   :  { %v1913_v49 = vpop.permute.xlu0 %1912 }
 0x5a0   :  { %v1942_v31 = vmul.f32 %v5265_v6, %v1913_v49  ;;  %v1955_v38 = vadd.f32 %v1954_v48, %v1941_v36  ;;  %v1951_v49 = vadd.f32 %v1950_v30, %v1949_v58 }
 0x5a2   :  { %v1960_v20 = vrot.slane %v1942_v31, 4  ;;  %v1956_v4 = vrot.slane %v1955_v38, 2 }
 0x5a3   :  { %v1918_v28 = vpop.permute.xlu0 %1917 }
 0x5a4   :  { %v1943_v45 = vmul.f32 %v5275_v35, %v1918_v28  ;;  %v1961_v57 = vadd.f32 %v1960_v20, %v1942_v31  ;;  %v1957_v16 = vadd.f32 %v1956_v4, %v1955_v38 }
 0x5a6   :  { %v1966_v52 = vrot.slane %v1943_v45, 4  ;;  %v1962_v29 = vrot.slane %v1961_v57, 2 }
 0x5a7   :  { %v1923_v56 = vpop.permute.xlu0 %1922 }
 0x5a8   :  { %v1944_v50 = vmul.f32 %v5280_v40, %v1923_v56  ;;  %v1967_v59 = vadd.f32 %v1966_v52, %v1943_v45  ;;  %v1963_v7 = vadd.f32 %v1962_v29, %v1961_v57  ;;  %v1958_v45 = vrot.slane %v1957_v16, 1 }
 0x5aa   :  { %v1972_v61 = vrot.slane %v1944_v50, 4  ;;  %v1968_v63 = vrot.slane %v1967_v59, 2  ;;  %v1964_v56 = vrot.slane %v1963_v7, 1 }
 0x5ab   :  { %v1928_v1 = vpop.permute.xlu0 %1927 }
 0x5ac   :  { %v1973_v15 = vadd.f32 %v1972_v61, %v1944_v50  ;;  %v1945_v17 = vmul.f32 %v5284_v47, %v1928_v1  ;;  %v1969_v36 = vadd.f32 %v1968_v63, %v1967_v59  ;;  %v1952_v50 = vrot.slane %v1951_v49, 1 }
 0x5ad   :  { %v1965_v59 = vadd.f32 %v1964_v56, %v1963_v7  ;;  %v4396_v56 = vld [vmem:[#allocation13 + $0xcc] ss:$16 sps:$4 sm:$0xff]  }
 0x5ae   :  { %v1978_v41 = vrot.slane %v1945_v17, 4  ;;  %v1974_v10 = vrot.slane %v1973_v15, 2  ;;  %v1970_v61 = vrot.slane %v1969_v36, 1  ;;  %v1953_v29 = vadd.f32 %v1952_v50, %v1951_v49  ;;  %v4398_v50 = vld [vmem:[#allocation13 + $0xc8] ss:$16 sps:$4 sm:$0xff]  }
 0x5af   :  { %v1933_v44 = vpop.permute.xlu0 %1932 }
 0x5b0   :  { %v1979_v46 = vadd.f32 %v1978_v41, %v1945_v17  ;;  %v1946_v33 = vmul.f32 %v5288_v51, %v1933_v44  ;;  %v1975_v28 = vadd.f32 %v1974_v10, %v1973_v15  ;;  %v1959_v17 = vadd.f32 %v1958_v45, %v1957_v16 }
 0x5b1   :  { %v1971_v30 = vadd.f32 %v1970_v61, %v1969_v36  ;;  %v4399_v61 = vld [vmem:[#allocation13 + $0xa4] ss:$16 sps:$4 sm:$0xff]  }
 0x5b2   :  { %v1980_v31 = vrot.slane %v1979_v46, 2  ;;  %v1984_v37 = vrot.slane %v1946_v33, 4  ;;  %v1976_v4 = vrot.slane %v1975_v28, 1  ;;  %v2005_v44 = vsel %vm1691_vm0, %v1959_v17, %v1953_v29  ;;  %v4403_v17 = vld [vmem:[#allocation13 + $0x84] ss:$16 sps:$4 sm:$0xff]  }
 0x5b3   :  { %v1938_v48 = vpop.permute.xlu0 %1937  ;;  %v4408_v29 = vld [vmem:[#allocation13 + $0x6c] ss:$16 sps:$4 sm:$0xff]  }
 0x5b4   :  { %v1981_v20 = vadd.f32 %v1980_v31, %v1979_v46  ;;  %v1985_v34 = vadd.f32 %v1984_v37, %v1946_v33  ;;  %v1947_v52 = vmul.f32 %v5292_v54, %v1938_v48  ;;  %v1977_v10 = vadd.f32 %v1976_v4, %v1975_v28  ;;  %v4402_v4 = vld [vmem:[#allocation13 + $0xa8] ss:$16 sps:$4 sm:$0xff]  }
 0x5b5   :  { %v2006_v31 = vsel %vm1693_vm1, %v1965_v59, %v2005_v44  ;;  %v4407_v59 = vld [vmem:[#allocation13 + $0x64] ss:$16 sps:$4 sm:$0xff]   ;;  %v4413_v44 = vld [vmem:[#allocation13 + $0x40] ss:$16 sps:$4 sm:$0xff]  }
 0x5b6   :  { %v1986_v1 = vrot.slane %v1985_v34, 2  ;;  %v1990_v38 = vrot.slane %v1947_v52, 4  ;;  %v1982_v41 = vrot.slane %v1981_v20, 1  ;;  %v2007_v48 = vsel %vm1695_vm2, %v1971_v30, %v2006_v31  ;;  %v4409_v30 = vld [vmem:[#allocation13 + $0x60] ss:$16 sps:$4 sm:$0xff]  }
 0x5b7   :  { %v2008_v16 = vsel %vm1697_vm3, %v1977_v10, %v2007_v48  ;;  %v4412_v10 = vld [vmem:[#allocation13 + $0x4c] ss:$16 sps:$4 sm:$0xff]   ;;  %v4418_v48 = vld [vmem:[#allocation13 + $0x28] ss:$16 sps:$4 sm:$0xff]  }
 0x5b8   :  { %v1987_v57 = vadd.f32 %v1986_v1, %v1985_v34  ;;  %v1991_v58 = vadd.f32 %v1990_v38, %v1947_v52  ;;  %v1983_v46 = vadd.f32 %v1982_v41, %v1981_v20  ;;  %v5378_v20 = vpack.c.bf16 %v5254_v62, %v5254_v62  ;;  %v4393_v34 = vld [vmem:[#allocation13 + $0xe0] ss:$16 sps:$4 sm:$0xff]   ;;  %v4394_v52 = vld [vmem:[#allocation13 + $0xe8] ss:$16 sps:$4 sm:$0xff]   ;;  %v4400_v1 = vld [vmem:[#allocation13 + $0xac] ss:$16 sps:$4 sm:$0xff]  }
 0x5b9   :  { %v4397_v62 = vld [vmem:[#allocation13 + $0xc0] ss:$16 sps:$4 sm:$0xff]   ;;  %v4404_v41 = vld [vmem:[#allocation13 + $0x8c] ss:$16 sps:$4 sm:$0xff]  }
 0x5ba   :  { %v1988_v15 = vrot.slane %v1987_v57, 1  ;;  %v1992_v63 = vrot.slane %v1991_v58, 2  ;;  %v2009_v45 = vsel %vm1699_vm4, %v1983_v46, %v2008_v16  ;;  %v4401_v38 = vld [vmem:[#allocation13 + $0xa0] ss:$16 sps:$4 sm:$0xff]   ;;  %v4414_v46 = vld [vmem:[#allocation13 + $0x48] ss:$16 sps:$4 sm:$0xff]  }
 0x5bb   :  { %v4416_v31 = vld [vmem:[#allocation13 + $0x2c] ss:$16 sps:$4 sm:$0xff]   ;;  %v4419_v16 = vld [vmem:[#allocation13 + $0x4] ss:$16 sps:$4 sm:$0xff]  }
 0x5bc   :  { %v1993_v33 = vadd.f32 %v1992_v63, %v1991_v58  ;;  %v1989_v37 = vadd.f32 %v1988_v15, %v1987_v57  ;;  %v4405_v57 = vld [vmem:[#allocation13 + $0x80] ss:$16 sps:$4 sm:$0xff]   ;;  %v4406_v58 = vld [vmem:[#allocation13 + $0x88] ss:$16 sps:$4 sm:$0xff]   ;;  %v4411_v63 = vld [vmem:[#allocation13 + $0x44] ss:$16 sps:$4 sm:$0xff]  }
 0x5bd   :  { %v4410_v15 = vld [vmem:[#allocation13 + $0x68] ss:$16 sps:$4 sm:$0xff]  }
 0x5be   :  { %v1994_v21 = vrot.slane %v1993_v33, 1  ;;  %v2010_v49 = vsel %vm1701_vm5, %v1989_v37, %v2009_v45  ;;  %v4417_v37 = vld [vmem:[#allocation13 + $0x20] ss:$16 sps:$4 sm:$0xff]   ;;  %v4420_v45 = vld [vmem:[#allocation13 + $0xc] ss:$16 sps:$4 sm:$0xff]  }
 0x5c0   :  { %v1995_v7 = vadd.f32 %v1994_v21, %v1993_v33  ;;  %v4395_v21 = vld [vmem:[#allocation13 + $0xc4] ss:$16 sps:$4 sm:$0xff]  }
 0x5c1   :  { %v4415_v33 = vld [vmem:[#allocation13 + $0x24] ss:$16 sps:$4 sm:$0xff]  }
 0x5c2   :  { %v2011_v36 = vsel %vm1703_vm6, %v1995_v7, %v2010_v49  ;;  %v4421_v7 = vld [vmem:[#allocation13] ss:$16 sps:$4 sm:$0xff]   ;;  %v4422_v49 = vld [vmem:[#allocation13 + $0x8] ss:$16 sps:$4 sm:$0xff]  }
 0x5c3   :  { %v2017_v28 = vpack.c.bf16 %v2011_v36, %v2011_v36  ;;  %v4423_v36 = vld [vmem:[#allocation12 + $0xe4] ss:$16 sps:$4 sm:$0xff]  }
 0x5c5   :  { %2134 = vmatprep.mubr.bf16.mxu0 %v2017_v28  ;;  %2175 = vmatprep.mubr.bf16.mxu1 %v2017_v28  ;;  %v4424_v28 = vld [vmem:[#allocation12 + $0xec] ss:$16 sps:$4 sm:$0xff]  }
 0x5c6   :  { %2135 = vmatmul.mubr.bf16.vlgmr.msra.gmra.mxu0 %v5378_v20  ;;  %2176 = vmatmul.mubr.bf16.vlgmr.msra.gmra.mxu1 %v5378_v20 }
 0x5c7   :  { %2219 = vmatpush1.bf16.msra.mxu0 %v4393_v34  ;;  %2260 = vmatpush1.bf16.msra.mxu1 %v4394_v52  ;;  %v4425_v34 = vld [vmem:[#allocation12 + $0xe0] ss:$16 sps:$4 sm:$0xff]   ;;  %v4426_v52 = vld [vmem:[#allocation12 + $0xe8] ss:$16 sps:$4 sm:$0xff]  }
 0x5c8   :  { %2220 = vmatprep.subr.bf16.mxu0 %v4395_v21  ;;  %2261 = vmatprep.subr.bf16.mxu1 %v4396_v56  ;;  %v4427_v21 = vld [vmem:[#allocation12 + $0xc4] ss:$16 sps:$4 sm:$0xff]   ;;  %v4428_v56 = vld [vmem:[#allocation12 + $0xcc] ss:$16 sps:$4 sm:$0xff]  }
 0x5c9   :  { %2250 = vmatprep.mubr.bf16.mxu0 %v5733_v18  ;;  %2291 = vmatprep.mubr.bf16.mxu1 %v5733_v18 }
 0x5cb   :  { %2221 = vmatpush1.bf16.msra.mxu0 %v4397_v62  ;;  %2262 = vmatpush1.bf16.msra.mxu1 %v4398_v50  ;;  %v4429_v62 = vld [vmem:[#allocation12 + $0xc0] ss:$16 sps:$4 sm:$0xff]   ;;  %v4430_v50 = vld [vmem:[#allocation12 + $0xc8] ss:$16 sps:$4 sm:$0xff]  }
 0x5cc   :  { %2222 = vmatprep.subr.bf16.mxu0 %v4399_v61  ;;  %2263 = vmatprep.subr.bf16.mxu1 %v4400_v1  ;;  %v4431_v61 = vld [vmem:[#allocation12 + $0xa4] ss:$16 sps:$4 sm:$0xff]   ;;  %v4432_v1 = vld [vmem:[#allocation12 + $0xac] ss:$16 sps:$4 sm:$0xff]  }
 0x5cf   :  { %2223 = vmatpush1.bf16.msra.mxu0 %v4401_v38  ;;  %2264 = vmatpush1.bf16.msra.mxu1 %v4402_v4  ;;  %v4434_v38 = vld [vmem:[#allocation12 + $0xa8] ss:$16 sps:$4 sm:$0xff]   ;;  %v4435_v4 = vld [vmem:[#allocation12 + $0x84] ss:$16 sps:$4 sm:$0xff]  }
 0x5d0   :  { %2224 = vmatprep.subr.bf16.mxu0 %v4403_v17  ;;  %2265 = vmatprep.subr.bf16.mxu1 %v4404_v41  ;;  %v4436_v17 = vld [vmem:[#allocation12 + $0x8c] ss:$16 sps:$4 sm:$0xff]   ;;  %v4437_v41 = vld [vmem:[#allocation12 + $0x80] ss:$16 sps:$4 sm:$0xff]  }
 0x5d3   :  { %2225 = vmatpush1.bf16.msra.mxu0 %v4405_v57  ;;  %2266 = vmatpush1.bf16.msra.mxu1 %v4406_v58  ;;  %v4438_v57 = vld [vmem:[#allocation12 + $0x88] ss:$16 sps:$4 sm:$0xff]   ;;  %v4439_v58 = vld [vmem:[#allocation12 + $0x64] ss:$16 sps:$4 sm:$0xff]  }
 0x5d4   :  { %2226 = vmatprep.subr.bf16.mxu0 %v4407_v59  ;;  %2267 = vmatprep.subr.bf16.mxu1 %v4408_v29  ;;  %v4440_v59 = vld [vmem:[#allocation12 + $0x6c] ss:$16 sps:$4 sm:$0xff]   ;;  %v4441_v29 = vld [vmem:[#allocation12 + $0x60] ss:$16 sps:$4 sm:$0xff]  }
 0x5d7   :  { %2227 = vmatpush1.bf16.msra.mxu0 %v4409_v30  ;;  %2268 = vmatpush1.bf16.msra.mxu1 %v4410_v15  ;;  %v4442_v30 = vld [vmem:[#allocation12 + $0x68] ss:$16 sps:$4 sm:$0xff]   ;;  %v4443_v15 = vld [vmem:[#allocation12 + $0x44] ss:$16 sps:$4 sm:$0xff]  }
 0x5d8   :  { %2228 = vmatprep.subr.bf16.mxu0 %v4411_v63  ;;  %2269 = vmatprep.subr.bf16.mxu1 %v4412_v10  ;;  %v4444_v63 = vld [vmem:[#allocation12 + $0x4c] ss:$16 sps:$4 sm:$0xff]   ;;  %v4445_v10 = vld [vmem:[#allocation12 + $0x40] ss:$16 sps:$4 sm:$0xff]  }
 0x5db   :  { %2229 = vmatpush1.bf16.msra.mxu0 %v4413_v44  ;;  %2270 = vmatpush1.bf16.msra.mxu1 %v4414_v46  ;;  %v4446_v44 = vld [vmem:[#allocation12 + $0x48] ss:$16 sps:$4 sm:$0xff]   ;;  %v4447_v46 = vld [vmem:[#allocation12 + $0x24] ss:$16 sps:$4 sm:$0xff]  }
 0x5dc   :  { %2230 = vmatprep.subr.bf16.mxu0 %v4415_v33  ;;  %2271 = vmatprep.subr.bf16.mxu1 %v4416_v31  ;;  %v4448_v33 = vld [vmem:[#allocation12 + $0x2c] ss:$16 sps:$4 sm:$0xff]   ;;  %v4449_v31 = vld [vmem:[#allocation12 + $0x20] ss:$16 sps:$4 sm:$0xff]  }
 0x5df   :  { %2231 = vmatpush1.bf16.msra.mxu0 %v4417_v37  ;;  %2272 = vmatpush1.bf16.msra.mxu1 %v4418_v48  ;;  %v4450_v37 = vld [vmem:[#allocation12 + $0x28] ss:$16 sps:$4 sm:$0xff]   ;;  %v4451_v48 = vld [vmem:[#allocation12 + $0x4] ss:$16 sps:$4 sm:$0xff]  }
 0x5e0   :  { %2232 = vmatprep.subr.bf16.mxu0 %v4419_v16  ;;  %2273 = vmatprep.subr.bf16.mxu1 %v4420_v45  ;;  %v4452_v16 = vld [vmem:[#allocation12 + $0xc] ss:$16 sps:$4 sm:$0xff]   ;;  %v4453_v45 = vld [vmem:[#allocation12] ss:$16 sps:$4 sm:$0xff]  }
 0x5e3   :  { %2233 = vmatpush1.bf16.msra.mxu0 %v4421_v7  ;;  %2274 = vmatpush1.bf16.msra.mxu1 %v4422_v49  ;;  %v4454_v7 = vld [vmem:[#allocation12 + $0x8] ss:$16 sps:$4 sm:$0xff]   ;;  %v4455_v49 = vld [vmem:[#allocation9 + $0xe4] ss:$16 sps:$4 sm:$0xff]  }
 0x5e4   :  { %2300 = vmatprep.subr.bf16.mxu0 %v4423_v36  ;;  %2341 = vmatprep.subr.bf16.mxu1 %v4424_v28  ;;  %v4456_v36 = vld [vmem:[#allocation9 + $0xec] ss:$16 sps:$4 sm:$0xff]  }
 0x5e6   :  { %2251 = vmatmul.mubr.bf16.vlgmr.msra.gmra.mxu0 %v5378_v20  ;;  %2292 = vmatmul.mubr.bf16.vlgmr.msra.gmra.mxu1 %v5378_v20  ;;  %v4433_v20 = vld [vmem:[#allocation12 + $0xa0] ss:$16 sps:$4 sm:$0xff]  }
 0x5e7   :  { %2301 = vmatpush1.bf16.msra.mxu0 %v4425_v34  ;;  %2342 = vmatpush1.bf16.msra.mxu1 %v4426_v52 }
 0x5e8   :  { %2302 = vmatprep.subr.bf16.mxu0 %v4427_v21  ;;  %2343 = vmatprep.subr.bf16.mxu1 %v4428_v56 }
 0x5e9   :  { %2332 = vmatprep.mubr.bf16.mxu0 %v5733_v18  ;;  %2373 = vmatprep.mubr.bf16.mxu1 %v5733_v18 }
 0x5eb   :  { %2303 = vmatpush1.bf16.msra.mxu0 %v4429_v62  ;;  %2344 = vmatpush1.bf16.msra.mxu1 %v4430_v50 }
 0x5ec   :  { %2304 = vmatprep.subr.bf16.mxu0 %v4431_v61  ;;  %2345 = vmatprep.subr.bf16.mxu1 %v4432_v1 }
 0x5ef   :  { %2305 = vmatpush1.bf16.msra.mxu0 %v4433_v20  ;;  %2346 = vmatpush1.bf16.msra.mxu1 %v4434_v38  ;;  %v5779_v38 = vld [vmem:[#allocation58_spill] sm:$0xff] }
 0x5f0   :  { %2306 = vmatprep.subr.bf16.mxu0 %v4435_v4  ;;  %2347 = vmatprep.subr.bf16.mxu1 %v4436_v17 }
 0x5f3   :  { %2307 = vmatpush1.bf16.msra.mxu0 %v4437_v41  ;;  %2348 = vmatpush1.bf16.msra.mxu1 %v4438_v57 }
 0x5f4   :  { %2308 = vmatprep.subr.bf16.mxu0 %v4439_v58  ;;  %2349 = vmatprep.subr.bf16.mxu1 %v4440_v59 }
 0x5f7   :  { %2309 = vmatpush1.bf16.msra.mxu0 %v4441_v29  ;;  %2350 = vmatpush1.bf16.msra.mxu1 %v4442_v30 }
 0x5f8   :  { %2310 = vmatprep.subr.bf16.mxu0 %v4443_v15  ;;  %2351 = vmatprep.subr.bf16.mxu1 %v4444_v63 }
 0x5fb   :  { %2311 = vmatpush1.bf16.msra.mxu0 %v4445_v10  ;;  %2352 = vmatpush1.bf16.msra.mxu1 %v4446_v44 }
 0x5fc   :  { %2312 = vmatprep.subr.bf16.mxu0 %v4447_v46  ;;  %2353 = vmatprep.subr.bf16.mxu1 %v4448_v33 }
 0x5ff   :  { %2313 = vmatpush1.bf16.msra.mxu0 %v4449_v31  ;;  %2354 = vmatpush1.bf16.msra.mxu1 %v4450_v37 }
 0x600   :  { %2314 = vmatprep.subr.bf16.mxu0 %v4451_v48  ;;  %2355 = vmatprep.subr.bf16.mxu1 %v4452_v16 }
 0x603   :  { %2315 = vmatpush1.bf16.msra.mxu0 %v4453_v45  ;;  %2356 = vmatpush1.bf16.msra.mxu1 %v4454_v7 }
 0x604   :  { %2888 = vmatprep.subr.bf16.mxu0 %v4455_v49  ;;  %2929 = vmatprep.subr.bf16.mxu1 %v4456_v36 }
 0x686   :  { %v2136_v28 = vpop.f32.mrf.mxu0  ;;  %v2177_v34 = vpop.f32.mrf.mxu1 }
 0x687   :  { %v2137_v52 = vadd.f32 %v2136_v28, %v5240_v27  ;;  %v2178_v59 = vadd.f32 %v2177_v34, %v5242_v42 }
 0x688   :  { %v2138_v21 = vpop.f32.mrf.mxu0  ;;  %v2179_v56 = vpop.f32.mrf.mxu1 }
 0x689   :  { %v2184_v62 = vadd.f32 %v2137_v52, %v5108_v2  ;;  %v2139_v50 = vadd.f32 %v2138_v21, %v5244_v43  ;;  %v2180_v58 = vadd.f32 %v2179_v56, %v5246_v25  ;;  %v2186_v43 = vadd.f32 %v2178_v59, %v5125_v8  ;;  %v4467_v59 = vld [vmem:[#allocation9 + $0x84] ss:$16 sps:$4 sm:$0xff]  }
 0x68a   :  { %v2140_v61 = vpop.f32.mrf.mxu0  ;;  %v2181_v1 = vpop.f32.mrf.mxu1 }
 0x68b   :  { %v3934_v20 = vmul.f32 -1.442695, %v2184_v62  ;;  %v2185_v4 = vadd.f32 %v2139_v50, %v5779_v38  ;;  %v2187_v27 = vadd.f32 %v2180_v58, %v5122_v23  ;;  %v4457_v61 = vld [vmem:[#allocation9 + $0xe0] ss:$16 sps:$4 sm:$0xff]   ;;  %v4458_v1 = vld [vmem:[#allocation9 + $0xe8] ss:$16 sps:$4 sm:$0xff]  }
 0x68c   :  { %v2141_v17 = vpop.f32.mrf.mxu0  ;;  %v2182_v41 = vpop.f32.mrf.mxu1  ;;  %v4465_v58 = vld [vmem:[#allocation9 + $0xa0] ss:$16 sps:$4 sm:$0xff]  }
 0x68d   :  { %4272 = vpow2.f32 %v3934_v20  ;;  %v3935_v57 = vmul.f32 -1.442695, %v2185_v4  ;;  %v3936_v29 = vmul.f32 -1.442695, %v2187_v27  ;;  %v4459_v20 = vld [vmem:[#allocation9 + $0xc4] ss:$16 sps:$4 sm:$0xff]  }
 0x68e   :  { %v4461_v4 = vld [vmem:[#allocation9 + $0xc0] ss:$16 sps:$4 sm:$0xff]   ;;  %v4462_v17 = vld [vmem:[#allocation9 + $0xc8] ss:$16 sps:$4 sm:$0xff]   ;;  %v4463_v41 = vld [vmem:[#allocation9 + $0xa4] ss:$16 sps:$4 sm:$0xff]  }
 0x68f   :  { %4274 = vpow2.f32 %v3935_v57  ;;  %v4464_v57 = vld [vmem:[#allocation9 + $0xac] ss:$16 sps:$4 sm:$0xff]   ;;  %v4466_v27 = vld [vmem:[#allocation9 + $0xa8] ss:$16 sps:$4 sm:$0xff]  }
 0x690   :  { %4276 = vpow2.f32 %v3936_v29  ;;  %v4468_v29 = vld [vmem:[#allocation9 + $0x8c] ss:$16 sps:$4 sm:$0xff]  }
 0x69a   :  { %v4273_v30 = vpop.eup %4272 }
 0x69b   :  { %v2191_v15 = vadd.f32 1.0, %v4273_v30  ;;  %v4469_v30 = vld [vmem:[#allocation9 + $0x80] ss:$16 sps:$4 sm:$0xff]  }
 0x69c   :  { %v4275_v63 = vpop.eup %4274 }
 0x69d   :  { %4278 = vrcp.f32 %v2191_v15  ;;  %v2197_v10 = vadd.f32 1.0, %v4275_v63  ;;  %v4277_v42 = vpop.eup %4276  ;;  %v4471_v15 = vld [vmem:[#allocation9 + $0x64] ss:$16 sps:$4 sm:$0xff]   ;;  %v4472_v63 = vld [vmem:[#allocation9 + $0x6c] ss:$16 sps:$4 sm:$0xff]  }
 0x69e   :  { %4280 = vtanh.f32 %v2186_v43  ;;  %v2204_v7 = vadd.f32 1.0, %v4277_v42  ;;  %v4470_v43 = vld [vmem:[#allocation9 + $0x88] ss:$16 sps:$4 sm:$0xff]  }
 0x69f   :  { %4282 = vrcp.f32 %v2197_v10  ;;  %v4473_v10 = vld [vmem:[#allocation9 + $0x60] ss:$16 sps:$4 sm:$0xff]   ;;  %v4474_v42 = vld [vmem:[#allocation9 + $0x68] ss:$16 sps:$4 sm:$0xff]  }
 0x6a0   :  { %4284 = vrcp.f32 %v2204_v7  ;;  %v4480_v7 = vld [vmem:[#allocation9 + $0x2c] ss:$16 sps:$4 sm:$0xff]  }
 0x6a6   :  { %v5396_v44 = vpop.f32.mrf.mxu0  ;;  %v5398_v46 = vpop.f32.mrf.mxu1 }
 0x6a8   :  { %v5400_v25 = vpop.f32.mrf.mxu0  ;;  %v5402_v33 = vpop.f32.mrf.mxu1 }
 0x6aa   :  { %v4279_v31 = vpop.eup %4278  ;;  %v2256_v37 = vpop.f32.mrf.mxu0 }
 0x6ab   :  { %v2297_v48 = vpop.f32.mrf.mxu1  ;;  %v4281_v16 = vpop.eup %4280  ;;  %v4476_v37 = vld [vmem:[#allocation9 + $0x4c] ss:$16 sps:$4 sm:$0xff]  }
 0x6ac   :  { %v4283_v45 = vpop.eup %4282  ;;  %v2257_v49 = vpop.f32.mrf.mxu0  ;;  %v2209_v28 = vmul.f32 %v4281_v16, %v4279_v31  ;;  %v4475_v31 = vld [vmem:[#allocation9 + $0x44] ss:$16 sps:$4 sm:$0xff]   ;;  %v4477_v48 = vld [vmem:[#allocation9 + $0x40] ss:$16 sps:$4 sm:$0xff]   ;;  %v4478_v16 = vld [vmem:[#allocation9 + $0x48] ss:$16 sps:$4 sm:$0xff]  }
 0x6ad   :  { %v2298_v36 = vpop.f32.mrf.mxu1  ;;  %v2208_v34 = vmul.f32 %v4283_v45, %v5129_v14  ;;  %v4285_v21 = vpop.eup %4284  ;;  %v4460_v14 = vld [vmem:[#allocation9 + $0xcc] ss:$16 sps:$4 sm:$0xff]   ;;  %v4479_v45 = vld [vmem:[#allocation9 + $0x24] ss:$16 sps:$4 sm:$0xff]   ;;  %v4481_v49 = vld [vmem:[#allocation9 + $0x20] ss:$16 sps:$4 sm:$0xff]  }
 0x6ae   :  { %v4482_v36 = vld [vmem:[#allocation9 + $0x28] ss:$16 sps:$4 sm:$0xff]  }
 0x6af   :  { %v5405_v52 = vadd.f32 %v2209_v28, %v2208_v34  ;;  %v4483_v28 = vld [vmem:[#allocation9 + $0x4] ss:$16 sps:$4 sm:$0xff]   ;;  %v4484_v34 = vld [vmem:[#allocation9 + $0xc] ss:$16 sps:$4 sm:$0xff]  }
 0x6b1   :  { %4286 = vtanh.f32 %v5405_v52 }
 0x6be   :  { %v4287_v56 = vpop.eup %4286 }
 0x6bf   :  { %v2212_v62 = vmul.f32 %v4287_v56, %v4285_v21  ;;  %v4485_v21 = vld [vmem:[#allocation9] ss:$16 sps:$4 sm:$0xff]   ;;  %v4486_v56 = vld [vmem:[#allocation9 + $0x8] ss:$16 sps:$4 sm:$0xff]  }
 0x6c1   :  { %v5408_v50 = vpack.c.bf16 %v2212_v62, %v2212_v62  ;;  %v4487_v62 = vld [vmem:[#allocation7 + $0xe4] ss:$16 sps:$4 sm:$0xff]  }
 0x6c3   :  { %2333 = vmatmul.mubr.bf16.vlgmr.msra.gmra.mxu0 %v5408_v50  ;;  %2374 = vmatmul.mubr.bf16.vlgmr.msra.gmra.mxu1 %v5408_v50 }
 0x6c4   :  { %2889 = vmatpush1.bf16.msra.mxu0 %v4457_v61  ;;  %2930 = vmatpush1.bf16.msra.mxu1 %v4458_v1  ;;  %v4488_v61 = vld [vmem:[#allocation7 + $0xec] ss:$16 sps:$4 sm:$0xff]   ;;  %v4489_v1 = vld [vmem:[#allocation7 + $0xe0] ss:$16 sps:$4 sm:$0xff]  }
 0x6c5   :  { %2890 = vmatprep.subr.bf16.mxu0 %v4459_v20  ;;  %2931 = vmatprep.subr.bf16.mxu1 %v4460_v14  ;;  %v4490_v20 = vld [vmem:[#allocation7 + $0xe8] ss:$16 sps:$4 sm:$0xff]   ;;  %v4491_v14 = vld [vmem:[#allocation7 + $0xc4] ss:$16 sps:$4 sm:$0xff]  }
 0x6c6   :  { %2920 = vmatprep.mubr.bf16.mxu0 %v5733_v18  ;;  %2961 = vmatprep.mubr.bf16.mxu1 %v5733_v18 }
 0x6c8   :  { %2891 = vmatpush1.bf16.msra.mxu0 %v4461_v4  ;;  %2932 = vmatpush1.bf16.msra.mxu1 %v4462_v17  ;;  %v4492_v4 = vld [vmem:[#allocation7 + $0xcc] ss:$16 sps:$4 sm:$0xff]   ;;  %v4493_v17 = vld [vmem:[#allocation7 + $0xc0] ss:$16 sps:$4 sm:$0xff]  }
 0x6c9   :  { %2892 = vmatprep.subr.bf16.mxu0 %v4463_v41  ;;  %2933 = vmatprep.subr.bf16.mxu1 %v4464_v57  ;;  %v4494_v41 = vld [vmem:[#allocation7 + $0xc8] ss:$16 sps:$4 sm:$0xff]   ;;  %v4495_v57 = vld [vmem:[#allocation7 + $0xa4] ss:$16 sps:$4 sm:$0xff]  }
 0x6cc   :  { %2893 = vmatpush1.bf16.msra.mxu0 %v4465_v58  ;;  %2934 = vmatpush1.bf16.msra.mxu1 %v4466_v27  ;;  %v4496_v58 = vld [vmem:[#allocation7 + $0xac] ss:$16 sps:$4 sm:$0xff]   ;;  %v4497_v27 = vld [vmem:[#allocation7 + $0xa0] ss:$16 sps:$4 sm:$0xff]  }
 0x6cd   :  { %2894 = vmatprep.subr.bf16.mxu0 %v4467_v59  ;;  %2935 = vmatprep.subr.bf16.mxu1 %v4468_v29  ;;  %v4498_v59 = vld [vmem:[#allocation7 + $0xa8] ss:$16 sps:$4 sm:$0xff]   ;;  %v4500_v29 = vld [vmem:[#allocation7 + $0x8c] ss:$16 sps:$4 sm:$0xff]  }
 0x6d0   :  { %2895 = vmatpush1.bf16.msra.mxu0 %v4469_v30  ;;  %2936 = vmatpush1.bf16.msra.mxu1 %v4470_v43  ;;  %v4501_v30 = vld [vmem:[#allocation7 + $0x80] ss:$16 sps:$4 sm:$0xff]   ;;  %v4502_v43 = vld [vmem:[#allocation7 + $0x88] ss:$16 sps:$4 sm:$0xff]  }
 0x6d1   :  { %2896 = vmatprep.subr.bf16.mxu0 %v4471_v15  ;;  %2937 = vmatprep.subr.bf16.mxu1 %v4472_v63  ;;  %v4503_v15 = vld [vmem:[#allocation7 + $0x64] ss:$16 sps:$4 sm:$0xff]   ;;  %v4504_v63 = vld [vmem:[#allocation7 + $0x6c] ss:$16 sps:$4 sm:$0xff]  }
 0x6d4   :  { %2897 = vmatpush1.bf16.msra.mxu0 %v4473_v10  ;;  %2938 = vmatpush1.bf16.msra.mxu1 %v4474_v42  ;;  %v4505_v10 = vld [vmem:[#allocation7 + $0x60] ss:$16 sps:$4 sm:$0xff]   ;;  %v4506_v42 = vld [vmem:[#allocation7 + $0x68] ss:$16 sps:$4 sm:$0xff]  }
 0x6d5   :  { %2898 = vmatprep.subr.bf16.mxu0 %v4475_v31  ;;  %2939 = vmatprep.subr.bf16.mxu1 %v4476_v37  ;;  %v4507_v31 = vld [vmem:[#allocation7 + $0x44] ss:$16 sps:$4 sm:$0xff]   ;;  %v4508_v37 = vld [vmem:[#allocation7 + $0x4c] ss:$16 sps:$4 sm:$0xff]  }
 0x6d8   :  { %2899 = vmatpush1.bf16.msra.mxu0 %v4477_v48  ;;  %2940 = vmatpush1.bf16.msra.mxu1 %v4478_v16  ;;  %v4509_v48 = vld [vmem:[#allocation7 + $0x40] ss:$16 sps:$4 sm:$0xff]   ;;  %v4510_v16 = vld [vmem:[#allocation7 + $0x48] ss:$16 sps:$4 sm:$0xff]  }
 0x6d9   :  { %2900 = vmatprep.subr.bf16.mxu0 %v4479_v45  ;;  %2941 = vmatprep.subr.bf16.mxu1 %v4480_v7  ;;  %v4511_v45 = vld [vmem:[#allocation7 + $0x24] ss:$16 sps:$4 sm:$0xff]   ;;  %v4512_v7 = vld [vmem:[#allocation7 + $0x2c] ss:$16 sps:$4 sm:$0xff]  }
 0x6dc   :  { %2901 = vmatpush1.bf16.msra.mxu0 %v4481_v49  ;;  %2942 = vmatpush1.bf16.msra.mxu1 %v4482_v36  ;;  %v4513_v49 = vld [vmem:[#allocation7 + $0x20] ss:$16 sps:$4 sm:$0xff]   ;;  %v4514_v36 = vld [vmem:[#allocation7 + $0x28] ss:$16 sps:$4 sm:$0xff]  }
 0x6dd   :  { %2902 = vmatprep.subr.bf16.mxu0 %v4483_v28  ;;  %2943 = vmatprep.subr.bf16.mxu1 %v4484_v34  ;;  %v4515_v28 = vld [vmem:[#allocation7 + $0x4] ss:$16 sps:$4 sm:$0xff]   ;;  %v4516_v34 = vld [vmem:[#allocation7 + $0xc] ss:$16 sps:$4 sm:$0xff]  }
 0x6e0   :  { %2903 = vmatpush1.bf16.msra.mxu0 %v4485_v21  ;;  %2944 = vmatpush1.bf16.msra.mxu1 %v4486_v56  ;;  %v4517_v21 = vld [vmem:[#allocation7] ss:$16 sps:$4 sm:$0xff]   ;;  %v4518_v56 = vld [vmem:[#allocation7 + $0x8] ss:$16 sps:$4 sm:$0xff]  }
 0x6e1   :  { %2970 = vmatprep.subr.bf16.mxu0 %v4487_v62  ;;  %3011 = vmatprep.subr.bf16.mxu1 %v4488_v61  ;;  %v4519_v62 = vld [vmem:[#allocation7 + $0x1e4] ss:$16 sps:$4 sm:$0xff]   ;;  %v4520_v61 = vld [vmem:[#allocation7 + $0x1ec] ss:$16 sps:$4 sm:$0xff]  }
 0x6e3   :  { %2921 = vmatmul.mubr.bf16.vlgmr.msra.gmra.mxu0 %v5408_v50  ;;  %2962 = vmatmul.mubr.bf16.vlgmr.msra.gmra.mxu1 %v5408_v50  ;;  %v4499_v50 = vld [vmem:[#allocation7 + $0x84] ss:$16 sps:$4 sm:$0xff]  }
 0x6e4   :  { %2971 = vmatpush1.bf16.msra.mxu0 %v4489_v1  ;;  %3012 = vmatpush1.bf16.msra.mxu1 %v4490_v20  ;;  %v4521_v1 = vld [vmem:[#allocation7 + $0x1e0] ss:$16 sps:$4 sm:$0xff]   ;;  %v4522_v20 = vld [vmem:[#allocation7 + $0x1e8] ss:$16 sps:$4 sm:$0xff]  }
 0x6e5   :  { %2972 = vmatprep.subr.bf16.mxu0 %v4491_v14  ;;  %3013 = vmatprep.subr.bf16.mxu1 %v4492_v4  ;;  %v4523_v14 = vld [vmem:[#allocation7 + $0x1c4] ss:$16 sps:$4 sm:$0xff]   ;;  %v4524_v4 = vld [vmem:[#allocation7 + $0x1cc] ss:$16 sps:$4 sm:$0xff]  }
 0x6e8   :  { %2973 = vmatpush1.bf16.msra.mxu0 %v4493_v17  ;;  %3014 = vmatpush1.bf16.msra.mxu1 %v4494_v41  ;;  %v4525_v17 = vld [vmem:[#allocation7 + $0x1c0] ss:$16 sps:$4 sm:$0xff]   ;;  %v4526_v41 = vld [vmem:[#allocation7 + $0x1c8] ss:$16 sps:$4 sm:$0xff]  }
 0x6e9   :  { %2974 = vmatprep.subr.bf16.mxu0 %v4495_v57  ;;  %3015 = vmatprep.subr.bf16.mxu1 %v4496_v58  ;;  %v4527_v57 = vld [vmem:[#allocation7 + $0x1a4] ss:$16 sps:$4 sm:$0xff]   ;;  %v4528_v58 = vld [vmem:[#allocation7 + $0x1ac] ss:$16 sps:$4 sm:$0xff]  }
 0x6ec   :  { %2975 = vmatpush1.bf16.msra.mxu0 %v4497_v27  ;;  %3016 = vmatpush1.bf16.msra.mxu1 %v4498_v59  ;;  %v4529_v27 = vld [vmem:[#allocation7 + $0x1a0] ss:$16 sps:$4 sm:$0xff]   ;;  %v4530_v59 = vld [vmem:[#allocation7 + $0x1a8] ss:$16 sps:$4 sm:$0xff]  }
 0x6ed   :  { %2976 = vmatprep.subr.bf16.mxu0 %v4499_v50  ;;  %3017 = vmatprep.subr.bf16.mxu1 %v4500_v29  ;;  %v4531_v50 = vld [vmem:[#allocation7 + $0x184] ss:$16 sps:$4 sm:$0xff]   ;;  %v4532_v29 = vld [vmem:[#allocation7 + $0x18c] ss:$16 sps:$4 sm:$0xff]  }
 0x6f0   :  { %2977 = vmatpush1.bf16.msra.mxu0 %v4501_v30  ;;  %3018 = vmatpush1.bf16.msra.mxu1 %v4502_v43  ;;  %v4533_v30 = vld [vmem:[#allocation7 + $0x180] ss:$16 sps:$4 sm:$0xff]   ;;  %v4534_v43 = vld [vmem:[#allocation7 + $0x188] ss:$16 sps:$4 sm:$0xff]  }
 0x6f1   :  { %2978 = vmatprep.subr.bf16.mxu0 %v4503_v15  ;;  %3019 = vmatprep.subr.bf16.mxu1 %v4504_v63  ;;  %v4535_v15 = vld [vmem:[#allocation7 + $0x164] ss:$16 sps:$4 sm:$0xff]   ;;  %v4536_v63 = vld [vmem:[#allocation7 + $0x16c] ss:$16 sps:$4 sm:$0xff]  }
 0x6f4   :  { %2979 = vmatpush1.bf16.msra.mxu0 %v4505_v10  ;;  %3020 = vmatpush1.bf16.msra.mxu1 %v4506_v42  ;;  %v4537_v10 = vld [vmem:[#allocation7 + $0x160] ss:$16 sps:$4 sm:$0xff]   ;;  %v4538_v42 = vld [vmem:[#allocation7 + $0x168] ss:$16 sps:$4 sm:$0xff]  }
 0x6f5   :  { %2980 = vmatprep.subr.bf16.mxu0 %v4507_v31  ;;  %3021 = vmatprep.subr.bf16.mxu1 %v4508_v37  ;;  %v4539_v31 = vld [vmem:[#allocation7 + $0x144] ss:$16 sps:$4 sm:$0xff]   ;;  %v4540_v37 = vld [vmem:[#allocation7 + $0x14c] ss:$16 sps:$4 sm:$0xff]  }
 0x6f8   :  { %2981 = vmatpush1.bf16.msra.mxu0 %v4509_v48  ;;  %3022 = vmatpush1.bf16.msra.mxu1 %v4510_v16  ;;  %v4541_v48 = vld [vmem:[#allocation7 + $0x140] ss:$16 sps:$4 sm:$0xff]   ;;  %v4542_v16 = vld [vmem:[#allocation7 + $0x148] ss:$16 sps:$4 sm:$0xff]  }
 0x6f9   :  { %2982 = vmatprep.subr.bf16.mxu0 %v4511_v45  ;;  %3023 = vmatprep.subr.bf16.mxu1 %v4512_v7  ;;  %v4543_v45 = vld [vmem:[#allocation7 + $0x124] ss:$16 sps:$4 sm:$0xff]   ;;  %v4544_v7 = vld [vmem:[#allocation7 + $0x12c] ss:$16 sps:$4 sm:$0xff]  }
 0x6fc   :  { %2983 = vmatpush1.bf16.msra.mxu0 %v4513_v49  ;;  %3024 = vmatpush1.bf16.msra.mxu1 %v4514_v36  ;;  %v4545_v49 = vld [vmem:[#allocation7 + $0x120] ss:$16 sps:$4 sm:$0xff]   ;;  %v4546_v36 = vld [vmem:[#allocation7 + $0x128] ss:$16 sps:$4 sm:$0xff]  }
 0x6fd   :  { %2984 = vmatprep.subr.bf16.mxu0 %v4515_v28  ;;  %3025 = vmatprep.subr.bf16.mxu1 %v4516_v34  ;;  %v4547_v28 = vld [vmem:[#allocation7 + $0x104] ss:$16 sps:$4 sm:$0xff]   ;;  %v4548_v34 = vld [vmem:[#allocation7 + $0x10c] ss:$16 sps:$4 sm:$0xff]  }
 0x700   :  { %2985 = vmatpush1.bf16.msra.mxu0 %v4517_v21  ;;  %3026 = vmatpush1.bf16.msra.mxu1 %v4518_v56  ;;  %v4549_v21 = vld [vmem:[#allocation7 + $0x100] ss:$16 sps:$4 sm:$0xff]   ;;  %v4550_v56 = vld [vmem:[#allocation7 + $0x108] ss:$16 sps:$4 sm:$0xff]  }
 0x701   :  { %2986 = vmatprep.subr.bf16.mxu0 %v4519_v62  ;;  %3027 = vmatprep.subr.bf16.mxu1 %v4520_v61  ;;  %v4551_v62 = vld [vmem:[#allocation13 + $0xe4] ss:$16 sps:$4 sm:$0xff]   ;;  %v4552_v61 = vld [vmem:[#allocation13 + $0xec] ss:$16 sps:$4 sm:$0xff]  }
 0x704   :  { %2987 = vmatpush2.bf16.msra.mxu0 %v4521_v1  ;;  %3028 = vmatpush2.bf16.msra.mxu1 %v4522_v20 }
 0x705   :  { %2988 = vmatprep.subr.bf16.mxu0 %v4523_v14  ;;  %3029 = vmatprep.subr.bf16.mxu1 %v4524_v4 }
 0x708   :  { %2989 = vmatpush2.bf16.msra.mxu0 %v4525_v17  ;;  %3030 = vmatpush2.bf16.msra.mxu1 %v4526_v41 }
 0x709   :  { %2990 = vmatprep.subr.bf16.mxu0 %v4527_v57  ;;  %3031 = vmatprep.subr.bf16.mxu1 %v4528_v58 }
 0x70c   :  { %2991 = vmatpush2.bf16.msra.mxu0 %v4529_v27  ;;  %3032 = vmatpush2.bf16.msra.mxu1 %v4530_v59 }
 0x70d   :  { %2992 = vmatprep.subr.bf16.mxu0 %v4531_v50  ;;  %3033 = vmatprep.subr.bf16.mxu1 %v4532_v29 }
 0x710   :  { %2993 = vmatpush2.bf16.msra.mxu0 %v4533_v30  ;;  %3034 = vmatpush2.bf16.msra.mxu1 %v4534_v43 }
 0x711   :  { %2994 = vmatprep.subr.bf16.mxu0 %v4535_v15  ;;  %3035 = vmatprep.subr.bf16.mxu1 %v4536_v63 }
 0x714   :  { %2995 = vmatpush2.bf16.msra.mxu0 %v4537_v10  ;;  %3036 = vmatpush2.bf16.msra.mxu1 %v4538_v42 }
 0x715   :  { %2996 = vmatprep.subr.bf16.mxu0 %v4539_v31  ;;  %3037 = vmatprep.subr.bf16.mxu1 %v4540_v37 }
 0x718   :  { %2997 = vmatpush2.bf16.msra.mxu0 %v4541_v48  ;;  %3038 = vmatpush2.bf16.msra.mxu1 %v4542_v16 }
 0x719   :  { %2998 = vmatprep.subr.bf16.mxu0 %v4543_v45  ;;  %3039 = vmatprep.subr.bf16.mxu1 %v4544_v7 }
 0x71c   :  { %2999 = vmatpush2.bf16.msra.mxu0 %v4545_v49  ;;  %3040 = vmatpush2.bf16.msra.mxu1 %v4546_v36 }
 0x71d   :  { %3000 = vmatprep.subr.bf16.mxu0 %v4547_v28  ;;  %3041 = vmatprep.subr.bf16.mxu1 %v4548_v34 }
 0x720   :  { %3001 = vmatpush2.bf16.msra.mxu0 %v4549_v21  ;;  %3042 = vmatpush2.bf16.msra.mxu1 %v4550_v56 }
 0x721   :  { %3086 = vmatprep.subr.bf16.mxu0 %v4551_v62  ;;  %3127 = vmatprep.subr.bf16.mxu1 %v4552_v61 }
 0x783   :  { %v2334_v1 = vpop.f32.mrf.mxu0  ;;  %v2375_v20 = vpop.f32.mrf.mxu1 }
 0x784   :  { %v2335_v14 = vadd.f32 %v2334_v1, %v5396_v44  ;;  %v2376_v63 = vadd.f32 %v2375_v20, %v5398_v46 }
 0x785   :  { %v2336_v4 = vpop.f32.mrf.mxu0  ;;  %v2377_v17 = vpop.f32.mrf.mxu1 }
 0x786   :  { %v2382_v41 = vadd.f32 %v2335_v14, %v5221_v13  ;;  %v2337_v57 = vadd.f32 %v2336_v4, %v5400_v25  ;;  %v2378_v15 = vadd.f32 %v2377_v17, %v5402_v33  ;;  %v2384_v25 = vadd.f32 %v2376_v63, %v5237_v39 }
 0x787   :  { %v2338_v58 = vpop.f32.mrf.mxu0  ;;  %v2379_v27 = vpop.f32.mrf.mxu1 }
 0x788   :  { %v3937_v59 = vmul.f32 -1.442695, %v2382_v41  ;;  %v2383_v50 = vadd.f32 %v2337_v57, %v5225_v19  ;;  %v2385_v44 = vadd.f32 %v2378_v15, %v5232_v32 }
 0x789   :  { %v2339_v29 = vpop.f32.mrf.mxu0  ;;  %v2380_v30 = vpop.f32.mrf.mxu1 }
 0x78a   :  { %4288 = vpow2.f32 %v3937_v59  ;;  %v3938_v43 = vmul.f32 -1.442695, %v2383_v50  ;;  %v3939_v10 = vmul.f32 -1.442695, %v2385_v44 }
 0x78c   :  { %4290 = vpow2.f32 %v3938_v43 }
 0x78d   :  { %4292 = vpow2.f32 %v3939_v10 }
 0x797   :  { %v4289_v42 = vpop.eup %4288 }
 0x798   :  { %v2389_v31 = vadd.f32 1.0, %v4289_v42 }
 0x799   :  { %v4291_v37 = vpop.eup %4290 }
 0x79a   :  { %4294 = vrcp.f32 %v2389_v31  ;;  %v2395_v48 = vadd.f32 1.0, %v4291_v37  ;;  %v4293_v46 = vpop.eup %4292 }
 0x79b   :  { %4296 = vtanh.f32 %v2384_v25  ;;  %v2402_v56 = vadd.f32 1.0, %v4293_v46 }
 0x79c   :  { %4298 = vrcp.f32 %v2395_v48 }
 0x79d   :  { %4300 = vrcp.f32 %v2402_v56 }
 0x7a3   :  { %v5424_v16 = vpop.f32.mrf.mxu0  ;;  %v5426_v45 = vpop.f32.mrf.mxu1 }
 0x7a5   :  { %v5428_v33 = vpop.f32.mrf.mxu0  ;;  %v5430_v7 = vpop.f32.mrf.mxu1 }
 0x7a7   :  { %v4295_v49 = vpop.eup %4294  ;;  %v2926_v36 = vpop.f32.mrf.mxu0 }
 0x7a8   :  { %v2967_v28 = vpop.f32.mrf.mxu1  ;;  %v4297_v34 = vpop.eup %4296 }
 0x7a9   :  { %v4299_v21 = vpop.eup %4298  ;;  %v2927_v62 = vpop.f32.mrf.mxu0  ;;  %v2407_v1 = vmul.f32 %v4297_v34, %v4295_v49 }
 0x7aa   :  { %v2968_v61 = vpop.f32.mrf.mxu1  ;;  %v2406_v20 = vmul.f32 %v4299_v21, %v5248_v55  ;;  %v4301_v4 = vpop.eup %4300 }
 0x7ac   :  { %v5433_v14 = vadd.f32 %v2407_v1, %v2406_v20 }
 0x7ae   :  { %4302 = vtanh.f32 %v5433_v14 }
 0x7bb   :  { %v4303_v17 = vpop.eup %4302 }
 0x7bc   :  { %v5436_v41 = vmul.f32 %v4303_v17, %v4301_v4 }
 0x7be   :  { %v2421_v57 = vrot.slane %v5436_v41, %v5252_v60  ;;  %v2414_v58 = vcombine.high %v5436_v41, %v5436_v41 }
 0x7c0   :  { %v2437_v27 = vrot.slane %v2421_v57, %v5252_v60  ;;  %v2429_v59 = vcombine.high %v2421_v57, %v2421_v57  ;;  %v2428_v55 = vrot.slane %v2414_v58, %v5252_v60 }
 0x7c2   :  { %v2466_v50 = vrot.slane %v2437_v27, %v5774_v12  ;;  %v2451_v29 = vrot.slane %v2429_v59, %v5252_v60  ;;  %v2459_v30 = vcombine.high %v2437_v27, %v2437_v27  ;;  %v2444_v63 = vrot.slane %v2428_v55, %v5252_v60 }
 0x7c3   :  { %v2430_v37 = vcombine.high %v2428_v55, %v2428_v55 }
 0x7c4   :  { %v2503_v43 = vmul.f32 %v5260_v0, %v2466_v50  ;;  %v2470_v15 = vrot.slane %v2451_v29, %v5774_v12  ;;  %v2474_v44 = vrot.slane %v2459_v30, %v5774_v12  ;;  %v2482_v25 = vrot.slane %v2444_v63, %v5774_v12 }
 0x7c5   :  { %v2461_v31 = vcombine.high %v2451_v29, %v2451_v29  ;;  %v2458_v49 = vrot.slane %v2430_v37, %v5252_v60  ;;  %v2460_v34 = vcombine.high %v2444_v63, %v2444_v63 }
 0x7c6   :  { %2511 = vadd.xlane.f32.xlu1 %v2503_v43  ;;  %v2504_v10 = vmul.f32 %v5268_v24, %v2470_v15  ;;  %v2505_v42 = vmul.f32 %v5265_v6, %v2474_v44  ;;  %v2507_v48 = vmul.f32 %v5280_v40, %v2482_v25 }
 0x7c7   :  { %v2478_v46 = vrot.slane %v2461_v31, %v5774_v12  ;;  %v2486_v28 = vrot.slane %v2458_v49, %v5774_v12  ;;  %v2490_v56 = vrot.slane %v2460_v34, %v5774_v12  ;;  %v2462_v62 = vcombine.high %v2458_v49, %v2458_v49 }
 0x7c8   :  { %2513 = vadd.xlane.f32.xlu0 %v2504_v10 }
 0x7c9   :  { %v2506_v36 = vmul.f32 %v5275_v35, %v2478_v46  ;;  %v2508_v21 = vmul.f32 %v5284_v47, %v2486_v28  ;;  %v2509_v61 = vmul.f32 %v5288_v51, %v2490_v56  ;;  %v2494_v1 = vrot.slane %v2462_v62, %v5774_v12 }
 0x7ca   :  { %2515 = vadd.xlane.f32.xlu1 %v2505_v42 }
 0x7cb   :  { %v2510_v20 = vmul.f32 %v5292_v54, %v2494_v1 }
 0x7ce   :  { %2519 = vadd.xlane.f32.xlu1 %v2507_v48 }
 0x7d2   :  { %2517 = vadd.xlane.f32.xlu1 %v2506_v36 }
 0x7d6   :  { %2521 = vadd.xlane.f32.xlu1 %v2508_v21 }
 0x7da   :  { %2523 = vadd.xlane.f32.xlu1 %v2509_v61 }
 0x7de   :  { %2525 = vadd.xlane.f32.xlu1 %v2510_v20 }
 0x84f   :  { %v2512_v4 = vpop.xlane.xlu1 %2511 }
 0x850   :  { %v2538_v55 = vrot.slane %v2512_v4, %v5299_v3 }
 0x851   :  { %v2514_v58 = vpop.xlane.xlu0 %2513 }
 0x852   :  { %v2542_v59 = vrot.slane %v2514_v58, %v5299_v3 }
 0x853   :  { %v2516_v17 = vpop.xlane.xlu1 %2515 }
 0x854   :  { %v2546_v50 = vrot.slane %v2516_v17, %v5299_v3  ;;  %v2567_v30 = vsel %vm1691_vm0, %v2542_v59, %v2538_v55 }
 0x856   :  { %v2568_v15 = vsel %vm1693_vm1, %v2546_v50, %v2567_v30 }
 0x857   :  { %v2520_v57 = vpop.xlane.xlu1 %2519 }
 0x858   :  { %v2554_v42 = vrot.slane %v2520_v57, %v5299_v3 }
 0x85b   :  { %v2518_v27 = vpop.xlane.xlu1 %2517 }
 0x85c   :  { %v2550_v43 = vrot.slane %v2518_v27, %v5299_v3 }
 0x85e   :  { %v2569_v63 = vsel %vm1695_vm2, %v2550_v43, %v2568_v15 }
 0x85f   :  { %v2522_v29 = vpop.xlane.xlu1 %2521  ;;  %v2570_v37 = vsel %vm1697_vm3, %v2554_v42, %v2569_v63 }
 0x860   :  { %v2558_v10 = vrot.slane %v2522_v29, %v5299_v3 }
 0x862   :  { %v2571_v46 = vsel %vm1699_vm4, %v2558_v10, %v2570_v37 }
 0x863   :  { %v2524_v44 = vpop.xlane.xlu1 %2523 }
 0x864   :  { %v2562_v25 = vrot.slane %v2524_v44, %v5299_v3 }
 0x866   :  { %v2572_v49 = vsel %vm1701_vm5, %v2562_v25, %v2571_v46 }
 0x867   :  { %v2526_v31 = vpop.xlane.xlu1 %2525 }
 0x868   :  { %v2566_v48 = vrot.slane %v2526_v31, %v5299_v3 }
 0x86a   :  { %v2573_v36 = vsel %vm1703_vm6, %v2566_v48, %v2572_v49  ;;  %v5780_v48 = vld [vmem:[#allocation22_spill] sm:$0xff] }
 0x86b   :  { %v2575_v28 = vsel %vm1706_vm7, %v2573_v36, -inf }
 0x86c   :  { %2576 = vmax.xlane.f32.xlu1 %v2575_v28 }
 0x8f5   :  { %v2577_v34 = vpop.xlane.xlu1 %2576 }
 0x8f6   :  { %v2582_v21 = vrot.slane %v2577_v34, %v5774_v12  ;;  %v2586_v56 = vrot.slane %v2577_v34, %v5775_v22  ;;  %v2590_v62 = vrot.slane %v2577_v34, %v5119_v11  ;;  %v2598_v61 = vrot.slane %v2577_v34, %v5321_v53 }
 0x8f7   :  { %v2594_v1 = vrot.slane %v2577_v34, %v5116_v5  ;;  %v2606_v50 = vrot.slane %v2577_v34, %v5329_v26  ;;  %v2602_v63 = vrot.slane %v2577_v34, %v5325_v9  ;;  %v2610_v46 = vrot.slane %v2577_v34, %v5780_v48 }
 0x8f8   :  { %v2619_v20 = vsub.f32 %v2512_v4, %v2582_v21  ;;  %v2620_v59 = vsub.f32 %v2514_v58, %v2586_v56  ;;  %v2621_v55 = vsub.f32 %v2516_v17, %v2590_v62  ;;  %v2623_v30 = vsub.f32 %v2520_v57, %v2598_v61 }
 0x8f9   :  { %v2622_v10 = vsub.f32 %v2518_v27, %v2594_v1  ;;  %v2625_v25 = vsub.f32 %v2524_v44, %v2606_v50  ;;  %v2624_v49 = vsub.f32 %v2522_v29, %v2602_v63  ;;  %v2626_v58 = vsub.f32 %v2526_v31, %v2610_v46 }
 0x8fa   :  { %v2627_v43 = vmul.f32 1.442695, %v2619_v20  ;;  %v2629_v15 = vmul.f32 1.442695, %v2620_v59  ;;  %v2631_v42 = vmul.f32 1.442695, %v2621_v55 }
 0x8fb   :  { %v2635_v37 = vmul.f32 1.442695, %v2623_v30  ;;  %v2633_v4 = vmul.f32 1.442695, %v2622_v10  ;;  %v2639_v17 = vmul.f32 1.442695, %v2625_v25 }
 0x8fc   :  { %4304 = vpow2.f32 %v2627_v43  ;;  %v2637_v57 = vmul.f32 1.442695, %v2624_v49  ;;  %v2641_v36 = vmul.f32 1.442695, %v2626_v58 }
 0x8fd   :  { %4306 = vpow2.f32 %v2629_v15 }
 0x8fe   :  { %4308 = vpow2.f32 %v2631_v42 }
 0x8ff   :  { %4310 = vpow2.f32 %v2635_v37 }
 0x900   :  { %4312 = vpow2.f32 %v2633_v4 }
 0x901   :  { %4314 = vpow2.f32 %v2639_v17 }
 0x902   :  { %4316 = vpow2.f32 %v2637_v57 }
 0x903   :  { %4318 = vpow2.f32 %v2641_v36 }
 0x909   :  { %v4305_v28 = vpop.eup %4304 }
 0x90a   :  { %v4307_v27 = vpop.eup %4306  ;;  %2652 = vperm.xlu1 %3980, %v4305_v28  }
 0x90b   :  { %2655 = vperm.xlu0 %3981, %v4307_v27   ;;  %v4309_v44 = vpop.eup %4308 }
 0x90c   :  { %v4311_v21 = vpop.eup %4310 }
 0x90d   :  { %v4313_v29 = vpop.eup %4312 }
 0x90e   :  { %2658 = vperm.xlu1 %3980, %v4309_v44   ;;  %v4315_v34 = vpop.eup %4314 }
 0x90f   :  { %2664 = vperm.xlu0 %3981, %v4311_v21   ;;  %v4317_v56 = vpop.eup %4316 }
 0x910   :  { %v4319_v31 = vpop.eup %4318 }
 0x912   :  { %2661 = vperm.xlu1 %3980, %v4313_v29  }
 0x913   :  { %2670 = vperm.xlu0 %3981, %v4315_v34  }
 0x916   :  { %2667 = vperm.xlu1 %3980, %v4317_v56  }
 0x91a   :  { %2673 = vperm.xlu1 %3980, %v4319_v31  }
 0x985   :  { %v2653_v62 = vpop.permute.xlu1 %2652 }
 0x986   :  { %v2656_v61 = vpop.permute.xlu0 %2655  ;;  %v2678_v59 = vrot.slane %v2653_v62, %v5299_v3 }
 0x987   :  { %v2682_v20 = vrot.slane %v2656_v61, %v5299_v3 }
 0x989   :  { %v2659_v1 = vpop.permute.xlu1 %2658  ;;  %v2707_v43 = vsel %vm1691_vm0, %v2682_v20, %v2678_v59 }
 0x98a   :  { %v2686_v55 = vrot.slane %v2659_v1, %v5299_v3  ;;  %v2665_v50 = vpop.permute.xlu0 %2664 }
 0x98b   :  { %v2694_v42 = vrot.slane %v2665_v50, %v5299_v3 }
 0x98c   :  { %v2708_v63 = vsel %vm1693_vm1, %v2686_v55, %v2707_v43 }
 0x98d   :  { %v2662_v30 = vpop.permute.xlu1 %2661 }
 0x98e   :  { %v2690_v15 = vrot.slane %v2662_v30, %v5299_v3  ;;  %v2671_v37 = vpop.permute.xlu0 %2670 }
 0x98f   :  { %v2702_v17 = vrot.slane %v2671_v37, %v5299_v3 }
 0x990   :  { %v2709_v10 = vsel %vm1695_vm2, %v2690_v15, %v2708_v63 }
 0x991   :  { %v2668_v25 = vpop.permute.xlu1 %2667  ;;  %v2710_v49 = vsel %vm1697_vm3, %v2694_v42, %v2709_v10 }
 0x992   :  { %v2698_v46 = vrot.slane %v2668_v25, %v5299_v3 }
 0x994   :  { %v2711_v4 = vsel %vm1699_vm4, %v2698_v46, %v2710_v49 }
 0x995   :  { %v2674_v58 = vpop.permute.xlu1 %2673  ;;  %v2712_v36 = vsel %vm1701_vm5, %v2702_v17, %v2711_v4 }
 0x996   :  { %v2706_v57 = vrot.slane %v2674_v58, %v5299_v3 }
 0x998   :  { %v2713_v62 = vsel %vm1703_vm6, %v2706_v57, %v2712_v36 }
 0x999   :  { %v2715_v61 = vsel %vm1706_vm7, %v2713_v62, 0.0 }
 0x99a   :  { %2716 = vadd.xlane.f32.xlu0 %v2715_v61 }
 0xa23   :  { %v2717_v1 = vpop.xlane.xlu0 %2716 }
 0xa24   :  { %4320 = vrcp.f32 %v2717_v1 }
 0xa31   :  { %v4321_v20 = vpop.eup %4320 }
 0xa32   :  { %v2723_v59 = vrot.slane %v4321_v20, %v5774_v12  ;;  %v2727_v50 = vrot.slane %v4321_v20, %v5775_v22  ;;  %v2731_v43 = vrot.slane %v4321_v20, %v5119_v11  ;;  %v2735_v63 = vrot.slane %v4321_v20, %v5116_v5 }
 0xa33   :  { %v2739_v42 = vrot.slane %v4321_v20, %v5321_v53  ;;  %v2743_v37 = vrot.slane %v4321_v20, %v5325_v9  ;;  %v2747_v46 = vrot.slane %v4321_v20, %v5329_v26  ;;  %v2751_v49 = vrot.slane %v4321_v20, %v5780_v48 }
 0xa34   :  { %v2760_v55 = vmul.f32 %v4305_v28, %v2723_v59  ;;  %v2761_v30 = vmul.f32 %v4307_v27, %v2727_v50  ;;  %v2762_v15 = vmul.f32 %v4309_v44, %v2731_v43  ;;  %v2763_v10 = vmul.f32 %v4313_v29, %v2735_v63 }
 0xa35   :  { %v2764_v25 = vmul.f32 %v4311_v21, %v2739_v42  ;;  %v2765_v28 = vmul.f32 %v4317_v56, %v2743_v37  ;;  %v2766_v27 = vmul.f32 %v4315_v34, %v2747_v46  ;;  %v2767_v44 = vmul.f32 %v4319_v31, %v2751_v49 }
 0xa36   :  { %2770 = vperm.xlu1 %3980, %v2760_v55  }
 0xa3a   :  { %2775 = vperm.xlu1 %3980, %v2761_v30  }
 0xa3e   :  { %2780 = vperm.xlu1 %3980, %v2762_v15  }
 0xa42   :  { %2785 = vperm.xlu1 %3980, %v2763_v10  }
 0xa46   :  { %2790 = vperm.xlu1 %3980, %v2764_v25  }
 0xa4a   :  { %2795 = vperm.xlu1 %3980, %v2765_v28  }
 0xa4e   :  { %2800 = vperm.xlu1 %3980, %v2766_v27  }
 0xa52   :  { %2805 = vperm.xlu1 %3980, %v2767_v44  }
 0xab1   :  { %v2771_v4 = vpop.permute.xlu1 %2770 }
 0xab2   :  { %v2808_v57 = vmul.f32 %v5260_v0, %v2771_v4 }
 0xab4   :  { %v2816_v34 = vrot.slane %v2808_v57, 4 }
 0xab5   :  { %v2776_v17 = vpop.permute.xlu1 %2775 }
 0xab6   :  { %v2809_v58 = vmul.f32 %v5268_v24, %v2776_v17  ;;  %v2817_v50 = vadd.f32 %v2816_v34, %v2808_v57 }
 0xab8   :  { %v2822_v56 = vrot.slane %v2809_v58, 4  ;;  %v2818_v37 = vrot.slane %v2817_v50, 2 }
 0xab9   :  { %v2781_v29 = vpop.permute.xlu1 %2780 }
 0xaba   :  { %v2810_v21 = vmul.f32 %v5265_v6, %v2781_v29  ;;  %v2823_v59 = vadd.f32 %v2822_v56, %v2809_v58  ;;  %v2819_v58 = vadd.f32 %v2818_v37, %v2817_v50 }
 0xabc   :  { %v2828_v61 = vrot.slane %v2810_v21, 4  ;;  %v2824_v63 = vrot.slane %v2823_v59, 2 }
 0xabd   :  { %v2786_v36 = vpop.permute.xlu1 %2785 }
 0xabe   :  { %v2811_v62 = vmul.f32 %v5275_v35, %v2786_v36  ;;  %v2829_v55 = vadd.f32 %v2828_v61, %v2810_v21  ;;  %v2825_v44 = vadd.f32 %v2824_v63, %v2823_v59 }
 0xac0   :  { %v2834_v1 = vrot.slane %v2811_v62, 4  ;;  %v2830_v25 = vrot.slane %v2829_v55, 2  ;;  %v2826_v61 = vrot.slane %v2825_v44, 1 }
 0xac1   :  { %v2791_v20 = vpop.permute.xlu1 %2790 }
 0xac2   :  { %v2812_v31 = vmul.f32 %v5280_v40, %v2791_v20  ;;  %v2835_v30 = vadd.f32 %v2834_v1, %v2811_v62  ;;  %v2831_v29 = vadd.f32 %v2830_v25, %v2829_v55 }
 0xac4   :  { %v2840_v43 = vrot.slane %v2812_v31, 4  ;;  %v2836_v28 = vrot.slane %v2835_v30, 2 }
 0xac5   :  { %v2796_v15 = vpop.permute.xlu1 %2795 }
 0xac6   :  { %v2841_v10 = vadd.f32 %v2840_v43, %v2812_v31  ;;  %v2813_v42 = vmul.f32 %v5284_v47, %v2796_v15  ;;  %v2837_v21 = vadd.f32 %v2836_v28, %v2835_v30  ;;  %v2832_v31 = vrot.slane %v2831_v29, 1 }
 0xac7   :  { %v2820_v43 = vrot.slane %v2819_v58, 1 }
 0xac8   :  { %v2846_v46 = vrot.slane %v2813_v42, 4  ;;  %v2842_v27 = vrot.slane %v2841_v10, 2  ;;  %v2838_v15 = vrot.slane %v2837_v21, 1  ;;  %v2833_v30 = vadd.f32 %v2832_v31, %v2831_v29  ;;  %v4558_v31 = vld [vmem:[#allocation13 + $0xc8] ss:$16 sps:$4 sm:$0xff]  }
 0xac9   :  { %v2801_v49 = vpop.permute.xlu1 %2800  ;;  %v2821_v25 = vadd.f32 %v2820_v43, %v2819_v58  ;;  %v4559_v43 = vld [vmem:[#allocation13 + $0xa4] ss:$16 sps:$4 sm:$0xff]  }
 0xaca   :  { %v2847_v4 = vadd.f32 %v2846_v46, %v2813_v42  ;;  %v2814_v17 = vmul.f32 %v5288_v51, %v2801_v49  ;;  %v2843_v56 = vadd.f32 %v2842_v27, %v2841_v10  ;;  %v2827_v42 = vadd.f32 %v2826_v61, %v2825_v44 }
 0xacb   :  { %v2839_v37 = vadd.f32 %v2838_v15, %v2837_v21  ;;  %v5528_v61 = vpack.c.bf16 %v5436_v41, %v5436_v41  ;;  %v4557_v41 = vld [vmem:[#allocation13 + $0xc0] ss:$16 sps:$4 sm:$0xff]   ;;  %v4560_v15 = vld [vmem:[#allocation13 + $0xac] ss:$16 sps:$4 sm:$0xff]  }
 0xacc   :  { %v2848_v57 = vrot.slane %v2847_v4, 2  ;;  %v2852_v36 = vrot.slane %v2814_v17, 4  ;;  %v2844_v63 = vrot.slane %v2843_v56, 1  ;;  %v2873_v49 = vsel %vm1691_vm0, %v2827_v42, %v2821_v25  ;;  %v4563_v42 = vld [vmem:[#allocation13 + $0x84] ss:$16 sps:$4 sm:$0xff]  }
 0xacd   :  { %v2806_v62 = vpop.permute.xlu1 %2805  ;;  %v4568_v25 = vld [vmem:[#allocation13 + $0x6c] ss:$16 sps:$4 sm:$0xff]  }
 0xace   :  { %v2849_v34 = vadd.f32 %v2848_v57, %v2847_v4  ;;  %v2853_v1 = vadd.f32 %v2852_v36, %v2814_v17  ;;  %v2815_v20 = vmul.f32 %v5292_v54, %v2806_v62  ;;  %v2845_v27 = vadd.f32 %v2844_v63, %v2843_v56  ;;  %v4562_v63 = vld [vmem:[#allocation13 + $0xa8] ss:$16 sps:$4 sm:$0xff]  }
 0xacf   :  { %v2874_v57 = vsel %vm1693_vm1, %v2833_v30, %v2873_v49  ;;  %v4567_v30 = vld [vmem:[#allocation13 + $0x64] ss:$16 sps:$4 sm:$0xff]   ;;  %v4573_v49 = vld [vmem:[#allocation13 + $0x40] ss:$16 sps:$4 sm:$0xff]  }
 0xad0   :  { %v2854_v48 = vrot.slane %v2853_v1, 2  ;;  %v2858_v59 = vrot.slane %v2815_v20, 4  ;;  %v2850_v46 = vrot.slane %v2849_v34, 1  ;;  %v2875_v62 = vsel %vm1695_vm2, %v2839_v37, %v2874_v57  ;;  %v4569_v37 = vld [vmem:[#allocation13 + $0x60] ss:$16 sps:$4 sm:$0xff]  }
 0xad1   :  { %v2876_v44 = vsel %vm1697_vm3, %v2845_v27, %v2875_v62  ;;  %v4572_v27 = vld [vmem:[#allocation13 + $0x4c] ss:$16 sps:$4 sm:$0xff]   ;;  %v4578_v62 = vld [vmem:[#allocation13 + $0x28] ss:$16 sps:$4 sm:$0xff]  }
 0xad2   :  { %v2855_v55 = vadd.f32 %v2854_v48, %v2853_v1  ;;  %v2859_v50 = vadd.f32 %v2858_v59, %v2815_v20  ;;  %v2851_v4 = vadd.f32 %v2850_v46, %v2849_v34  ;;  %v4553_v34 = vld [vmem:[#allocation13 + $0xe0] ss:$16 sps:$4 sm:$0xff]   ;;  %v4554_v1 = vld [vmem:[#allocation13 + $0xe8] ss:$16 sps:$4 sm:$0xff]   ;;  %v4556_v20 = vld [vmem:[#allocation13 + $0xcc] ss:$16 sps:$4 sm:$0xff]  }
 0xad3   :  { %v4561_v59 = vld [vmem:[#allocation13 + $0xa0] ss:$16 sps:$4 sm:$0xff]   ;;  %v4564_v46 = vld [vmem:[#allocation13 + $0x8c] ss:$16 sps:$4 sm:$0xff]  }
 0xad4   :  { %v2856_v10 = vrot.slane %v2855_v55, 1  ;;  %v2860_v28 = vrot.slane %v2859_v50, 2  ;;  %v2877_v48 = vsel %vm1699_vm4, %v2851_v4, %v2876_v44  ;;  %v4574_v4 = vld [vmem:[#allocation13 + $0x48] ss:$16 sps:$4 sm:$0xff]   ;;  %v4576_v57 = vld [vmem:[#allocation13 + $0x2c] ss:$16 sps:$4 sm:$0xff]  }
 0xad5   :  { %v4579_v44 = vld [vmem:[#allocation13 + $0x4] ss:$16 sps:$4 sm:$0xff]  }
 0xad6   :  { %v2861_v17 = vadd.f32 %v2860_v28, %v2859_v50  ;;  %v2857_v36 = vadd.f32 %v2856_v10, %v2855_v55  ;;  %v4565_v55 = vld [vmem:[#allocation13 + $0x80] ss:$16 sps:$4 sm:$0xff]   ;;  %v4566_v50 = vld [vmem:[#allocation13 + $0x88] ss:$16 sps:$4 sm:$0xff]   ;;  %v4571_v28 = vld [vmem:[#allocation13 + $0x44] ss:$16 sps:$4 sm:$0xff]  }
 0xad7   :  { %v4570_v10 = vld [vmem:[#allocation13 + $0x68] ss:$16 sps:$4 sm:$0xff]  }
 0xad8   :  { %v2862_v26 = vrot.slane %v2861_v17, 1  ;;  %v2878_v58 = vsel %vm1701_vm5, %v2857_v36, %v2877_v48  ;;  %v4577_v36 = vld [vmem:[#allocation13 + $0x20] ss:$16 sps:$4 sm:$0xff]   ;;  %v4580_v48 = vld [vmem:[#allocation13 + $0xc] ss:$16 sps:$4 sm:$0xff]  }
 0xada   :  { %v2863_v29 = vadd.f32 %v2862_v26, %v2861_v17  ;;  %v4555_v26 = vld [vmem:[#allocation13 + $0xc4] ss:$16 sps:$4 sm:$0xff]  }
 0xadb   :  { %v4575_v17 = vld [vmem:[#allocation13 + $0x24] ss:$16 sps:$4 sm:$0xff]  }
 0xadc   :  { %v2879_v21 = vsel %vm1703_vm6, %v2863_v29, %v2878_v58  ;;  %v4581_v29 = vld [vmem:[#allocation13] ss:$16 sps:$4 sm:$0xff]   ;;  %v4582_v58 = vld [vmem:[#allocation13 + $0x8] ss:$16 sps:$4 sm:$0xff]  }
 0xadd   :  { %v2885_v56 = vpack.c.bf16 %v2879_v21, %v2879_v21  ;;  %v4583_v21 = vld [vmem:[#allocation12 + $0xe4] ss:$16 sps:$4 sm:$0xff]  }
 0xadf   :  { %3002 = vmatprep.mubr.bf16.mxu0 %v2885_v56  ;;  %3043 = vmatprep.mubr.bf16.mxu1 %v2885_v56  ;;  %v4584_v56 = vld [vmem:[#allocation12 + $0xec] ss:$16 sps:$4 sm:$0xff]  }
 0xae0   :  { %3003 = vmatmul.mubr.bf16.vlgmr.msra.gmra.mxu0 %v5528_v61  ;;  %3044 = vmatmul.mubr.bf16.vlgmr.msra.gmra.mxu1 %v5528_v61 }
 0xae1   :  { %3087 = vmatpush1.bf16.msra.mxu0 %v4553_v34  ;;  %3128 = vmatpush1.bf16.msra.mxu1 %v4554_v1  ;;  %v4585_v34 = vld [vmem:[#allocation12 + $0xe0] ss:$16 sps:$4 sm:$0xff]   ;;  %v4586_v1 = vld [vmem:[#allocation12 + $0xe8] ss:$16 sps:$4 sm:$0xff]  }
 0xae2   :  { %3088 = vmatprep.subr.bf16.mxu0 %v4555_v26  ;;  %3129 = vmatprep.subr.bf16.mxu1 %v4556_v20  ;;  %v4587_v26 = vld [vmem:[#allocation12 + $0xc4] ss:$16 sps:$4 sm:$0xff]   ;;  %v4588_v20 = vld [vmem:[#allocation12 + $0xcc] ss:$16 sps:$4 sm:$0xff]  }
 0xae3   :  { %3118 = vmatprep.mubr.bf16.mxu0 %v5733_v18  ;;  %3159 = vmatprep.mubr.bf16.mxu1 %v5733_v18 }
 0xae5   :  { %3089 = vmatpush1.bf16.msra.mxu0 %v4557_v41  ;;  %3130 = vmatpush1.bf16.msra.mxu1 %v4558_v31  ;;  %v4589_v41 = vld [vmem:[#allocation12 + $0xc0] ss:$16 sps:$4 sm:$0xff]   ;;  %v4590_v31 = vld [vmem:[#allocation12 + $0xc8] ss:$16 sps:$4 sm:$0xff]  }
 0xae6   :  { %3090 = vmatprep.subr.bf16.mxu0 %v4559_v43  ;;  %3131 = vmatprep.subr.bf16.mxu1 %v4560_v15  ;;  %v4591_v43 = vld [vmem:[#allocation12 + $0xa4] ss:$16 sps:$4 sm:$0xff]   ;;  %v4592_v15 = vld [vmem:[#allocation12 + $0xac] ss:$16 sps:$4 sm:$0xff]  }
 0xae9   :  { %3091 = vmatpush1.bf16.msra.mxu0 %v4561_v59  ;;  %3132 = vmatpush1.bf16.msra.mxu1 %v4562_v63  ;;  %v4594_v59 = vld [vmem:[#allocation12 + $0xa8] ss:$16 sps:$4 sm:$0xff]   ;;  %v4595_v63 = vld [vmem:[#allocation12 + $0x84] ss:$16 sps:$4 sm:$0xff]  }
 0xaea   :  { %3092 = vmatprep.subr.bf16.mxu0 %v4563_v42  ;;  %3133 = vmatprep.subr.bf16.mxu1 %v4564_v46  ;;  %v4596_v42 = vld [vmem:[#allocation12 + $0x8c] ss:$16 sps:$4 sm:$0xff]   ;;  %v4597_v46 = vld [vmem:[#allocation12 + $0x80] ss:$16 sps:$4 sm:$0xff]  }
 0xaed   :  { %3093 = vmatpush1.bf16.msra.mxu0 %v4565_v55  ;;  %3134 = vmatpush1.bf16.msra.mxu1 %v4566_v50  ;;  %v4598_v55 = vld [vmem:[#allocation12 + $0x88] ss:$16 sps:$4 sm:$0xff]   ;;  %v4600_v50 = vld [vmem:[#allocation12 + $0x6c] ss:$16 sps:$4 sm:$0xff]  }
 0xaee   :  { %3094 = vmatprep.subr.bf16.mxu0 %v4567_v30  ;;  %3135 = vmatprep.subr.bf16.mxu1 %v4568_v25  ;;  %v4601_v30 = vld [vmem:[#allocation12 + $0x60] ss:$16 sps:$4 sm:$0xff]   ;;  %v4602_v25 = vld [vmem:[#allocation12 + $0x68] ss:$16 sps:$4 sm:$0xff]  }
 0xaf1   :  { %3095 = vmatpush1.bf16.msra.mxu0 %v4569_v37  ;;  %3136 = vmatpush1.bf16.msra.mxu1 %v4570_v10  ;;  %v4603_v37 = vld [vmem:[#allocation12 + $0x44] ss:$16 sps:$4 sm:$0xff]   ;;  %v4604_v10 = vld [vmem:[#allocation12 + $0x4c] ss:$16 sps:$4 sm:$0xff]  }
 0xaf2   :  { %3096 = vmatprep.subr.bf16.mxu0 %v4571_v28  ;;  %3137 = vmatprep.subr.bf16.mxu1 %v4572_v27  ;;  %v4605_v28 = vld [vmem:[#allocation12 + $0x40] ss:$16 sps:$4 sm:$0xff]   ;;  %v4606_v27 = vld [vmem:[#allocation12 + $0x48] ss:$16 sps:$4 sm:$0xff]  }
 0xaf5   :  { %3097 = vmatpush1.bf16.msra.mxu0 %v4573_v49  ;;  %3138 = vmatpush1.bf16.msra.mxu1 %v4574_v4  ;;  %v4607_v49 = vld [vmem:[#allocation12 + $0x24] ss:$16 sps:$4 sm:$0xff]   ;;  %v4608_v4 = vld [vmem:[#allocation12 + $0x2c] ss:$16 sps:$4 sm:$0xff]  }
 0xaf6   :  { %3098 = vmatprep.subr.bf16.mxu0 %v4575_v17  ;;  %3139 = vmatprep.subr.bf16.mxu1 %v4576_v57  ;;  %v4609_v17 = vld [vmem:[#allocation12 + $0x20] ss:$16 sps:$4 sm:$0xff]   ;;  %v4610_v57 = vld [vmem:[#allocation12 + $0x28] ss:$16 sps:$4 sm:$0xff]  }
 0xaf9   :  { %3099 = vmatpush1.bf16.msra.mxu0 %v4577_v36  ;;  %3140 = vmatpush1.bf16.msra.mxu1 %v4578_v62  ;;  %v4611_v36 = vld [vmem:[#allocation12 + $0x4] ss:$16 sps:$4 sm:$0xff]   ;;  %v4612_v62 = vld [vmem:[#allocation12 + $0xc] ss:$16 sps:$4 sm:$0xff]  }
 0xafa   :  { %3100 = vmatprep.subr.bf16.mxu0 %v4579_v44  ;;  %3141 = vmatprep.subr.bf16.mxu1 %v4580_v48  ;;  %v4613_v44 = vld [vmem:[#allocation12] ss:$16 sps:$4 sm:$0xff]   ;;  %v4614_v48 = vld [vmem:[#allocation12 + $0x8] ss:$16 sps:$4 sm:$0xff]  }
 0xafd   :  { %3101 = vmatpush1.bf16.msra.mxu0 %v4581_v29  ;;  %3142 = vmatpush1.bf16.msra.mxu1 %v4582_v58 }
 0xafe   :  { %3168 = vmatprep.subr.bf16.mxu0 %v4583_v21  ;;  %3209 = vmatprep.subr.bf16.mxu1 %v4584_v56 }
 0xb00   :  { %3119 = vmatmul.mubr.bf16.vlgmr.msra.gmra.mxu0 %v5528_v61  ;;  %3160 = vmatmul.mubr.bf16.vlgmr.msra.gmra.mxu1 %v5528_v61  ;;  %v4593_v61 = vld [vmem:[#allocation12 + $0xa0] ss:$16 sps:$4 sm:$0xff]  }
 0xb01   :  { %3169 = vmatpush1.bf16.msra.mxu0 %v4585_v34  ;;  %3210 = vmatpush1.bf16.msra.mxu1 %v4586_v1 }
 0xb02   :  { %3170 = vmatprep.subr.bf16.mxu0 %v4587_v26  ;;  %3211 = vmatprep.subr.bf16.mxu1 %v4588_v20 }
 0xb03   :  { %3200 = vmatprep.mubr.bf16.mxu0 %v5733_v18  ;;  %3241 = vmatprep.mubr.bf16.mxu1 %v5733_v18  ;;  %v4599_v18 = vld [vmem:[#allocation12 + $0x64] ss:$16 sps:$4 sm:$0xff]  }
 0xb05   :  { %3171 = vmatpush1.bf16.msra.mxu0 %v4589_v41  ;;  %3212 = vmatpush1.bf16.msra.mxu1 %v4590_v31 }
 0xb06   :  { %3172 = vmatprep.subr.bf16.mxu0 %v4591_v43  ;;  %3213 = vmatprep.subr.bf16.mxu1 %v4592_v15 }
 0xb09   :  { %3173 = vmatpush1.bf16.msra.mxu0 %v4593_v61  ;;  %3214 = vmatpush1.bf16.msra.mxu1 %v4594_v59 }
 0xb0a   :  { %3174 = vmatprep.subr.bf16.mxu0 %v4595_v63  ;;  %3215 = vmatprep.subr.bf16.mxu1 %v4596_v42 }
 0xb0d   :  { %3175 = vmatpush1.bf16.msra.mxu0 %v4597_v46  ;;  %3216 = vmatpush1.bf16.msra.mxu1 %v4598_v55 }
 0xb0e   :  { %3176 = vmatprep.subr.bf16.mxu0 %v4599_v18  ;;  %3217 = vmatprep.subr.bf16.mxu1 %v4600_v50 }
 0xb11   :  { %3177 = vmatpush1.bf16.msra.mxu0 %v4601_v30  ;;  %3218 = vmatpush1.bf16.msra.mxu1 %v4602_v25 }
 0xb12   :  { %3178 = vmatprep.subr.bf16.mxu0 %v4603_v37  ;;  %3219 = vmatprep.subr.bf16.mxu1 %v4604_v10 }
 0xb15   :  { %3179 = vmatpush1.bf16.msra.mxu0 %v4605_v28  ;;  %3220 = vmatpush1.bf16.msra.mxu1 %v4606_v27 }
 0xb16   :  { %3180 = vmatprep.subr.bf16.mxu0 %v4607_v49  ;;  %3221 = vmatprep.subr.bf16.mxu1 %v4608_v4 }
 0xb19   :  { %3181 = vmatpush1.bf16.msra.mxu0 %v4609_v17  ;;  %3222 = vmatpush1.bf16.msra.mxu1 %v4610_v57 }
 0xb1a   :  { %3182 = vmatprep.subr.bf16.mxu0 %v4611_v36  ;;  %3223 = vmatprep.subr.bf16.mxu1 %v4612_v62 }
 0xb1d   :  { %3183 = vmatpush1.bf16.msra.mxu0 %v4613_v44  ;;  %3224 = vmatpush1.bf16.msra.mxu1 %v4614_v48 }
 0xba0   :  { %v3004_v29 = vpop.f32.mrf.mxu0  ;;  %v3045_v58 = vpop.f32.mrf.mxu1 }
 0xba1   :  { %v3005_v21 = vadd.f32 %v3004_v29, %v5424_v16  ;;  %v3046_v42 = vadd.f32 %v3045_v58, %v5426_v45 }
 0xba2   :  { %v3006_v56 = vpop.f32.mrf.mxu0  ;;  %v3047_v34 = vpop.f32.mrf.mxu1 }
 0xba3   :  { %v3052_v1 = vadd.f32 %v3005_v21, %v5108_v2  ;;  %v3007_v26 = vadd.f32 %v3006_v56, %v5428_v33  ;;  %v3048_v63 = vadd.f32 %v3047_v34, %v5430_v7  ;;  %v3054_v33 = vadd.f32 %v3046_v42, %v5125_v8 }
 0xba4   :  { %v3008_v20 = vpop.f32.mrf.mxu0  ;;  %v3049_v41 = vpop.f32.mrf.mxu1 }
 0xba5   :  { %v3940_v31 = vmul.f32 -1.442695, %v3052_v1  ;;  %v3053_v43 = vadd.f32 %v3007_v26, %v5779_v38  ;;  %v3055_v16 = vadd.f32 %v3048_v63, %v5122_v23 }
 0xba6   :  { %v3009_v15 = vpop.f32.mrf.mxu0  ;;  %v3050_v61 = vpop.f32.mrf.mxu1 }
 0xba7   :  { %4322 = vpow2.f32 %v3940_v31  ;;  %v3941_v59 = vmul.f32 -1.442695, %v3053_v43  ;;  %v3942_v46 = vmul.f32 -1.442695, %v3055_v16 }
 0xba9   :  { %4324 = vpow2.f32 %v3941_v59 }
 0xbaa   :  { %4326 = vpow2.f32 %v3942_v46 }
 0xbb4   :  { %v4323_v2 = vpop.eup %4322 }
 0xbb5   :  { %v3059_v55 = vadd.f32 1.0, %v4323_v2 }
 0xbb6   :  { %v4325_v18 = vpop.eup %4324 }
 0xbb7   :  { %4328 = vrcp.f32 %v3059_v55  ;;  %v3065_v38 = vadd.f32 1.0, %v4325_v18  ;;  %v4327_v7 = vpop.eup %4326 }
 0xbb8   :  { %4330 = vtanh.f32 %v3054_v33  ;;  %v3072_v49 = vadd.f32 1.0, %v4327_v7 }
 0xbb9   :  { %4332 = vrcp.f32 %v3065_v38 }
 0xbba   :  { %4334 = vrcp.f32 %v3072_v49 }
 0xbc0   :  { %v3120_v50 = vpop.f32.mrf.mxu0  ;;  %v3161_v30 = vpop.f32.mrf.mxu1 }
 0xbc2   :  { %v3122_v25 = vpop.f32.mrf.mxu0  ;;  %v3163_v37 = vpop.f32.mrf.mxu1 }
 0xbc4   :  { %v4329_v10 = vpop.eup %4328  ;;  %v3124_v23 = vpop.f32.mrf.mxu0 }
 0xbc5   :  { %v3165_v28 = vpop.f32.mrf.mxu1  ;;  %v4331_v45 = vpop.eup %4330 }
 0xbc6   :  { %v4333_v27 = vpop.eup %4332  ;;  %v3125_v4 = vpop.f32.mrf.mxu0  ;;  %v3077_v17 = vmul.f32 %v4331_v45, %v4329_v10 }
 0xbc7   :  { %v3166_v8 = vpop.f32.mrf.mxu1  ;;  %v3076_v57 = vmul.f32 %v4333_v27, %v5405_v52  ;;  %v4335_v62 = vpop.eup %4334 }
 0xbc9   :  { %v3078_v36 = vadd.f32 %v3077_v17, %v3076_v57 }
 0xbcb   :  { %4336 = vtanh.f32 %v3078_v36 }
 0xbd8   :  { %v4337_v44 = vpop.eup %4336 }
 0xbd9   :  { %v3080_v48 = vmul.f32 %v4337_v44, %v4335_v62 }
 0xbdb   :  { %v3083_v29 = vpack.c.bf16 %v3080_v48, %v3080_v48 }
 0xbdd   :  { %3201 = vmatmul.mubr.bf16.vlgmr.msra.gmra.mxu0 %v3083_v29  ;;  %3242 = vmatmul.mubr.bf16.vlgmr.msra.gmra.mxu1 %v3083_v29 }
 0xc9d   :  { %v3202_v58 = vpop.f32.mrf.mxu0  ;;  %v3243_v21 = vpop.f32.mrf.mxu1 }
 0xc9e   :  { %v3203_v56 = vadd.f32 %v3202_v58, %v3120_v50  ;;  %v3244_v42 = vadd.f32 %v3243_v21, %v3161_v30 }
 0xc9f   :  { %v3204_v34 = vpop.f32.mrf.mxu0  ;;  %v3245_v1 = vpop.f32.mrf.mxu1 }
 0xca0   :  { %v3250_v26 = vadd.f32 %v3203_v56, %v5221_v13  ;;  %v3205_v20 = vadd.f32 %v3204_v34, %v3122_v25  ;;  %v3246_v63 = vadd.f32 %v3245_v1, %v3163_v37  ;;  %v3252_v33 = vadd.f32 %v3244_v42, %v5237_v39 }
 0xca1   :  { %v3206_v41 = vpop.f32.mrf.mxu0  ;;  %v3247_v31 = vpop.f32.mrf.mxu1 }
 0xca2   :  { %v3943_v52 = vmul.f32 -1.442695, %v3250_v26  ;;  %v3251_v43 = vadd.f32 %v3205_v20, %v5225_v19  ;;  %v3253_v16 = vadd.f32 %v3246_v63, %v5232_v32 }
 0xca3   :  { %v3207_v15 = vpop.f32.mrf.mxu0  ;;  %v3248_v61 = vpop.f32.mrf.mxu1 }
 0xca4   :  { %4338 = vpow2.f32 %v3943_v52  ;;  %v3944_v59 = vmul.f32 -1.442695, %v3251_v43  ;;  %v3945_v46 = vmul.f32 -1.442695, %v3253_v16 }
 0xca6   :  { %4340 = vpow2.f32 %v3944_v59 }
 0xca7   :  { %4342 = vpow2.f32 %v3945_v46 }
 0xcb1   :  { %v4339_v2 = vpop.eup %4338 }
 0xcb2   :  { %v3257_v13 = vadd.f32 1.0, %v4339_v2 }
 0xcb3   :  { %v4341_v55 = vpop.eup %4340 }
 0xcb4   :  { %4344 = vrcp.f32 %v3257_v13  ;;  %v3263_v18 = vadd.f32 1.0, %v4341_v55  ;;  %v4343_v19 = vpop.eup %4342 }
 0xcb5   :  { %4346 = vtanh.f32 %v3252_v33  ;;  %v3270_v7 = vadd.f32 1.0, %v4343_v19 }
 0xcb6   :  { %4348 = vrcp.f32 %v3263_v18 }
 0xcb7   :  { %4350 = vrcp.f32 %v3270_v7 }
 0xcc1   :  { %v4345_v38 = vpop.eup %4344 }
 0xcc2   :  { %v4347_v50 = vpop.eup %4346 }
 0xcc3   :  { %v4349_v25 = vpop.eup %4348  ;;  %v3275_v37 = vmul.f32 %v4347_v50, %v4345_v38 }
 0xcc4   :  { %v3274_v32 = vmul.f32 %v4349_v25, %v5433_v14  ;;  %v4351_v10 = vpop.eup %4350 }
 0xcc6   :  { %v3276_v30 = vadd.f32 %v3275_v37, %v3274_v32 }
 0xcc8   :  { %4352 = vtanh.f32 %v3276_v30 }
 0xcd5   :  { %v4353_v39 = vpop.eup %4352 }
 0xcd6   :  { %v3278_v23 = vmul.f32 %v4353_v39, %v4351_v10 }
 0xcd8   :  { %v3289_v28 = vrot.slane %v3278_v23, %v5252_v60  ;;  %3732 = vst [vmem:[#allocation15] sm:$0xff] %v3278_v23  ;;  %v3282_v45 = vcombine.high %v3278_v23, %v3278_v23 }
 0xcda   :  { %v3305_v27 = vrot.slane %v3289_v28, %v5252_v60  ;;  %v3297_v49 = vcombine.high %v3289_v28, %v3289_v28  ;;  %v3296_v4 = vrot.slane %v3282_v45, %v5252_v60 }
 0xcdc   :  { %v3334_v8 = vrot.slane %v3305_v27, %v5774_v12  ;;  %v3319_v17 = vrot.slane %v3297_v49, %v5252_v60  ;;  %v3327_v14 = vcombine.high %v3305_v27, %v3305_v27  ;;  %v3312_v44 = vrot.slane %v3296_v4, %v5252_v60 }
 0xcdd   :  { %v3298_v56 = vcombine.high %v3296_v4, %v3296_v4 }
 0xcde   :  { %v3371_v57 = vmul.f32 %v5260_v0, %v3334_v8  ;;  %v3338_v36 = vrot.slane %v3319_v17, %v5774_v12  ;;  %v3342_v62 = vrot.slane %v3327_v14, %v5774_v12  ;;  %v3350_v58 = vrot.slane %v3312_v44, %v5774_v12 }
 0xcdf   :  { %v3329_v21 = vcombine.high %v3319_v17, %v3319_v17  ;;  %v3326_v26 = vrot.slane %v3298_v56, %v5252_v60  ;;  %v3328_v31 = vcombine.high %v3312_v44, %v3312_v44 }
 0xce0   :  { %3379 = vadd.xlane.f32.xlu0 %v3371_v57  ;;  %v3372_v48 = vmul.f32 %v5268_v24, %v3338_v36  ;;  %v3373_v29 = vmul.f32 %v5265_v6, %v3342_v62  ;;  %v3375_v34 = vmul.f32 %v5280_v40, %v3350_v58 }
 0xce1   :  { %v3346_v1 = vrot.slane %v3329_v21, %v5774_v12  ;;  %v3354_v41 = vrot.slane %v3326_v26, %v5774_v12  ;;  %v3358_v43 = vrot.slane %v3328_v31, %v5774_v12  ;;  %v3330_v15 = vcombine.high %v3326_v26, %v3326_v26 }
 0xce2   :  { %3381 = vadd.xlane.f32.xlu1 %v3372_v48 }
 0xce3   :  { %v3374_v20 = vmul.f32 %v5275_v35, %v3346_v1  ;;  %v3376_v52 = vmul.f32 %v5284_v47, %v3354_v41  ;;  %v3377_v61 = vmul.f32 %v5288_v51, %v3358_v43  ;;  %v3362_v59 = vrot.slane %v3330_v15, %v5774_v12  ;;  %v5782_v41 = vld [vmem:[#allocation22_spill] sm:$0xff] }
 0xce4   :  { %3383 = vadd.xlane.f32.xlu0 %v3373_v29 }
 0xce5   :  { %v3378_v60 = vmul.f32 %v5292_v54, %v3362_v59 }
 0xce8   :  { %3387 = vadd.xlane.f32.xlu0 %v3375_v34  ;;  %v5781_v34 = vld [vmem:[#allocation21_spill] sm:$0xff] }
 0xcec   :  { %3385 = vadd.xlane.f32.xlu0 %v3374_v20 }
 0xcf0   :  { %3389 = vadd.xlane.f32.xlu0 %v3376_v52 }
 0xcf4   :  { %3391 = vadd.xlane.f32.xlu0 %v3377_v61 }
 0xcf8   :  { %3393 = vadd.xlane.f32.xlu0 %v3378_v60 }
 0xd69   :  { %v3380_v63 = vpop.xlane.xlu0 %3379 }
 0xd6a   :  { %v3406_v13 = vrot.slane %v3380_v63, %v5299_v3 }
 0xd6b   :  { %v3382_v46 = vpop.xlane.xlu1 %3381 }
 0xd6c   :  { %v3410_v33 = vrot.slane %v3382_v46, %v5299_v3 }
 0xd6d   :  { %v3384_v16 = vpop.xlane.xlu0 %3383 }
 0xd6e   :  { %v3414_v55 = vrot.slane %v3384_v16, %v5299_v3  ;;  %v3435_v19 = vsel %vm1691_vm0, %v3410_v33, %v3406_v13 }
 0xd70   :  { %v3436_v50 = vsel %vm1693_vm1, %v3414_v55, %v3435_v19 }
 0xd71   :  { %v3388_v42 = vpop.xlane.xlu0 %3387 }
 0xd72   :  { %v3422_v32 = vrot.slane %v3388_v42, %v5299_v3 }
 0xd75   :  { %v3386_v2 = vpop.xlane.xlu0 %3385 }
 0xd76   :  { %v3418_v38 = vrot.slane %v3386_v2, %v5299_v3 }
 0xd78   :  { %v3437_v7 = vsel %vm1695_vm2, %v3418_v38, %v3436_v50 }
 0xd79   :  { %v3390_v18 = vpop.xlane.xlu0 %3389  ;;  %v3438_v39 = vsel %vm1697_vm3, %v3422_v32, %v3437_v7 }
 0xd7a   :  { %v3426_v37 = vrot.slane %v3390_v18, %v5299_v3 }
 0xd7c   :  { %v3439_v28 = vsel %vm1699_vm4, %v3426_v37, %v3438_v39 }
 0xd7d   :  { %v3392_v25 = vpop.xlane.xlu0 %3391 }
 0xd7e   :  { %v3430_v30 = vrot.slane %v3392_v25, %v5299_v3 }
 0xd80   :  { %v3440_v45 = vsel %vm1701_vm5, %v3430_v30, %v3439_v28 }
 0xd81   :  { %v3394_v10 = vpop.xlane.xlu0 %3393 }
 0xd82   :  { %v3434_v23 = vrot.slane %v3394_v10, %v5299_v3 }
 0xd84   :  { %v3441_v27 = vsel %vm1703_vm6, %v3434_v23, %v3440_v45 }
 0xd85   :  { %v3443_v49 = vsel %vm1706_vm7, %v3441_v27, -inf }
 0xd86   :  { %3444 = vmax.xlane.f32.xlu0 %v3443_v49 }
 0xe0f   :  { %v3445_v4 = vpop.xlane.xlu0 %3444 }
 0xe10   :  { %v3450_v8 = vrot.slane %v3445_v4, %v5774_v12  ;;  %v3454_v17 = vrot.slane %v3445_v4, %v5775_v22  ;;  %v3458_v14 = vrot.slane %v3445_v4, %v5119_v11  ;;  %v3462_v57 = vrot.slane %v3445_v4, %v5116_v5 }
 0xe11   :  { %v3466_v36 = vrot.slane %v3445_v4, %v5321_v53  ;;  %v3470_v29 = vrot.slane %v3445_v4, %v5325_v9  ;;  %v3474_v1 = vrot.slane %v3445_v4, %v5781_v34  ;;  %v3478_v31 = vrot.slane %v3445_v4, %v5782_v41 }
 0xe12   :  { %v3487_v62 = vsub.f32 %v3380_v63, %v3450_v8  ;;  %v3488_v44 = vsub.f32 %v3382_v46, %v3454_v17  ;;  %v3489_v48 = vsub.f32 %v3384_v16, %v3458_v14  ;;  %v3490_v58 = vsub.f32 %v3386_v2, %v3462_v57 }
 0xe13   :  { %v3491_v26 = vsub.f32 %v3388_v42, %v3466_v36  ;;  %v3492_v52 = vsub.f32 %v3390_v18, %v3470_v29  ;;  %v3493_v15 = vsub.f32 %v3392_v25, %v3474_v1  ;;  %v3494_v59 = vsub.f32 %v3394_v10, %v3478_v31 }
 0xe14   :  { %v3495_v21 = vmul.f32 1.442695, %v3487_v62  ;;  %v3497_v56 = vmul.f32 1.442695, %v3488_v44  ;;  %v3499_v20 = vmul.f32 1.442695, %v3489_v48 }
 0xe15   :  { %v3501_v43 = vmul.f32 1.442695, %v3490_v58  ;;  %v3503_v61 = vmul.f32 1.442695, %v3491_v26  ;;  %v3505_v60 = vmul.f32 1.442695, %v3492_v52 }
 0xe16   :  { %4354 = vpow2.f32 %v3495_v21  ;;  %v3507_v63 = vmul.f32 1.442695, %v3493_v15  ;;  %v3509_v16 = vmul.f32 1.442695, %v3494_v59 }
 0xe17   :  { %4356 = vpow2.f32 %v3497_v56 }
 0xe18   :  { %4358 = vpow2.f32 %v3499_v20 }
 0xe19   :  { %4360 = vpow2.f32 %v3501_v43 }
 0xe1a   :  { %4362 = vpow2.f32 %v3503_v61 }
 0xe1b   :  { %4364 = vpow2.f32 %v3505_v60 }
 0xe1c   :  { %4366 = vpow2.f32 %v3507_v63 }
 0xe1d   :  { %4368 = vpow2.f32 %v3509_v16 }
 0xe23   :  { %v4355_v46 = vpop.eup %4354 }
 0xe24   :  { %v4357_v42 = vpop.eup %4356  ;;  %3520 = vperm.xlu0 %3981, %v4355_v46  }
 0xe25   :  { %3523 = vperm.xlu1 %3980, %v4357_v42   ;;  %v4359_v2 = vpop.eup %4358 }
 0xe26   :  { %v4361_v33 = vpop.eup %4360 }
 0xe27   :  { %v4363_v13 = vpop.eup %4362 }
 0xe28   :  { %3526 = vperm.xlu0 %3981, %v4359_v2   ;;  %v4365_v55 = vpop.eup %4364 }
 0xe29   :  { %3529 = vperm.xlu1 %3980, %v4361_v33   ;;  %v4367_v18 = vpop.eup %4366 }
 0xe2a   :  { %v4369_v19 = vpop.eup %4368 }
 0xe2c   :  { %3532 = vperm.xlu0 %3981, %v4363_v13  }
 0xe2d   :  { %3535 = vperm.xlu1 %3980, %v4365_v55  }
 0xe30   :  { %3538 = vperm.xlu0 %3981, %v4367_v18  }
 0xe31   :  { %3541 = vperm.xlu1 %3980, %v4369_v19  }
 0xe9f   :  { %v3521_v38 = vpop.permute.xlu0 %3520 }
 0xea0   :  { %v3524_v50 = vpop.permute.xlu1 %3523  ;;  %v3546_v7 = vrot.slane %v3521_v38, %v5299_v3 }
 0xea1   :  { %v3550_v25 = vrot.slane %v3524_v50, %v5299_v3 }
 0xea3   :  { %v3527_v37 = vpop.permute.xlu0 %3526  ;;  %v3575_v10 = vsel %vm1691_vm0, %v3550_v25, %v3546_v7 }
 0xea4   :  { %v3530_v32 = vpop.permute.xlu1 %3529  ;;  %v3554_v30 = vrot.slane %v3527_v37, %v5299_v3 }
 0xea5   :  { %v3558_v39 = vrot.slane %v3530_v32, %v5299_v3 }
 0xea6   :  { %v3576_v23 = vsel %vm1693_vm1, %v3554_v30, %v3575_v10 }
 0xea7   :  { %v3533_v28 = vpop.permute.xlu0 %3532  ;;  %v3577_v4 = vsel %vm1695_vm2, %v3558_v39, %v3576_v23 }
 0xea8   :  { %v3536_v45 = vpop.permute.xlu1 %3535  ;;  %v3562_v27 = vrot.slane %v3533_v28, %v5299_v3 }
 0xea9   :  { %v3566_v49 = vrot.slane %v3536_v45, %v5299_v3 }
 0xeaa   :  { %v3578_v8 = vsel %vm1697_vm3, %v3562_v27, %v3577_v4 }
 0xeab   :  { %v3539_v17 = vpop.permute.xlu0 %3538  ;;  %v3579_v62 = vsel %vm1699_vm4, %v3566_v49, %v3578_v8 }
 0xeac   :  { %v3542_v14 = vpop.permute.xlu1 %3541  ;;  %v3570_v57 = vrot.slane %v3539_v17, %v5299_v3 }
 0xead   :  { %v3574_v36 = vrot.slane %v3542_v14, %v5299_v3 }
 0xeae   :  { %v3580_v44 = vsel %vm1701_vm5, %v3570_v57, %v3579_v62 }
 0xeaf   :  { %v3581_v48 = vsel %vm1703_vm6, %v3574_v36, %v3580_v44 }
 0xeb0   :  { %v3583_v29 = vsel %vm1706_vm7, %v3581_v48, 0.0 }
 0xeb1   :  { %3584 = vadd.xlane.f32.xlu0 %v3583_v29 }
 0xf3a   :  { %v3585_v58 = vpop.xlane.xlu0 %3584 }
 0xf3b   :  { %4370 = vrcp.f32 %v3585_v58 }
 0xf48   :  { %v4371_v21 = vpop.eup %4370 }
 0xf49   :  { %v3591_v56 = vrot.slane %v4371_v21, %v5774_v12  ;;  %v3595_v26 = vrot.slane %v4371_v21, %v5775_v22  ;;  %v3599_v3 = vrot.slane %v4371_v21, %v5119_v11  ;;  %v3603_v52 = vrot.slane %v4371_v21, %v5116_v5 }
 0xf4a   :  { %v3607_v15 = vrot.slane %v4371_v21, %v5321_v53  ;;  %v3611_v59 = vrot.slane %v4371_v21, %v5325_v9  ;;  %v3615_v22 = vrot.slane %v4371_v21, %v5781_v34  ;;  %v3619_v11 = vrot.slane %v4371_v21, %v5782_v41 }
 0xf4b   :  { %v3628_v1 = vmul.f32 %v4355_v46, %v3591_v56  ;;  %v3629_v20 = vmul.f32 %v4357_v42, %v3595_v26  ;;  %v3630_v31 = vmul.f32 %v4359_v2, %v3599_v3  ;;  %v3631_v43 = vmul.f32 %v4361_v33, %v3603_v52 }
 0xf4c   :  { %v3632_v61 = vmul.f32 %v4363_v13, %v3607_v15  ;;  %v3633_v12 = vmul.f32 %v4365_v55, %v3611_v59  ;;  %v3634_v60 = vmul.f32 %v4367_v18, %v3615_v22  ;;  %v3635_v63 = vmul.f32 %v4369_v19, %v3619_v11 }
 0xf4d   :  { %3638 = vperm.xlu1 %3980, %v3628_v1  }
 0xf51   :  { %3643 = vperm.xlu1 %3980, %v3629_v20  }
 0xf55   :  { %3648 = vperm.xlu1 %3980, %v3630_v31  }
 0xf59   :  { %3653 = vperm.xlu1 %3980, %v3631_v43  }
 0xf5d   :  { %3658 = vperm.xlu1 %3980, %v3632_v61  }
 0xf61   :  { %3663 = vperm.xlu1 %3980, %v3633_v12  }
 0xf65   :  { %3668 = vperm.xlu1 %3980, %v3634_v60  }
 0xf69   :  { %3673 = vperm.xlu1 %3980, %v3635_v63  }
 0xfc8   :  { %v3639_v5 = vpop.permute.xlu1 %3638 }
 0xfc9   :  { %v3676_v9 = vmul.f32 %v5260_v0, %v3639_v5 }
 0xfcb   :  { %v3684_v55 = vrot.slane %v3676_v9, 4 }
 0xfcc   :  { %v3644_v16 = vpop.permute.xlu1 %3643 }
 0xfcd   :  { %v3677_v53 = vmul.f32 %v5268_v24, %v3644_v16  ;;  %v3685_v25 = vadd.f32 %v3684_v55, %v3676_v9 }
 0xfcf   :  { %v3690_v33 = vrot.slane %v3677_v53, 4  ;;  %v3686_v10 = vrot.slane %v3685_v25, 2 }
 0xfd0   :  { %v3649_v46 = vpop.permute.xlu1 %3648 }
 0xfd1   :  { %v3678_v42 = vmul.f32 %v5265_v6, %v3649_v46  ;;  %v3691_v38 = vadd.f32 %v3690_v33, %v3677_v53  ;;  %v3687_v4 = vadd.f32 %v3686_v10, %v3685_v25 }
 0xfd3   :  { %v3696_v13 = vrot.slane %v3678_v42, 4  ;;  %v3692_v32 = vrot.slane %v3691_v38, 2  ;;  %v3688_v58 = vrot.slane %v3687_v4, 1 }
 0xfd4   :  { %v3654_v2 = vpop.permute.xlu1 %3653 }
 0xfd5   :  { %v3679_v34 = vmul.f32 %v5275_v35, %v3654_v2  ;;  %v3697_v50 = vadd.f32 %v3696_v13, %v3678_v42  ;;  %v3693_v45 = vadd.f32 %v3692_v32, %v3691_v38  ;;  %v3689_v43 = vadd.f32 %v3688_v58, %v3687_v4 }
 0xfd7   :  { %v3702_v18 = vrot.slane %v3679_v34, 4  ;;  %v3698_v30 = vrot.slane %v3697_v50, 2  ;;  %v3694_v62 = vrot.slane %v3693_v45, 1 }
 0xfd8   :  { %v3659_v41 = vpop.permute.xlu1 %3658 }
 0xfd9   :  { %v3680_v19 = vmul.f32 %v5280_v40, %v3659_v41  ;;  %v3703_v7 = vadd.f32 %v3702_v18, %v3679_v34  ;;  %v3699_v40 = vadd.f32 %v3698_v30, %v3697_v50  ;;  %v3695_v20 = vadd.f32 %v3694_v62, %v3693_v45 }
 0xfdb   :  { %v3708_v37 = vrot.slane %v3680_v19, 4  ;;  %v3704_v39 = vrot.slane %v3703_v7, 2  ;;  %v3700_v29 = vrot.slane %v3699_v40, 1  ;;  %v3741_v22 = vsel %vm1691_vm0, %v3695_v20, %v3689_v43 }
 0xfdc   :  { %v3664_v24 = vpop.permute.xlu1 %3663 }
 0xfdd   :  { %v3709_v6 = vadd.f32 %v3708_v37, %v3680_v19  ;;  %v3681_v0 = vmul.f32 %v5284_v47, %v3664_v24  ;;  %v3705_v8 = vadd.f32 %v3704_v39, %v3703_v7  ;;  %v3701_v52 = vadd.f32 %v3700_v29, %v3699_v40 }
 0xfdf   :  { %v3714_v35 = vrot.slane %v3681_v0, 4  ;;  %v3710_v23 = vrot.slane %v3709_v6, 2  ;;  %v3706_v21 = vrot.slane %v3705_v8, 1  ;;  %v3742_v11 = vsel %vm1693_vm1, %v3701_v52, %v3741_v22 }
 0xfe0   :  { %v3669_v28 = vpop.permute.xlu1 %3668 }
 0xfe1   :  { %v3715_v27 = vadd.f32 %v3714_v35, %v3681_v0  ;;  %v3682_v49 = vmul.f32 %v5288_v51, %v3669_v28  ;;  %v3711_v57 = vadd.f32 %v3710_v23, %v3709_v6  ;;  %v3707_v15 = vadd.f32 %v3706_v21, %v3705_v8 }
 0xfe3   :  { %v3716_v17 = vrot.slane %v3715_v27, 2  ;;  %v3720_v14 = vrot.slane %v3682_v49, 4  ;;  %v3712_v26 = vrot.slane %v3711_v57, 1  ;;  %v3743_v5 = vsel %vm1695_vm2, %v3707_v15, %v3742_v11 }
 0xfe4   :  { %v3674_v36 = vpop.permute.xlu1 %3673 }
 0xfe5   :  { %v3717_v44 = vadd.f32 %v3716_v17, %v3715_v27  ;;  %v3721_v47 = vadd.f32 %v3720_v14, %v3682_v49  ;;  %v3683_v48 = vmul.f32 %v5292_v54, %v3674_v36  ;;  %v3713_v12 = vadd.f32 %v3712_v26, %v3711_v57 }
 0xfe7   :  { %v3722_v56 = vrot.slane %v3721_v47, 2  ;;  %v3726_v1 = vrot.slane %v3683_v48, 4  ;;  %v3718_v51 = vrot.slane %v3717_v44, 1  ;;  %v3744_v46 = vsel %vm1697_vm3, %v3713_v12, %v3743_v5 }
 0xfe9   :  { %v3723_v3 = vadd.f32 %v3722_v56, %v3721_v47  ;;  %v3727_v31 = vadd.f32 %v3726_v1, %v3683_v48  ;;  %v3719_v60 = vadd.f32 %v3718_v51, %v3717_v44 }
 0xfeb   :  { %v3724_v61 = vrot.slane %v3723_v3, 1  ;;  %v3728_v59 = vrot.slane %v3727_v31, 2  ;;  %v3745_v53 = vsel %vm1699_vm4, %v3719_v60, %v3744_v46 }
 0xfed   :  { %v3729_v54 = vadd.f32 %v3728_v59, %v3727_v31  ;;  %v3725_v63 = vadd.f32 %v3724_v61, %v3723_v3 }
 0xfef   :  { %v3730_v16 = vrot.slane %v3729_v54, 1  ;;  %v3746_v9 = vsel %vm1701_vm5, %v3725_v63, %v3745_v53 }
 0xff1   :  { %v3731_v42 = vadd.f32 %v3730_v16, %v3729_v54 }
 0xff3   :  { %v3747_v2 = vsel %vm1703_vm6, %v3731_v42, %v3746_v9 }
 0xff4   :  { %3749 = vst [vmem:[#allocation15 + $0x8] sm:$0xff] %v3747_v2 }
 0xff5   :  { %4746 = shalt.err (!%p4743_p6)
}
 0xff6   :  { %3759 = dma.vmem_to_hbm [thread:$0]  %s3757_s27, 256, %s5647_s7, [#allocation6]  }
 0xff7   :  { %4763 = dma.done.wait [#allocation6], 256  }
 0xff8   :  { %4764 = vsyncadd [#allocation6], 4294967040 }
 0xff9   :  { %3763 = vsyncpa [#allocation5], 1 }
 0xffa   :  { %3764 = vsyncpa [#allocation8], 1 }
 0xffb   :  { %3765 = vsyncpa [#allocation11], 1 }
 0xffc   :  { %3766 = vsyncpa [#allocation14], 1 }
 0xffd   :  { %3767 = vsyncpa [#allocation6], 1 }

</bundles_post_ra>
